<compile_context>
chip_gen: v7x
topology: tpu7x:2x2x1
jax: 0.10.0
libtpu: 0.0.40
codegen_flags: <defaults>
</compile_context>

<pallas_src>
import numpy as np
import jax
import jax.numpy as jnp
from jax.experimental import pallas as pl
from jax.experimental.pallas import tpu as pltpu

EPS = 1e-5
NEG_SLOPE = 0.2
MM_DTYPE = jnp.bfloat16       # MXU operand dtype; accumulation & BN math stay f32
KH = KW = 4
STRIDE = 2
PAD = 1
TAPS = KH * KW
OUT_LANES = 8                 # conv4's single output channel, padded to 8 lanes


# ------------------------------- Pallas kernel ------------------------------ #

def make_discriminator_kernel(n, h, w, nf):
    """Builds the fused forward kernel, specialized to static shapes."""
    h1, w1 = h // 2, w // 2                      # layer-1 output spatial
    c1, c2, c3 = nf, 2 * nf, 4 * nf

    def bn_lrelu(y, g_ref, b_ref):
        # Training-mode BatchNorm (biased variance), one-pass stats + LeakyReLU.
        m = y.shape[0]
        s1 = jnp.sum(y, axis=0, keepdims=True)
        s2 = jnp.sum(y * y, axis=0, keepdims=True)
        mean = s1 * (1.0 / m)
        var = s2 * (1.0 / m) - mean * mean
        z = (y - mean) * jax.lax.rsqrt(var + EPS) * g_ref[...] + b_ref[...]
        return jnp.where(z >= 0, z, NEG_SLOPE * z)

    def conv_s2(x, w_ref):
        """4x4 / stride-2 / pad-1 conv of x:(n, hin, win, cin) f32 as a single
        dense im2col matmul with K = 16*cin.  Returns (n*ho*wo, cout) f32."""
        _, hin, win, cin = x.shape
        ho, wo = hin // 2, win // 2
        # Zero spatial border.  w: +1/+1.  h: +1 top / +2 bottom -- the extra
        # bottom row only keeps the kh=3 slice in-bounds; no valid tap reads it.
        zw = jnp.zeros((n, hin, 1, cin), x.dtype)
        xp = jnp.concatenate([zw, x, zw], axis=2)                # (n, hin, win+2, c)
        zt = jnp.zeros((n, 1, win + 2, cin), x.dtype)
        zb = jnp.zeros((n, 2, win + 2, cin), x.dtype)
        xp = jnp.concatenate([zt, xp, zb], axis=1)               # (n, hin+3, win+2, c)
        # Stride-2 row extraction per kh: contiguous slice + major-dim reshape
        # + major-dim index (no strided memory access anywhere).
        rows = [xp[:, kh:kh + 2 * ho, :, :]
                  .reshape(n, ho, 2, win + 2, cin)[:, :, 0, :, :]
                for kh in range(KH)]                             # each (n, ho, win+2, c)
        # Stride-2 column access handled by looping over the (<=4) output cols
        # with contiguous width-1 slices; taps are packed along lanes (K dim).
        cols = []
        for ox in range(wo):
            pieces = [rows[kh][:, :, 2 * ox + kw:2 * ox + kw + 1, :]
                      for kh in range(KH) for kw in range(KW)]   # (n, ho, 1, c) each
            cols.append(jnp.concatenate(pieces, axis=-1))        # (n, ho, 1, 16c)
        p = jnp.concatenate(cols, axis=2)                        # (n, ho, wo, 16c)
        p = p.reshape(n * ho * wo, TAPS * cin).astype(MM_DTYPE)
        wmat = w_ref[...]                                        # (16c, cout) bf16
        return jnp.dot(p, wmat, preferred_element_type=jnp.float32)

    def kernel(p1_ref, w1_ref, w2_ref, w3_ref, w4_ref,
               g1_ref, b1_ref, g2_ref, b2_ref, g3_ref, b3_ref, o_ref):
        # layer 1: wrapper-built im2col patches, one K=16 matmul.
        y = jnp.dot(p1_ref[...].astype(MM_DTYPE), w1_ref[...],
                    preferred_element_type=jnp.float32)          # (n*h1*w1, c1)
        y = bn_lrelu(y, g1_ref, b1_ref)
        # layer 2
        y = conv_s2(y.reshape(n, h1, w1, c1), w2_ref)            # (n*h1/2*w1/2, c2)
        y = bn_lrelu(y, g2_ref, b2_ref)
        # layer 3
        y = conv_s2(y.reshape(n, h1 // 2, w1 // 2, c2), w3_ref)  # (n*h1/4*w1/4, c3)
        y = bn_lrelu(y, g3_ref, b3_ref)
        # layer 4 (no BN) + exact sigmoid; only lane 0 of the output is real.
        y = conv_s2(y.reshape(n, h1 // 4, w1 // 4, c3), w4_ref)  # (n, OUT_LANES)
        o_ref[...] = 1.0 / (1.0 + jnp.exp(-y))

    return kernel


# ------------------------------ parameter setup ----------------------------- #

def init_params(key, num_filters=32):
    chans = [(1, num_filters), (num_filters, 2 * num_filters),
             (2 * num_filters, 4 * num_filters), (4 * num_filters, 1)]
    keys = jax.random.split(key, 8)
    params = {}
    for i, (cin, cout) in enumerate(chans):
        params[f"w{i + 1}"] = 0.02 * jax.random.normal(
            keys[2 * i], (cout, cin, KH, KW), jnp.float32)
        if i < 3:  # BN affine for layers 1-3
            params[f"g{i + 1}"] = 1.0 + 0.02 * jax.random.normal(
                keys[2 * i + 1], (cout,), jnp.float32)
            params[f"b{i + 1}"] = jnp.zeros((cout,), jnp.float32)
    return params


def pack_params(params):
    """Dense (16*Cin, Cout) weight blocks + BN affine rows; prepared once."""
    def pack(w_oihw):
        w = np.asarray(w_oihw, np.float32)            # (cout, cin, 4, 4)
        cout, cin = w.shape[:2]
        # row index = (kh*4 + kw)*cin + cin_idx  -- must match the patch layout.
        return np.transpose(w, (2, 3, 1, 0)).reshape(KH * KW * cin, cout)

    w4 = pack(params["w4"])                           # (16*c3, 1)
    w4p = np.zeros((w4.shape[0], OUT_LANES), np.float32)
    w4p[:, :1] = w4

    packed = dict(
        w1=jnp.asarray(pack(params["w1"]), MM_DTYPE),
        w2=jnp.asarray(pack(params["w2"]), MM_DTYPE),
        w3=jnp.asarray(pack(params["w3"]), MM_DTYPE),
        w4=jnp.asarray(w4p, MM_DTYPE))
    for l in (1, 2, 3):
        packed[f"g{l}"] = jnp.asarray(params[f"g{l}"], jnp.float32).reshape(1, -1)
        packed[f"b{l}"] = jnp.asarray(params[f"b{l}"], jnp.float32).reshape(1, -1)
    return packed


# --------------------------------- forward ---------------------------------- #

@jax.jit
def discriminator_forward(x_nchw, packed):
    n, c, h, w = x_nchw.shape
    assert c == 1
    nf = packed["w1"].shape[1]
    ho, wo = h // 2, w // 2

    # Layer-1 im2col in the wrapper: (n*ho*wo, 16) patches (Cin=1), 4 KiB.
    xp = jnp.pad(x_nchw[:, 0, :, :].astype(jnp.float32), ((0, 0), (1, 1), (1, 1)))
    p1 = jnp.stack([xp[:, kh:kh + 2 * ho:2, kw:kw + 2 * wo:2]
                    for kh in range(KH) for kw in range(KW)], axis=-1)
    p1 = p1.reshape(n * ho * wo, TAPS)

    kernel = make_discriminator_kernel(n, h, w, nf)
    vmem = lambda: pl.BlockSpec(memory_space=pltpu.MemorySpace.VMEM)
    out = pl.pallas_call(
        kernel,
        out_shape=jax.ShapeDtypeStruct((n, OUT_LANES), jnp.float32),
        in_specs=[vmem() for _ in range(11)],
        out_specs=vmem(),
        # Actual footprint < 2 MiB; explicit limit keeps v7x (64 MiB VMEM) safe.
        compiler_params=pltpu.CompilerParams(vmem_limit_bytes=16 * 1024 * 1024),
    )(p1, packed["w1"], packed["w2"], packed["w3"], packed["w4"],
      packed["g1"], packed["b1"], packed["g2"], packed["b2"],
      packed["g3"], packed["b3"])
    # conv4 output is (N,1,1,1); torch .squeeze() -> (N,) for N > 1.
    return out[:, 0]


# ------------------------ pure-JAX reference (check) ------------------------ #

def reference_forward(x_nchw, params):
    def conv(x, w):
        return jax.lax.conv_general_dilated(
            x, w, window_strides=(STRIDE, STRIDE), padding=((PAD, PAD), (PAD, PAD)),
            dimension_numbers=("NCHW", "OIHW", "NCHW"))

    def bn_lrelu(y, g, b):
        mean = jnp.mean(y, axis=(0, 2, 3), keepdims=True)
        var = jnp.mean((y - mean) ** 2, axis=(0, 2, 3), keepdims=True)
        z = (y - mean) * jax.lax.rsqrt(var + EPS)
        z = z * g.reshape(1, -1, 1, 1) + b.reshape(1, -1, 1, 1)
        return jnp.where(z >= 0, z, NEG_SLOPE * z)

    x = x_nchw.astype(jnp.float32)
    for i in (1, 2, 3):
        x = bn_lrelu(conv(x, params[f"w{i}"]), params[f"g{i}"], params[f"b{i}"])
    return jnp.squeeze(jax.nn.sigmoid(conv(x, params["w4"])))


# ---------------------------------- main ------------------------------------ #

if __name__ == "__main__":
    key = jax.random.PRNGKey(0)
    k_param, k_x = jax.random.split(key)

    num_filters = 32                    # torch module default
    N, H, W = 2, 16, 16                 # spatial halves 4x: 16 -> 8 -> 4 -> 2 -> 1
    params = init_params(k_param, num_filters)
    packed = pack_params(params)

    x = jax.random.normal(k_x, (N, 1, H, W), jnp.float32)

    out = jax.block_until_ready(discriminator_forward(x, packed))
    ref = jax.block_until_ready(reference_forward(x, params))

    assert out.shape == ref.shape, (out.shape, ref.shape)
    err = float(jnp.max(jnp.abs(out - ref)))
    # bf16 MXU operands vs. the f32 reference conv: expect O(1e-3..1e-2) drift
    # after 3 batch-normalized layers (set MM_DTYPE = jnp.float32 for <1e-5).
    assert err < 2e-2, err
    print("KERNEL_OK")
</pallas_src>

<mosaic_0001>
module attributes {stable_mosaic.version = 11 : i64} {
  func.func @kernel(%arg0: memref<128x16xf32, #tpu.memory_space<vmem>>, %arg1: memref<16x32xbf16, #tpu.memory_space<vmem>>, %arg2: memref<512x64xbf16, #tpu.memory_space<vmem>>, %arg3: memref<1024x128xbf16, #tpu.memory_space<vmem>>, %arg4: memref<2048x8xbf16, #tpu.memory_space<vmem>>, %arg5: memref<1x32xf32, #tpu.memory_space<vmem>>, %arg6: memref<1x32xf32, #tpu.memory_space<vmem>>, %arg7: memref<1x64xf32, #tpu.memory_space<vmem>>, %arg8: memref<1x64xf32, #tpu.memory_space<vmem>>, %arg9: memref<1x128xf32, #tpu.memory_space<vmem>>, %arg10: memref<1x128xf32, #tpu.memory_space<vmem>>, %arg11: memref<2x8xf32, #tpu.memory_space<vmem>>) attributes {dimension_semantics = [], scalar_prefetch = 0 : i64, scratch_operands = 0 : i64, tpu.core_type = #tpu.core_type<tc>} {
    %c0 = arith.constant 0 : index
    %c0_0 = arith.constant 0 : index
    %0 = vector.load %arg0[%c0, %c0_0] : memref<128x16xf32, #tpu.memory_space<vmem>>, vector<128x16xf32>
    %1 = arith.truncf %0 : vector<128x16xf32> to vector<128x16xbf16>
    %c0_1 = arith.constant 0 : index
    %c0_2 = arith.constant 0 : index
    %2 = vector.load %arg1[%c0_1, %c0_2] : memref<16x32xbf16, #tpu.memory_space<vmem>>, vector<16x32xbf16>
    %cst = arith.constant dense<0.000000e+00> : vector<128x32xf32>
    %3 = tpu.matmul %1, %2, %cst {dimension_numbers = #tpu.dot_dimension_numbers<[1], [0], [0], [1], [0, 0, 1, 1], [], []>} : vector<128x16xbf16>, vector<16x32xbf16>, vector<128x32xf32> -> vector<128x32xf32>
    %cst_3 = arith.constant dense<0.000000e+00> : vector<32xf32>
    %4 = vector.multi_reduction <add>, %3, %cst_3 [0] : vector<128x32xf32> to vector<32xf32>
    %5 = vector.shape_cast %4 : vector<32xf32> to vector<1x32xf32>
    %6 = arith.mulf %3, %3 : vector<128x32xf32>
    %cst_4 = arith.constant dense<0.000000e+00> : vector<32xf32>
    %7 = vector.multi_reduction <add>, %6, %cst_4 [0] : vector<128x32xf32> to vector<32xf32>
    %8 = vector.shape_cast %7 : vector<32xf32> to vector<1x32xf32>
    %cst_5 = arith.constant 7.812500e-03 : f32
    %9 = vector.broadcast %cst_5 : f32 to vector<1x32xf32>
    %10 = arith.mulf %5, %9 : vector<1x32xf32>
    %cst_6 = arith.constant 7.812500e-03 : f32
    %11 = vector.broadcast %cst_6 : f32 to vector<1x32xf32>
    %12 = arith.mulf %8, %11 : vector<1x32xf32>
    %13 = arith.mulf %10, %10 : vector<1x32xf32>
    %14 = arith.subf %12, %13 : vector<1x32xf32>
    %15 = vector.broadcast %10 : vector<1x32xf32> to vector<128x32xf32>
    %16 = arith.subf %3, %15 : vector<128x32xf32>
    %cst_7 = arith.constant 9.99999974E-6 : f32
    %17 = vector.broadcast %cst_7 : f32 to vector<1x32xf32>
    %18 = arith.addf %14, %17 : vector<1x32xf32>
    %19 = math.rsqrt %18 : vector<1x32xf32>
    %20 = vector.broadcast %19 : vector<1x32xf32> to vector<128x32xf32>
    %21 = arith.mulf %16, %20 : vector<128x32xf32>
    %c0_8 = arith.constant 0 : index
    %c0_9 = arith.constant 0 : index
    %22 = vector.load %arg5[%c0_8, %c0_9] : memref<1x32xf32, #tpu.memory_space<vmem>>, vector<1x32xf32>
    %23 = vector.broadcast %22 : vector<1x32xf32> to vector<128x32xf32>
    %24 = arith.mulf %21, %23 : vector<128x32xf32>
    %c0_10 = arith.constant 0 : index
    %c0_11 = arith.constant 0 : index
    %25 = vector.load %arg6[%c0_10, %c0_11] : memref<1x32xf32, #tpu.memory_space<vmem>>, vector<1x32xf32>
    %26 = vector.broadcast %25 : vector<1x32xf32> to vector<128x32xf32>
    %27 = arith.addf %24, %26 : vector<128x32xf32>
    %cst_12 = arith.constant 0.000000e+00 : f32
    %28 = vector.broadcast %cst_12 : f32 to vector<128x32xf32>
    %29 = arith.cmpf oge, %27, %28 : vector<128x32xf32>
    %cst_13 = arith.constant 2.000000e-01 : f32
    %30 = vector.broadcast %cst_13 : f32 to vector<128x32xf32>
    %31 = arith.mulf %30, %27 : vector<128x32xf32>
    %32 = arith.select %29, %27, %31 : vector<128x32xi1>, vector<128x32xf32>
    %33 = vector.shape_cast %32 : vector<128x32xf32> to vector<2x8x8x32xf32>
    %cst_14 = arith.constant 0.000000e+00 : f32
    %34 = vector.broadcast %cst_14 : f32 to vector<2x8x1x32xf32>
    %35 = tpu.concatenate %34, %33, %34 in 2 : vector<2x8x1x32xf32>, vector<2x8x8x32xf32>, vector<2x8x1x32xf32> -> vector<2x8x10x32xf32>
    %cst_15 = arith.constant 0.000000e+00 : f32
    %36 = vector.broadcast %cst_15 : f32 to vector<2x1x10x32xf32>
    %cst_16 = arith.constant 0.000000e+00 : f32
    %37 = vector.broadcast %cst_16 : f32 to vector<2x2x10x32xf32>
    %38 = tpu.concatenate %36, %35, %37 in 1 : vector<2x1x10x32xf32>, vector<2x8x10x32xf32>, vector<2x2x10x32xf32> -> vector<2x11x10x32xf32>
    %39 = vector.extract_strided_slice %38 {offsets = [0, 0, 0, 0], sizes = [2, 8, 10, 32], strides = [1, 1, 1, 1]} : vector<2x11x10x32xf32> to vector<2x8x10x32xf32>
    %40 = vector.shape_cast %39 : vector<2x8x10x32xf32> to vector<2x4x2x10x32xf32>
    %41 = vector.extract_strided_slice %40 {offsets = [0, 0, 0, 0, 0], sizes = [2, 4, 1, 10, 32], strides = [1, 1, 1, 1, 1]} : vector<2x4x2x10x32xf32> to vector<2x4x1x10x32xf32>
    %42 = vector.shape_cast %41 : vector<2x4x1x10x32xf32> to vector<2x4x10x32xf32>
    %43 = vector.extract_strided_slice %38 {offsets = [0, 1, 0, 0], sizes = [2, 8, 10, 32], strides = [1, 1, 1, 1]} : vector<2x11x10x32xf32> to vector<2x8x10x32xf32>
    %44 = vector.shape_cast %43 : vector<2x8x10x32xf32> to vector<2x4x2x10x32xf32>
    %45 = vector.extract_strided_slice %44 {offsets = [0, 0, 0, 0, 0], sizes = [2, 4, 1, 10, 32], strides = [1, 1, 1, 1, 1]} : vector<2x4x2x10x32xf32> to vector<2x4x1x10x32xf32>
    %46 = vector.shape_cast %45 : vector<2x4x1x10x32xf32> to vector<2x4x10x32xf32>
    %47 = vector.extract_strided_slice %38 {offsets = [0, 2, 0, 0], sizes = [2, 8, 10, 32], strides = [1, 1, 1, 1]} : vector<2x11x10x32xf32> to vector<2x8x10x32xf32>
    %48 = vector.shape_cast %47 : vector<2x8x10x32xf32> to vector<2x4x2x10x32xf32>
    %49 = vector.extract_strided_slice %48 {offsets = [0, 0, 0, 0, 0], sizes = [2, 4, 1, 10, 32], strides = [1, 1, 1, 1, 1]} : vector<2x4x2x10x32xf32> to vector<2x4x1x10x32xf32>
    %50 = vector.shape_cast %49 : vector<2x4x1x10x32xf32> to vector<2x4x10x32xf32>
    %51 = vector.extract_strided_slice %38 {offsets = [0, 3, 0, 0], sizes = [2, 8, 10, 32], strides = [1, 1, 1, 1]} : vector<2x11x10x32xf32> to vector<2x8x10x32xf32>
    %52 = vector.shape_cast %51 : vector<2x8x10x32xf32> to vector<2x4x2x10x32xf32>
    %53 = vector.extract_strided_slice %52 {offsets = [0, 0, 0, 0, 0], sizes = [2, 4, 1, 10, 32], strides = [1, 1, 1, 1, 1]} : vector<2x4x2x10x32xf32> to vector<2x4x1x10x32xf32>
    %54 = vector.shape_cast %53 : vector<2x4x1x10x32xf32> to vector<2x4x10x32xf32>
    %55 = vector.extract_strided_slice %42 {offsets = [0, 0, 0, 0], sizes = [2, 4, 1, 32], strides = [1, 1, 1, 1]} : vector<2x4x10x32xf32> to vector<2x4x1x32xf32>
    %56 = vector.extract_strided_slice %42 {offsets = [0, 0, 1, 0], sizes = [2, 4, 1, 32], strides = [1, 1, 1, 1]} : vector<2x4x10x32xf32> to vector<2x4x1x32xf32>
    %57 = vector.extract_strided_slice %42 {offsets = [0, 0, 2, 0], sizes = [2, 4, 1, 32], strides = [1, 1, 1, 1]} : vector<2x4x10x32xf32> to vector<2x4x1x32xf32>
    %58 = vector.extract_strided_slice %42 {offsets = [0, 0, 3, 0], sizes = [2, 4, 1, 32], strides = [1, 1, 1, 1]} : vector<2x4x10x32xf32> to vector<2x4x1x32xf32>
    %59 = vector.extract_strided_slice %46 {offsets = [0, 0, 0, 0], sizes = [2, 4, 1, 32], strides = [1, 1, 1, 1]} : vector<2x4x10x32xf32> to vector<2x4x1x32xf32>
    %60 = vector.extract_strided_slice %46 {offsets = [0, 0, 1, 0], sizes = [2, 4, 1, 32], strides = [1, 1, 1, 1]} : vector<2x4x10x32xf32> to vector<2x4x1x32xf32>
    %61 = vector.extract_strided_slice %46 {offsets = [0, 0, 2, 0], sizes = [2, 4, 1, 32], strides = [1, 1, 1, 1]} : vector<2x4x10x32xf32> to vector<2x4x1x32xf32>
    %62 = vector.extract_strided_slice %46 {offsets = [0, 0, 3, 0], sizes = [2, 4, 1, 32], strides = [1, 1, 1, 1]} : vector<2x4x10x32xf32> to vector<2x4x1x32xf32>
    %63 = vector.extract_strided_slice %50 {offsets = [0, 0, 0, 0], sizes = [2, 4, 1, 32], strides = [1, 1, 1, 1]} : vector<2x4x10x32xf32> to vector<2x4x1x32xf32>
    %64 = vector.extract_strided_slice %50 {offsets = [0, 0, 1, 0], sizes = [2, 4, 1, 32], strides = [1, 1, 1, 1]} : vector<2x4x10x32xf32> to vector<2x4x1x32xf32>
    %65 = vector.extract_strided_slice %50 {offsets = [0, 0, 2, 0], sizes = [2, 4, 1, 32], strides = [1, 1, 1, 1]} : vector<2x4x10x32xf32> to vector<2x4x1x32xf32>
    %66 = vector.extract_strided_slice %50 {offsets = [0, 0, 3, 0], sizes = [2, 4, 1, 32], strides = [1, 1, 1, 1]} : vector<2x4x10x32xf32> to vector<2x4x1x32xf32>
    %67 = vector.extract_strided_slice %54 {offsets = [0, 0, 0, 0], sizes = [2, 4, 1, 32], strides = [1, 1, 1, 1]} : vector<2x4x10x32xf32> to vector<2x4x1x32xf32>
    %68 = vector.extract_strided_slice %54 {offsets = [0, 0, 1, 0], sizes = [2, 4, 1, 32], strides = [1, 1, 1, 1]} : vector<2x4x10x32xf32> to vector<2x4x1x32xf32>
    %69 = vector.extract_strided_slice %54 {offsets = [0, 0, 2, 0], sizes = [2, 4, 1, 32], strides = [1, 1, 1, 1]} : vector<2x4x10x32xf32> to vector<2x4x1x32xf32>
    %70 = vector.extract_strided_slice %54 {offsets = [0, 0, 3, 0], sizes = [2, 4, 1, 32], strides = [1, 1, 1, 1]} : vector<2x4x10x32xf32> to vector<2x4x1x32xf32>
    %71 = tpu.concatenate %55, %56, %57, %58, %59, %60, %61, %62, %63, %64, %65, %66, %67, %68, %69, %70 in 3 : vector<2x4x1x32xf32>, vector<2x4x1x32xf32>, vector<2x4x1x32xf32>, vector<2x4x1x32xf32>, vector<2x4x1x32xf32>, vector<2x4x1x32xf32>, vector<2x4x1x32xf32>, vector<2x4x1x32xf32>, vector<2x4x1x32xf32>, vector<2x4x1x32xf32>, vector<2x4x1x32xf32>, vector<2x4x1x32xf32>, vector<2x4x1x32xf32>, vector<2x4x1x32xf32>, vector<2x4x1x32xf32>, vector<2x4x1x32xf32> -> vector<2x4x1x512xf32>
    %72 = vector.extract_strided_slice %42 {offsets = [0, 0, 2, 0], sizes = [2, 4, 1, 32], strides = [1, 1, 1, 1]} : vector<2x4x10x32xf32> to vector<2x4x1x32xf32>
    %73 = vector.extract_strided_slice %42 {offsets = [0, 0, 3, 0], sizes = [2, 4, 1, 32], strides = [1, 1, 1, 1]} : vector<2x4x10x32xf32> to vector<2x4x1x32xf32>
    %74 = vector.extract_strided_slice %42 {offsets = [0, 0, 4, 0], sizes = [2, 4, 1, 32], strides = [1, 1, 1, 1]} : vector<2x4x10x32xf32> to vector<2x4x1x32xf32>
    %75 = vector.extract_strided_slice %42 {offsets = [0, 0, 5, 0], sizes = [2, 4, 1, 32], strides = [1, 1, 1, 1]} : vector<2x4x10x32xf32> to vector<2x4x1x32xf32>
    %76 = vector.extract_strided_slice %46 {offsets = [0, 0, 2, 0], sizes = [2, 4, 1, 32], strides = [1, 1, 1, 1]} : vector<2x4x10x32xf32> to vector<2x4x1x32xf32>
    %77 = vector.extract_strided_slice %46 {offsets = [0, 0, 3, 0], sizes = [2, 4, 1, 32], strides = [1, 1, 1, 1]} : vector<2x4x10x32xf32> to vector<2x4x1x32xf32>
    %78 = vector.extract_strided_slice %46 {offsets = [0, 0, 4, 0], sizes = [2, 4, 1, 32], strides = [1, 1, 1, 1]} : vector<2x4x10x32xf32> to vector<2x4x1x32xf32>
    %79 = vector.extract_strided_slice %46 {offsets = [0, 0, 5, 0], sizes = [2, 4, 1, 32], strides = [1, 1, 1, 1]} : vector<2x4x10x32xf32> to vector<2x4x1x32xf32>
    %80 = vector.extract_strided_slice %50 {offsets = [0, 0, 2, 0], sizes = [2, 4, 1, 32], strides = [1, 1, 1, 1]} : vector<2x4x10x32xf32> to vector<2x4x1x32xf32>
    %81 = vector.extract_strided_slice %50 {offsets = [0, 0, 3, 0], sizes = [2, 4, 1, 32], strides = [1, 1, 1, 1]} : vector<2x4x10x32xf32> to vector<2x4x1x32xf32>
    %82 = vector.extract_strided_slice %50 {offsets = [0, 0, 4, 0], sizes = [2, 4, 1, 32], strides = [1, 1, 1, 1]} : vector<2x4x10x32xf32> to vector<2x4x1x32xf32>
    %83 = vector.extract_strided_slice %50 {offsets = [0, 0, 5, 0], sizes = [2, 4, 1, 32], strides = [1, 1, 1, 1]} : vector<2x4x10x32xf32> to vector<2x4x1x32xf32>
    %84 = vector.extract_strided_slice %54 {offsets = [0, 0, 2, 0], sizes = [2, 4, 1, 32], strides = [1, 1, 1, 1]} : vector<2x4x10x32xf32> to vector<2x4x1x32xf32>
    %85 = vector.extract_strided_slice %54 {offsets = [0, 0, 3, 0], sizes = [2, 4, 1, 32], strides = [1, 1, 1, 1]} : vector<2x4x10x32xf32> to vector<2x4x1x32xf32>
    %86 = vector.extract_strided_slice %54 {offsets = [0, 0, 4, 0], sizes = [2, 4, 1, 32], strides = [1, 1, 1, 1]} : vector<2x4x10x32xf32> to vector<2x4x1x32xf32>
    %87 = vector.extract_strided_slice %54 {offsets = [0, 0, 5, 0], sizes = [2, 4, 1, 32], strides = [1, 1, 1, 1]} : vector<2x4x10x32xf32> to vector<2x4x1x32xf32>
    %88 = tpu.concatenate %72, %73, %74, %75, %76, %77, %78, %79, %80, %81, %82, %83, %84, %85, %86, %87 in 3 : vector<2x4x1x32xf32>, vector<2x4x1x32xf32>, vector<2x4x1x32xf32>, vector<2x4x1x32xf32>, vector<2x4x1x32xf32>, vector<2x4x1x32xf32>, vector<2x4x1x32xf32>, vector<2x4x1x32xf32>, vector<2x4x1x32xf32>, vector<2x4x1x32xf32>, vector<2x4x1x32xf32>, vector<2x4x1x32xf32>, vector<2x4x1x32xf32>, vector<2x4x1x32xf32>, vector<2x4x1x32xf32>, vector<2x4x1x32xf32> -> vector<2x4x1x512xf32>
    %89 = vector.extract_strided_slice %42 {offsets = [0, 0, 4, 0], sizes = [2, 4, 1, 32], strides = [1, 1, 1, 1]} : vector<2x4x10x32xf32> to vector<2x4x1x32xf32>
    %90 = vector.extract_strided_slice %42 {offsets = [0, 0, 5, 0], sizes = [2, 4, 1, 32], strides = [1, 1, 1, 1]} : vector<2x4x10x32xf32> to vector<2x4x1x32xf32>
    %91 = vector.extract_strided_slice %42 {offsets = [0, 0, 6, 0], sizes = [2, 4, 1, 32], strides = [1, 1, 1, 1]} : vector<2x4x10x32xf32> to vector<2x4x1x32xf32>
    %92 = vector.extract_strided_slice %42 {offsets = [0, 0, 7, 0], sizes = [2, 4, 1, 32], strides = [1, 1, 1, 1]} : vector<2x4x10x32xf32> to vector<2x4x1x32xf32>
    %93 = vector.extract_strided_slice %46 {offsets = [0, 0, 4, 0], sizes = [2, 4, 1, 32], strides = [1, 1, 1, 1]} : vector<2x4x10x32xf32> to vector<2x4x1x32xf32>
    %94 = vector.extract_strided_slice %46 {offsets = [0, 0, 5, 0], sizes = [2, 4, 1, 32], strides = [1, 1, 1, 1]} : vector<2x4x10x32xf32> to vector<2x4x1x32xf32>
    %95 = vector.extract_strided_slice %46 {offsets = [0, 0, 6, 0], sizes = [2, 4, 1, 32], strides = [1, 1, 1, 1]} : vector<2x4x10x32xf32> to vector<2x4x1x32xf32>
    %96 = vector.extract_strided_slice %46 {offsets = [0, 0, 7, 0], sizes = [2, 4, 1, 32], strides = [1, 1, 1, 1]} : vector<2x4x10x32xf32> to vector<2x4x1x32xf32>
    %97 = vector.extract_strided_slice %50 {offsets = [0, 0, 4, 0], sizes = [2, 4, 1, 32], strides = [1, 1, 1, 1]} : vector<2x4x10x32xf32> to vector<2x4x1x32xf32>
    %98 = vector.extract_strided_slice %50 {offsets = [0, 0, 5, 0], sizes = [2, 4, 1, 32], strides = [1, 1, 1, 1]} : vector<2x4x10x32xf32> to vector<2x4x1x32xf32>
    %99 = vector.extract_strided_slice %50 {offsets = [0, 0, 6, 0], sizes = [2, 4, 1, 32], strides = [1, 1, 1, 1]} : vector<2x4x10x32xf32> to vector<2x4x1x32xf32>
    %100 = vector.extract_strided_slice %50 {offsets = [0, 0, 7, 0], sizes = [2, 4, 1, 32], strides = [1, 1, 1, 1]} : vector<2x4x10x32xf32> to vector<2x4x1x32xf32>
    %101 = vector.extract_strided_slice %54 {offsets = [0, 0, 4, 0], sizes = [2, 4, 1, 32], strides = [1, 1, 1, 1]} : vector<2x4x10x32xf32> to vector<2x4x1x32xf32>
    %102 = vector.extract_strided_slice %54 {offsets = [0, 0, 5, 0], sizes = [2, 4, 1, 32], strides = [1, 1, 1, 1]} : vector<2x4x10x32xf32> to vector<2x4x1x32xf32>
    %103 = vector.extract_strided_slice %54 {offsets = [0, 0, 6, 0], sizes = [2, 4, 1, 32], strides = [1, 1, 1, 1]} : vector<2x4x10x32xf32> to vector<2x4x1x32xf32>
    %104 = vector.extract_strided_slice %54 {offsets = [0, 0, 7, 0], sizes = [2, 4, 1, 32], strides = [1, 1, 1, 1]} : vector<2x4x10x32xf32> to vector<2x4x1x32xf32>
    %105 = tpu.concatenate %89, %90, %91, %92, %93, %94, %95, %96, %97, %98, %99, %100, %101, %102, %103, %104 in 3 : vector<2x4x1x32xf32>, vector<2x4x1x32xf32>, vector<2x4x1x32xf32>, vector<2x4x1x32xf32>, vector<2x4x1x32xf32>, vector<2x4x1x32xf32>, vector<2x4x1x32xf32>, vector<2x4x1x32xf32>, vector<2x4x1x32xf32>, vector<2x4x1x32xf32>, vector<2x4x1x32xf32>, vector<2x4x1x32xf32>, vector<2x4x1x32xf32>, vector<2x4x1x32xf32>, vector<2x4x1x32xf32>, vector<2x4x1x32xf32> -> vector<2x4x1x512xf32>
    %106 = vector.extract_strided_slice %42 {offsets = [0, 0, 6, 0], sizes = [2, 4, 1, 32], strides = [1, 1, 1, 1]} : vector<2x4x10x32xf32> to vector<2x4x1x32xf32>
    %107 = vector.extract_strided_slice %42 {offsets = [0, 0, 7, 0], sizes = [2, 4, 1, 32], strides = [1, 1, 1, 1]} : vector<2x4x10x32xf32> to vector<2x4x1x32xf32>
    %108 = vector.extract_strided_slice %42 {offsets = [0, 0, 8, 0], sizes = [2, 4, 1, 32], strides = [1, 1, 1, 1]} : vector<2x4x10x32xf32> to vector<2x4x1x32xf32>
    %109 = vector.extract_strided_slice %42 {offsets = [0, 0, 9, 0], sizes = [2, 4, 1, 32], strides = [1, 1, 1, 1]} : vector<2x4x10x32xf32> to vector<2x4x1x32xf32>
    %110 = vector.extract_strided_slice %46 {offsets = [0, 0, 6, 0], sizes = [2, 4, 1, 32], strides = [1, 1, 1, 1]} : vector<2x4x10x32xf32> to vector<2x4x1x32xf32>
    %111 = vector.extract_strided_slice %46 {offsets = [0, 0, 7, 0], sizes = [2, 4, 1, 32], strides = [1, 1, 1, 1]} : vector<2x4x10x32xf32> to vector<2x4x1x32xf32>
    %112 = vector.extract_strided_slice %46 {offsets = [0, 0, 8, 0], sizes = [2, 4, 1, 32], strides = [1, 1, 1, 1]} : vector<2x4x10x32xf32> to vector<2x4x1x32xf32>
    %113 = vector.extract_strided_slice %46 {offsets = [0, 0, 9, 0], sizes = [2, 4, 1, 32], strides = [1, 1, 1, 1]} : vector<2x4x10x32xf32> to vector<2x4x1x32xf32>
    %114 = vector.extract_strided_slice %50 {offsets = [0, 0, 6, 0], sizes = [2, 4, 1, 32], strides = [1, 1, 1, 1]} : vector<2x4x10x32xf32> to vector<2x4x1x32xf32>
    %115 = vector.extract_strided_slice %50 {offsets = [0, 0, 7, 0], sizes = [2, 4, 1, 32], strides = [1, 1, 1, 1]} : vector<2x4x10x32xf32> to vector<2x4x1x32xf32>
    %116 = vector.extract_strided_slice %50 {offsets = [0, 0, 8, 0], sizes = [2, 4, 1, 32], strides = [1, 1, 1, 1]} : vector<2x4x10x32xf32> to vector<2x4x1x32xf32>
    %117 = vector.extract_strided_slice %50 {offsets = [0, 0, 9, 0], sizes = [2, 4, 1, 32], strides = [1, 1, 1, 1]} : vector<2x4x10x32xf32> to vector<2x4x1x32xf32>
    %118 = vector.extract_strided_slice %54 {offsets = [0, 0, 6, 0], sizes = [2, 4, 1, 32], strides = [1, 1, 1, 1]} : vector<2x4x10x32xf32> to vector<2x4x1x32xf32>
    %119 = vector.extract_strided_slice %54 {offsets = [0, 0, 7, 0], sizes = [2, 4, 1, 32], strides = [1, 1, 1, 1]} : vector<2x4x10x32xf32> to vector<2x4x1x32xf32>
    %120 = vector.extract_strided_slice %54 {offsets = [0, 0, 8, 0], sizes = [2, 4, 1, 32], strides = [1, 1, 1, 1]} : vector<2x4x10x32xf32> to vector<2x4x1x32xf32>
    %121 = vector.extract_strided_slice %54 {offsets = [0, 0, 9, 0], sizes = [2, 4, 1, 32], strides = [1, 1, 1, 1]} : vector<2x4x10x32xf32> to vector<2x4x1x32xf32>
    %122 = tpu.concatenate %106, %107, %108, %109, %110, %111, %112, %113, %114, %115, %116, %117, %118, %119, %120, %121 in 3 : vector<2x4x1x32xf32>, vector<2x4x1x32xf32>, vector<2x4x1x32xf32>, vector<2x4x1x32xf32>, vector<2x4x1x32xf32>, vector<2x4x1x32xf32>, vector<2x4x1x32xf32>, vector<2x4x1x32xf32>, vector<2x4x1x32xf32>, vector<2x4x1x32xf32>, vector<2x4x1x32xf32>, vector<2x4x1x32xf32>, vector<2x4x1x32xf32>, vector<2x4x1x32xf32>, vector<2x4x1x32xf32>, vector<2x4x1x32xf32> -> vector<2x4x1x512xf32>
    %123 = tpu.concatenate %71, %88, %105, %122 in 2 : vector<2x4x1x512xf32>, vector<2x4x1x512xf32>, vector<2x4x1x512xf32>, vector<2x4x1x512xf32> -> vector<2x4x4x512xf32>
    %124 = vector.shape_cast %123 : vector<2x4x4x512xf32> to vector<32x512xf32>
    %125 = arith.truncf %124 : vector<32x512xf32> to vector<32x512xbf16>
    %c0_17 = arith.constant 0 : index
    %c0_18 = arith.constant 0 : index
    %126 = vector.load %arg2[%c0_17, %c0_18] : memref<512x64xbf16, #tpu.memory_space<vmem>>, vector<512x64xbf16>
    %cst_19 = arith.constant dense<0.000000e+00> : vector<32x64xf32>
    %127 = tpu.matmul %125, %126, %cst_19 {dimension_numbers = #tpu.dot_dimension_numbers<[1], [0], [0], [1], [0, 0, 1, 1], [], []>} : vector<32x512xbf16>, vector<512x64xbf16>, vector<32x64xf32> -> vector<32x64xf32>
    %cst_20 = arith.constant dense<0.000000e+00> : vector<64xf32>
    %128 = vector.multi_reduction <add>, %127, %cst_20 [0] : vector<32x64xf32> to vector<64xf32>
    %129 = vector.shape_cast %128 : vector<64xf32> to vector<1x64xf32>
    %130 = arith.mulf %127, %127 : vector<32x64xf32>
    %cst_21 = arith.constant dense<0.000000e+00> : vector<64xf32>
    %131 = vector.multi_reduction <add>, %130, %cst_21 [0] : vector<32x64xf32> to vector<64xf32>
    %132 = vector.shape_cast %131 : vector<64xf32> to vector<1x64xf32>
    %cst_22 = arith.constant 3.125000e-02 : f32
    %133 = vector.broadcast %cst_22 : f32 to vector<1x64xf32>
    %134 = arith.mulf %129, %133 : vector<1x64xf32>
    %cst_23 = arith.constant 3.125000e-02 : f32
    %135 = vector.broadcast %cst_23 : f32 to vector<1x64xf32>
    %136 = arith.mulf %132, %135 : vector<1x64xf32>
    %137 = arith.mulf %134, %134 : vector<1x64xf32>
    %138 = arith.subf %136, %137 : vector<1x64xf32>
    %139 = vector.broadcast %134 : vector<1x64xf32> to vector<32x64xf32>
    %140 = arith.subf %127, %139 : vector<32x64xf32>
    %cst_24 = arith.constant 9.99999974E-6 : f32
    %141 = vector.broadcast %cst_24 : f32 to vector<1x64xf32>
    %142 = arith.addf %138, %141 : vector<1x64xf32>
    %143 = math.rsqrt %142 : vector<1x64xf32>
    %144 = vector.broadcast %143 : vector<1x64xf32> to vector<32x64xf32>
    %145 = arith.mulf %140, %144 : vector<32x64xf32>
    %c0_25 = arith.constant 0 : index
    %c0_26 = arith.constant 0 : index
    %146 = vector.load %arg7[%c0_25, %c0_26] : memref<1x64xf32, #tpu.memory_space<vmem>>, vector<1x64xf32>
    %147 = vector.broadcast %146 : vector<1x64xf32> to vector<32x64xf32>
    %148 = arith.mulf %145, %147 : vector<32x64xf32>
    %c0_27 = arith.constant 0 : index
    %c0_28 = arith.constant 0 : index
    %149 = vector.load %arg8[%c0_27, %c0_28] : memref<1x64xf32, #tpu.memory_space<vmem>>, vector<1x64xf32>
    %150 = vector.broadcast %149 : vector<1x64xf32> to vector<32x64xf32>
    %151 = arith.addf %148, %150 : vector<32x64xf32>
    %cst_29 = arith.constant 0.000000e+00 : f32
    %152 = vector.broadcast %cst_29 : f32 to vector<32x64xf32>
    %153 = arith.cmpf oge, %151, %152 : vector<32x64xf32>
    %cst_30 = arith.constant 2.000000e-01 : f32
    %154 = vector.broadcast %cst_30 : f32 to vector<32x64xf32>
    %155 = arith.mulf %154, %151 : vector<32x64xf32>
    %156 = arith.select %153, %151, %155 : vector<32x64xi1>, vector<32x64xf32>
    %157 = vector.shape_cast %156 : vector<32x64xf32> to vector<2x4x4x64xf32>
    %cst_31 = arith.constant 0.000000e+00 : f32
    %158 = vector.broadcast %cst_31 : f32 to vector<2x4x1x64xf32>
    %159 = tpu.concatenate %158, %157, %158 in 2 : vector<2x4x1x64xf32>, vector<2x4x4x64xf32>, vector<2x4x1x64xf32> -> vector<2x4x6x64xf32>
    %cst_32 = arith.constant 0.000000e+00 : f32
    %160 = vector.broadcast %cst_32 : f32 to vector<2x1x6x64xf32>
    %cst_33 = arith.constant 0.000000e+00 : f32
    %161 = vector.broadcast %cst_33 : f32 to vector<2x2x6x64xf32>
    %162 = tpu.concatenate %160, %159, %161 in 1 : vector<2x1x6x64xf32>, vector<2x4x6x64xf32>, vector<2x2x6x64xf32> -> vector<2x7x6x64xf32>
    %163 = vector.extract_strided_slice %162 {offsets = [0, 0, 0, 0], sizes = [2, 4, 6, 64], strides = [1, 1, 1, 1]} : vector<2x7x6x64xf32> to vector<2x4x6x64xf32>
    %164 = vector.shape_cast %163 : vector<2x4x6x64xf32> to vector<2x2x2x6x64xf32>
    %165 = vector.extract_strided_slice %164 {offsets = [0, 0, 0, 0, 0], sizes = [2, 2, 1, 6, 64], strides = [1, 1, 1, 1, 1]} : vector<2x2x2x6x64xf32> to vector<2x2x1x6x64xf32>
    %166 = vector.shape_cast %165 : vector<2x2x1x6x64xf32> to vector<2x2x6x64xf32>
    %167 = vector.extract_strided_slice %162 {offsets = [0, 1, 0, 0], sizes = [2, 4, 6, 64], strides = [1, 1, 1, 1]} : vector<2x7x6x64xf32> to vector<2x4x6x64xf32>
    %168 = vector.shape_cast %167 : vector<2x4x6x64xf32> to vector<2x2x2x6x64xf32>
    %169 = vector.extract_strided_slice %168 {offsets = [0, 0, 0, 0, 0], sizes = [2, 2, 1, 6, 64], strides = [1, 1, 1, 1, 1]} : vector<2x2x2x6x64xf32> to vector<2x2x1x6x64xf32>
    %170 = vector.shape_cast %169 : vector<2x2x1x6x64xf32> to vector<2x2x6x64xf32>
    %171 = vector.extract_strided_slice %162 {offsets = [0, 2, 0, 0], sizes = [2, 4, 6, 64], strides = [1, 1, 1, 1]} : vector<2x7x6x64xf32> to vector<2x4x6x64xf32>
    %172 = vector.shape_cast %171 : vector<2x4x6x64xf32> to vector<2x2x2x6x64xf32>
    %173 = vector.extract_strided_slice %172 {offsets = [0, 0, 0, 0, 0], sizes = [2, 2, 1, 6, 64], strides = [1, 1, 1, 1, 1]} : vector<2x2x2x6x64xf32> to vector<2x2x1x6x64xf32>
    %174 = vector.shape_cast %173 : vector<2x2x1x6x64xf32> to vector<2x2x6x64xf32>
    %175 = vector.extract_strided_slice %162 {offsets = [0, 3, 0, 0], sizes = [2, 4, 6, 64], strides = [1, 1, 1, 1]} : vector<2x7x6x64xf32> to vector<2x4x6x64xf32>
    %176 = vector.shape_cast %175 : vector<2x4x6x64xf32> to vector<2x2x2x6x64xf32>
    %177 = vector.extract_strided_slice %176 {offsets = [0, 0, 0, 0, 0], sizes = [2, 2, 1, 6, 64], strides = [1, 1, 1, 1, 1]} : vector<2x2x2x6x64xf32> to vector<2x2x1x6x64xf32>
    %178 = vector.shape_cast %177 : vector<2x2x1x6x64xf32> to vector<2x2x6x64xf32>
    %179 = vector.extract_strided_slice %166 {offsets = [0, 0, 0, 0], sizes = [2, 2, 1, 64], strides = [1, 1, 1, 1]} : vector<2x2x6x64xf32> to vector<2x2x1x64xf32>
    %180 = vector.extract_strided_slice %166 {offsets = [0, 0, 1, 0], sizes = [2, 2, 1, 64], strides = [1, 1, 1, 1]} : vector<2x2x6x64xf32> to vector<2x2x1x64xf32>
    %181 = vector.extract_strided_slice %166 {offsets = [0, 0, 2, 0], sizes = [2, 2, 1, 64], strides = [1, 1, 1, 1]} : vector<2x2x6x64xf32> to vector<2x2x1x64xf32>
    %182 = vector.extract_strided_slice %166 {offsets = [0, 0, 3, 0], sizes = [2, 2, 1, 64], strides = [1, 1, 1, 1]} : vector<2x2x6x64xf32> to vector<2x2x1x64xf32>
    %183 = vector.extract_strided_slice %170 {offsets = [0, 0, 0, 0], sizes = [2, 2, 1, 64], strides = [1, 1, 1, 1]} : vector<2x2x6x64xf32> to vector<2x2x1x64xf32>
    %184 = vector.extract_strided_slice %170 {offsets = [0, 0, 1, 0], sizes = [2, 2, 1, 64], strides = [1, 1, 1, 1]} : vector<2x2x6x64xf32> to vector<2x2x1x64xf32>
    %185 = vector.extract_strided_slice %170 {offsets = [0, 0, 2, 0], sizes = [2, 2, 1, 64], strides = [1, 1, 1, 1]} : vector<2x2x6x64xf32> to vector<2x2x1x64xf32>
    %186 = vector.extract_strided_slice %170 {offsets = [0, 0, 3, 0], sizes = [2, 2, 1, 64], strides = [1, 1, 1, 1]} : vector<2x2x6x64xf32> to vector<2x2x1x64xf32>
    %187 = vector.extract_strided_slice %174 {offsets = [0, 0, 0, 0], sizes = [2, 2, 1, 64], strides = [1, 1, 1, 1]} : vector<2x2x6x64xf32> to vector<2x2x1x64xf32>
    %188 = vector.extract_strided_slice %174 {offsets = [0, 0, 1, 0], sizes = [2, 2, 1, 64], strides = [1, 1, 1, 1]} : vector<2x2x6x64xf32> to vector<2x2x1x64xf32>
    %189 = vector.extract_strided_slice %174 {offsets = [0, 0, 2, 0], sizes = [2, 2, 1, 64], strides = [1, 1, 1, 1]} : vector<2x2x6x64xf32> to vector<2x2x1x64xf32>
    %190 = vector.extract_strided_slice %174 {offsets = [0, 0, 3, 0], sizes = [2, 2, 1, 64], strides = [1, 1, 1, 1]} : vector<2x2x6x64xf32> to vector<2x2x1x64xf32>
    %191 = vector.extract_strided_slice %178 {offsets = [0, 0, 0, 0], sizes = [2, 2, 1, 64], strides = [1, 1, 1, 1]} : vector<2x2x6x64xf32> to vector<2x2x1x64xf32>
    %192 = vector.extract_strided_slice %178 {offsets = [0, 0, 1, 0], sizes = [2, 2, 1, 64], strides = [1, 1, 1, 1]} : vector<2x2x6x64xf32> to vector<2x2x1x64xf32>
    %193 = vector.extract_strided_slice %178 {offsets = [0, 0, 2, 0], sizes = [2, 2, 1, 64], strides = [1, 1, 1, 1]} : vector<2x2x6x64xf32> to vector<2x2x1x64xf32>
    %194 = vector.extract_strided_slice %178 {offsets = [0, 0, 3, 0], sizes = [2, 2, 1, 64], strides = [1, 1, 1, 1]} : vector<2x2x6x64xf32> to vector<2x2x1x64xf32>
    %195 = tpu.concatenate %179, %180, %181, %182, %183, %184, %185, %186, %187, %188, %189, %190, %191, %192, %193, %194 in 3 : vector<2x2x1x64xf32>, vector<2x2x1x64xf32>, vector<2x2x1x64xf32>, vector<2x2x1x64xf32>, vector<2x2x1x64xf32>, vector<2x2x1x64xf32>, vector<2x2x1x64xf32>, vector<2x2x1x64xf32>, vector<2x2x1x64xf32>, vector<2x2x1x64xf32>, vector<2x2x1x64xf32>, vector<2x2x1x64xf32>, vector<2x2x1x64xf32>, vector<2x2x1x64xf32>, vector<2x2x1x64xf32>, vector<2x2x1x64xf32> -> vector<2x2x1x1024xf32>
    %196 = vector.extract_strided_slice %166 {offsets = [0, 0, 2, 0], sizes = [2, 2, 1, 64], strides = [1, 1, 1, 1]} : vector<2x2x6x64xf32> to vector<2x2x1x64xf32>
    %197 = vector.extract_strided_slice %166 {offsets = [0, 0, 3, 0], sizes = [2, 2, 1, 64], strides = [1, 1, 1, 1]} : vector<2x2x6x64xf32> to vector<2x2x1x64xf32>
    %198 = vector.extract_strided_slice %166 {offsets = [0, 0, 4, 0], sizes = [2, 2, 1, 64], strides = [1, 1, 1, 1]} : vector<2x2x6x64xf32> to vector<2x2x1x64xf32>
    %199 = vector.extract_strided_slice %166 {offsets = [0, 0, 5, 0], sizes = [2, 2, 1, 64], strides = [1, 1, 1, 1]} : vector<2x2x6x64xf32> to vector<2x2x1x64xf32>
    %200 = vector.extract_strided_slice %170 {offsets = [0, 0, 2, 0], sizes = [2, 2, 1, 64], strides = [1, 1, 1, 1]} : vector<2x2x6x64xf32> to vector<2x2x1x64xf32>
    %201 = vector.extract_strided_slice %170 {offsets = [0, 0, 3, 0], sizes = [2, 2, 1, 64], strides = [1, 1, 1, 1]} : vector<2x2x6x64xf32> to vector<2x2x1x64xf32>
    %202 = vector.extract_strided_slice %170 {offsets = [0, 0, 4, 0], sizes = [2, 2, 1, 64], strides = [1, 1, 1, 1]} : vector<2x2x6x64xf32> to vector<2x2x1x64xf32>
    %203 = vector.extract_strided_slice %170 {offsets = [0, 0, 5, 0], sizes = [2, 2, 1, 64], strides = [1, 1, 1, 1]} : vector<2x2x6x64xf32> to vector<2x2x1x64xf32>
    %204 = vector.extract_strided_slice %174 {offsets = [0, 0, 2, 0], sizes = [2, 2, 1, 64], strides = [1, 1, 1, 1]} : vector<2x2x6x64xf32> to vector<2x2x1x64xf32>
    %205 = vector.extract_strided_slice %174 {offsets = [0, 0, 3, 0], sizes = [2, 2, 1, 64], strides = [1, 1, 1, 1]} : vector<2x2x6x64xf32> to vector<2x2x1x64xf32>
    %206 = vector.extract_strided_slice %174 {offsets = [0, 0, 4, 0], sizes = [2, 2, 1, 64], strides = [1, 1, 1, 1]} : vector<2x2x6x64xf32> to vector<2x2x1x64xf32>
    %207 = vector.extract_strided_slice %174 {offsets = [0, 0, 5, 0], sizes = [2, 2, 1, 64], strides = [1, 1, 1, 1]} : vector<2x2x6x64xf32> to vector<2x2x1x64xf32>
    %208 = vector.extract_strided_slice %178 {offsets = [0, 0, 2, 0], sizes = [2, 2, 1, 64], strides = [1, 1, 1, 1]} : vector<2x2x6x64xf32> to vector<2x2x1x64xf32>
    %209 = vector.extract_strided_slice %178 {offsets = [0, 0, 3, 0], sizes = [2, 2, 1, 64], strides = [1, 1, 1, 1]} : vector<2x2x6x64xf32> to vector<2x2x1x64xf32>
    %210 = vector.extract_strided_slice %178 {offsets = [0, 0, 4, 0], sizes = [2, 2, 1, 64], strides = [1, 1, 1, 1]} : vector<2x2x6x64xf32> to vector<2x2x1x64xf32>
    %211 = vector.extract_strided_slice %178 {offsets = [0, 0, 5, 0], sizes = [2, 2, 1, 64], strides = [1, 1, 1, 1]} : vector<2x2x6x64xf32> to vector<2x2x1x64xf32>
    %212 = tpu.concatenate %196, %197, %198, %199, %200, %201, %202, %203, %204, %205, %206, %207, %208, %209, %210, %211 in 3 : vector<2x2x1x64xf32>, vector<2x2x1x64xf32>, vector<2x2x1x64xf32>, vector<2x2x1x64xf32>, vector<2x2x1x64xf32>, vector<2x2x1x64xf32>, vector<2x2x1x64xf32>, vector<2x2x1x64xf32>, vector<2x2x1x64xf32>, vector<2x2x1x64xf32>, vector<2x2x1x64xf32>, vector<2x2x1x64xf32>, vector<2x2x1x64xf32>, vector<2x2x1x64xf32>, vector<2x2x1x64xf32>, vector<2x2x1x64xf32> -> vector<2x2x1x1024xf32>
    %213 = tpu.concatenate %195, %212 in 2 : vector<2x2x1x1024xf32>, vector<2x2x1x1024xf32> -> vector<2x2x2x1024xf32>
    %214 = vector.shape_cast %213 : vector<2x2x2x1024xf32> to vector<8x1024xf32>
    %215 = arith.truncf %214 : vector<8x1024xf32> to vector<8x1024xbf16>
    %c0_34 = arith.constant 0 : index
    %c0_35 = arith.constant 0 : index
    %216 = vector.load %arg3[%c0_34, %c0_35] : memref<1024x128xbf16, #tpu.memory_space<vmem>>, vector<1024x128xbf16>
    %cst_36 = arith.constant dense<0.000000e+00> : vector<8x128xf32>
    %217 = tpu.matmul %215, %216, %cst_36 {dimension_numbers = #tpu.dot_dimension_numbers<[1], [0], [0], [1], [0, 0, 1, 1], [], []>} : vector<8x1024xbf16>, vector<1024x128xbf16>, vector<8x128xf32> -> vector<8x128xf32>
    %cst_37 = arith.constant dense<0.000000e+00> : vector<128xf32>
    %218 = vector.multi_reduction <add>, %217, %cst_37 [0] : vector<8x128xf32> to vector<128xf32>
    %219 = vector.shape_cast %218 : vector<128xf32> to vector<1x128xf32>
    %220 = arith.mulf %217, %217 : vector<8x128xf32>
    %cst_38 = arith.constant dense<0.000000e+00> : vector<128xf32>
    %221 = vector.multi_reduction <add>, %220, %cst_38 [0] : vector<8x128xf32> to vector<128xf32>
    %222 = vector.shape_cast %221 : vector<128xf32> to vector<1x128xf32>
    %cst_39 = arith.constant 1.250000e-01 : f32
    %223 = vector.broadcast %cst_39 : f32 to vector<1x128xf32>
    %224 = arith.mulf %219, %223 : vector<1x128xf32>
    %cst_40 = arith.constant 1.250000e-01 : f32
    %225 = vector.broadcast %cst_40 : f32 to vector<1x128xf32>
    %226 = arith.mulf %222, %225 : vector<1x128xf32>
    %227 = arith.mulf %224, %224 : vector<1x128xf32>
    %228 = arith.subf %226, %227 : vector<1x128xf32>
    %229 = vector.broadcast %224 : vector<1x128xf32> to vector<8x128xf32>
    %230 = arith.subf %217, %229 : vector<8x128xf32>
    %cst_41 = arith.constant 9.99999974E-6 : f32
    %231 = vector.broadcast %cst_41 : f32 to vector<1x128xf32>
    %232 = arith.addf %228, %231 : vector<1x128xf32>
    %233 = math.rsqrt %232 : vector<1x128xf32>
    %234 = vector.broadcast %233 : vector<1x128xf32> to vector<8x128xf32>
    %235 = arith.mulf %230, %234 : vector<8x128xf32>
    %c0_42 = arith.constant 0 : index
    %c0_43 = arith.constant 0 : index
    %236 = vector.load %arg9[%c0_42, %c0_43] : memref<1x128xf32, #tpu.memory_space<vmem>>, vector<1x128xf32>
    %237 = vector.broadcast %236 : vector<1x128xf32> to vector<8x128xf32>
    %238 = arith.mulf %235, %237 : vector<8x128xf32>
    %c0_44 = arith.constant 0 : index
    %c0_45 = arith.constant 0 : index
    %239 = vector.load %arg10[%c0_44, %c0_45] : memref<1x128xf32, #tpu.memory_space<vmem>>, vector<1x128xf32>
    %240 = vector.broadcast %239 : vector<1x128xf32> to vector<8x128xf32>
    %241 = arith.addf %238, %240 : vector<8x128xf32>
    %cst_46 = arith.constant 0.000000e+00 : f32
    %242 = vector.broadcast %cst_46 : f32 to vector<8x128xf32>
    %243 = arith.cmpf oge, %241, %242 : vector<8x128xf32>
    %cst_47 = arith.constant 2.000000e-01 : f32
    %244 = vector.broadcast %cst_47 : f32 to vector<8x128xf32>
    %245 = arith.mulf %244, %241 : vector<8x128xf32>
    %246 = arith.select %243, %241, %245 : vector<8x128xi1>, vector<8x128xf32>
    %247 = vector.shape_cast %246 : vector<8x128xf32> to vector<2x2x2x128xf32>
    %cst_48 = arith.constant 0.000000e+00 : f32
    %248 = vector.broadcast %cst_48 : f32 to vector<2x2x1x128xf32>
    %249 = tpu.concatenate %248, %247, %248 in 2 : vector<2x2x1x128xf32>, vector<2x2x2x128xf32>, vector<2x2x1x128xf32> -> vector<2x2x4x128xf32>
    %cst_49 = arith.constant 0.000000e+00 : f32
    %250 = vector.broadcast %cst_49 : f32 to vector<2x1x4x128xf32>
    %cst_50 = arith.constant 0.000000e+00 : f32
    %251 = vector.broadcast %cst_50 : f32 to vector<2x2x4x128xf32>
    %252 = tpu.concatenate %250, %249, %251 in 1 : vector<2x1x4x128xf32>, vector<2x2x4x128xf32>, vector<2x2x4x128xf32> -> vector<2x5x4x128xf32>
    %253 = vector.extract_strided_slice %252 {offsets = [0, 0, 0, 0], sizes = [2, 2, 4, 128], strides = [1, 1, 1, 1]} : vector<2x5x4x128xf32> to vector<2x2x4x128xf32>
    %254 = vector.shape_cast %253 : vector<2x2x4x128xf32> to vector<2x1x2x4x128xf32>
    %255 = vector.extract_strided_slice %254 {offsets = [0, 0, 0, 0, 0], sizes = [2, 1, 1, 4, 128], strides = [1, 1, 1, 1, 1]} : vector<2x1x2x4x128xf32> to vector<2x1x1x4x128xf32>
    %256 = vector.shape_cast %255 : vector<2x1x1x4x128xf32> to vector<2x1x4x128xf32>
    %257 = vector.extract_strided_slice %252 {offsets = [0, 1, 0, 0], sizes = [2, 2, 4, 128], strides = [1, 1, 1, 1]} : vector<2x5x4x128xf32> to vector<2x2x4x128xf32>
    %258 = vector.shape_cast %257 : vector<2x2x4x128xf32> to vector<2x1x2x4x128xf32>
    %259 = vector.extract_strided_slice %258 {offsets = [0, 0, 0, 0, 0], sizes = [2, 1, 1, 4, 128], strides = [1, 1, 1, 1, 1]} : vector<2x1x2x4x128xf32> to vector<2x1x1x4x128xf32>
    %260 = vector.shape_cast %259 : vector<2x1x1x4x128xf32> to vector<2x1x4x128xf32>
    %261 = vector.extract_strided_slice %252 {offsets = [0, 2, 0, 0], sizes = [2, 2, 4, 128], strides = [1, 1, 1, 1]} : vector<2x5x4x128xf32> to vector<2x2x4x128xf32>
    %262 = vector.shape_cast %261 : vector<2x2x4x128xf32> to vector<2x1x2x4x128xf32>
    %263 = vector.extract_strided_slice %262 {offsets = [0, 0, 0, 0, 0], sizes = [2, 1, 1, 4, 128], strides = [1, 1, 1, 1, 1]} : vector<2x1x2x4x128xf32> to vector<2x1x1x4x128xf32>
    %264 = vector.shape_cast %263 : vector<2x1x1x4x128xf32> to vector<2x1x4x128xf32>
    %265 = vector.extract_strided_slice %252 {offsets = [0, 3, 0, 0], sizes = [2, 2, 4, 128], strides = [1, 1, 1, 1]} : vector<2x5x4x128xf32> to vector<2x2x4x128xf32>
    %266 = vector.shape_cast %265 : vector<2x2x4x128xf32> to vector<2x1x2x4x128xf32>
    %267 = vector.extract_strided_slice %266 {offsets = [0, 0, 0, 0, 0], sizes = [2, 1, 1, 4, 128], strides = [1, 1, 1, 1, 1]} : vector<2x1x2x4x128xf32> to vector<2x1x1x4x128xf32>
    %268 = vector.shape_cast %267 : vector<2x1x1x4x128xf32> to vector<2x1x4x128xf32>
    %269 = vector.extract_strided_slice %256 {offsets = [0, 0, 0, 0], sizes = [2, 1, 1, 128], strides = [1, 1, 1, 1]} : vector<2x1x4x128xf32> to vector<2x1x1x128xf32>
    %270 = vector.extract_strided_slice %256 {offsets = [0, 0, 1, 0], sizes = [2, 1, 1, 128], strides = [1, 1, 1, 1]} : vector<2x1x4x128xf32> to vector<2x1x1x128xf32>
    %271 = vector.extract_strided_slice %256 {offsets = [0, 0, 2, 0], sizes = [2, 1, 1, 128], strides = [1, 1, 1, 1]} : vector<2x1x4x128xf32> to vector<2x1x1x128xf32>
    %272 = vector.extract_strided_slice %256 {offsets = [0, 0, 3, 0], sizes = [2, 1, 1, 128], strides = [1, 1, 1, 1]} : vector<2x1x4x128xf32> to vector<2x1x1x128xf32>
    %273 = vector.extract_strided_slice %260 {offsets = [0, 0, 0, 0], sizes = [2, 1, 1, 128], strides = [1, 1, 1, 1]} : vector<2x1x4x128xf32> to vector<2x1x1x128xf32>
    %274 = vector.extract_strided_slice %260 {offsets = [0, 0, 1, 0], sizes = [2, 1, 1, 128], strides = [1, 1, 1, 1]} : vector<2x1x4x128xf32> to vector<2x1x1x128xf32>
    %275 = vector.extract_strided_slice %260 {offsets = [0, 0, 2, 0], sizes = [2, 1, 1, 128], strides = [1, 1, 1, 1]} : vector<2x1x4x128xf32> to vector<2x1x1x128xf32>
    %276 = vector.extract_strided_slice %260 {offsets = [0, 0, 3, 0], sizes = [2, 1, 1, 128], strides = [1, 1, 1, 1]} : vector<2x1x4x128xf32> to vector<2x1x1x128xf32>
    %277 = vector.extract_strided_slice %264 {offsets = [0, 0, 0, 0], sizes = [2, 1, 1, 128], strides = [1, 1, 1, 1]} : vector<2x1x4x128xf32> to vector<2x1x1x128xf32>
    %278 = vector.extract_strided_slice %264 {offsets = [0, 0, 1, 0], sizes = [2, 1, 1, 128], strides = [1, 1, 1, 1]} : vector<2x1x4x128xf32> to vector<2x1x1x128xf32>
    %279 = vector.extract_strided_slice %264 {offsets = [0, 0, 2, 0], sizes = [2, 1, 1, 128], strides = [1, 1, 1, 1]} : vector<2x1x4x128xf32> to vector<2x1x1x128xf32>
    %280 = vector.extract_strided_slice %264 {offsets = [0, 0, 3, 0], sizes = [2, 1, 1, 128], strides = [1, 1, 1, 1]} : vector<2x1x4x128xf32> to vector<2x1x1x128xf32>
    %281 = vector.extract_strided_slice %268 {offsets = [0, 0, 0, 0], sizes = [2, 1, 1, 128], strides = [1, 1, 1, 1]} : vector<2x1x4x128xf32> to vector<2x1x1x128xf32>
    %282 = vector.extract_strided_slice %268 {offsets = [0, 0, 1, 0], sizes = [2, 1, 1, 128], strides = [1, 1, 1, 1]} : vector<2x1x4x128xf32> to vector<2x1x1x128xf32>
    %283 = vector.extract_strided_slice %268 {offsets = [0, 0, 2, 0], sizes = [2, 1, 1, 128], strides = [1, 1, 1, 1]} : vector<2x1x4x128xf32> to vector<2x1x1x128xf32>
    %284 = vector.extract_strided_slice %268 {offsets = [0, 0, 3, 0], sizes = [2, 1, 1, 128], strides = [1, 1, 1, 1]} : vector<2x1x4x128xf32> to vector<2x1x1x128xf32>
    %285 = tpu.concatenate %269, %270, %271, %272, %273, %274, %275, %276, %277, %278, %279, %280, %281, %282, %283, %284 in 3 : vector<2x1x1x128xf32>, vector<2x1x1x128xf32>, vector<2x1x1x128xf32>, vector<2x1x1x128xf32>, vector<2x1x1x128xf32>, vector<2x1x1x128xf32>, vector<2x1x1x128xf32>, vector<2x1x1x128xf32>, vector<2x1x1x128xf32>, vector<2x1x1x128xf32>, vector<2x1x1x128xf32>, vector<2x1x1x128xf32>, vector<2x1x1x128xf32>, vector<2x1x1x128xf32>, vector<2x1x1x128xf32>, vector<2x1x1x128xf32> -> vector<2x1x1x2048xf32>
    %286 = vector.shape_cast %285 : vector<2x1x1x2048xf32> to vector<2x2048xf32>
    %287 = arith.truncf %286 : vector<2x2048xf32> to vector<2x2048xbf16>
    %c0_51 = arith.constant 0 : index
    %c0_52 = arith.constant 0 : index
    %288 = vector.load %arg4[%c0_51, %c0_52] : memref<2048x8xbf16, #tpu.memory_space<vmem>>, vector<2048x8xbf16>
    %cst_53 = arith.constant dense<0.000000e+00> : vector<2x8xf32>
    %289 = tpu.matmul %287, %288, %cst_53 {dimension_numbers = #tpu.dot_dimension_numbers<[1], [0], [0], [1], [0, 0, 1, 1], [], []>} : vector<2x2048xbf16>, vector<2048x8xbf16>, vector<2x8xf32> -> vector<2x8xf32>
    %cst_54 = arith.constant 0.000000e+00 : f32
    %290 = vector.broadcast %cst_54 : f32 to vector<2x8xf32>
    %291 = arith.subf %290, %289 : vector<2x8xf32>
    %292 = math.exp %291 : vector<2x8xf32>
    %cst_55 = arith.constant 1.000000e+00 : f32
    %293 = vector.broadcast %cst_55 : f32 to vector<2x8xf32>
    %294 = arith.addf %293, %292 : vector<2x8xf32>
    %cst_56 = arith.constant 1.000000e+00 : f32
    %295 = vector.broadcast %cst_56 : f32 to vector<2x8xf32>
    %296 = arith.divf %295, %294 : vector<2x8xf32>
    %c0_57 = arith.constant 0 : index
    %c0_58 = arith.constant 0 : index
    %297 = vector.load %arg11[%c0_57, %c0_58] : memref<2x8xf32, #tpu.memory_space<vmem>>, vector<2x8xf32>
    tpu.vector_store %arg11[%c0_57, %c0_58], %296 {strides = array<i32>} : memref<2x8xf32, #tpu.memory_space<vmem>>, vector<2x8xf32>,
    return
  }
}

</mosaic_0001>

<bundles_post_ra>
// kernel: discriminator_forward.1
= control target key start
LH: loop header
LB: loop body
LE: loop exit
PB: predicated region body
PF: predicated region fallthrough
CT: control target
= control target key end

     0   :  { %vm71_vm0 = vcmask 130048   ;;  %v5169_v25 = vmov 0.0   ;;  %s5170_s30 = smov 32   ;;  %s5171_s12 = smov 64   ;;  %vm193_vm1 = vcmask 261120   ;;  %vm464_vm2 = vcmask 1040384   ;;  %s7095_s1 = inlined_call_operand.vmem [shape: bf16[16,32], index: 1, kind: input, shape index: {}]   ;;  %s7096_s0 = inlined_call_operand.vmem [shape: f32[128,16], index: 0, kind: input, shape index: {}]   ;;  %s7097_s5 = inlined_call_operand.vmem [shape: f32[1,32], index: 5, kind: input, shape index: {}]   ;;  %s7098_s6 = inlined_call_operand.vmem [shape: f32[1,32], index: 6, kind: input, shape index: {}]   ;;  %s7099_s2 = inlined_call_operand.vmem [shape: bf16[512,64], index: 2, kind: input, shape index: {}]   ;;  %s7100_s7 = inlined_call_operand.vmem [shape: f32[1,64], index: 7, kind: input, shape index: {}]   ;;  %s7101_s8 = inlined_call_operand.vmem [shape: f32[1,64], index: 8, kind: input, shape index: {}]   ;;  %s7102_s3 = inlined_call_operand.vmem [shape: bf16[1024,128], index: 3, kind: input, shape index: {}]   ;;  %s7103_s4 = inlined_call_operand.vmem [shape: bf16[2048,8], index: 4, kind: input, shape index: {}]   ;;  %s7104_s9 = inlined_call_operand.vmem [shape: f32[1,128], index: 9, kind: input, shape index: {}]   ;;  %s7105_s10 = inlined_call_operand.vmem [shape: f32[1,128], index: 10, kind: input, shape index: {}]   ;;  %s7106_s11 = inlined_call_operand.vmem [shape: f32[2,8], index: 11, kind: output, shape index: {}]  }
   0x1   :  { %v4934_v0 = vld [vmem:[%s7095_s1] sm:$0xff]   ;;  %v40_v2 = vld [vmem:[%s7096_s0 + $0x8] sm:$0xff]  ;;  %v41_v3 = vld [vmem:[%s7096_s0 + $0x10] sm:$0xff]  ;;  %v5294_v26 = vrot.slane %v5169_v25, 1  ;;  %v5298_v27 = vrot.slane %v5169_v25, 2  ;;  %v5300_v28 = vrot.slane %v5169_v25, 3 }
   0x2   :  { %v39_v1 = vld [vmem:[%s7096_s0] sm:$0xff]  ;;  %4905 = vmatprep.subr.bf16.mxu0 %v4934_v0  ;;  %v42_v5 = vld [vmem:[%s7096_s0 + $0x18] sm:$0xff]  ;;  %v44_v7 = vld [vmem:[%s7096_s0 + $0x28] sm:$0xff]  ;;  %s5172_s13 = smov 96  }
   0x3   :  { %v55_v4 = vpack.c.bf16 %v40_v2, %v39_v1  ;;  %v43_v6 = vld [vmem:[%s7096_s0 + $0x20] sm:$0xff]  ;;  %4906 = vmatpush3.bf16.msra.mxu0 %v4934_v0  ;;  %v56_v8 = vpack.c.bf16 %v42_v5, %v41_v3  ;;  %v45_v10 = vld [vmem:[%s7096_s0 + $0x30] sm:$0xff]  ;;  %v46_v11 = vld [vmem:[%s7096_s0 + $0x38] sm:$0xff]  ;;  %511 = vrot.lane.b32.xlu0 %v5294_v26, %s5170_s30 }
   0x4   :  { %v57_v9 = vpack.c.bf16 %v44_v7, %v43_v6  ;;  %v47_v12 = vld [vmem:[%s7096_s0 + $0x40] sm:$0xff]  ;;  %v48_v13 = vld [vmem:[%s7096_s0 + $0x48] sm:$0xff]  ;;  %v58_v14 = vpack.c.bf16 %v46_v11, %v45_v10  ;;  %v49_v16 = vld [vmem:[%s7096_s0 + $0x50] sm:$0xff]  ;;  %567 = vrot.lane.b32.xlu1 %v5300_v28, %s5172_s13 }
   0x5   :  { %4907 = vmatprep.mubr.msk.bf16.mxu0 %vm71_vm0, %v55_v4  ;;  %v59_v15 = vpack.c.bf16 %v48_v13, %v47_v12  ;;  %v50_v17 = vld [vmem:[%s7096_s0 + $0x58] sm:$0xff]  ;;  %v51_v18 = vld [vmem:[%s7096_s0 + $0x60] sm:$0xff]  ;;  %v52_v19 = vld [vmem:[%s7096_s0 + $0x68] sm:$0xff] }
   0x6   :  { %4908 = vmatmul.mubr.msk.bf16.vlgmr.msra.gmra.mrb[0].mxu0 %vm71_vm0, %v56_v8  ;;  %v60_v20 = vpack.c.bf16 %v50_v17, %v49_v16  ;;  %v61_v21 = vpack.c.bf16 %v52_v19, %v51_v18  ;;  %v53_v22 = vld [vmem:[%s7096_s0 + $0x70] sm:$0xff]  ;;  %v54_v23 = vld [vmem:[%s7096_s0 + $0x78] sm:$0xff] }
   0x7   :  { %4911 = vmatprep.mubr.msk.bf16.mxu0 %vm71_vm0, %v57_v9  ;;  %v62_v24 = vpack.c.bf16 %v54_v23, %v53_v22  ;;  %539 = vrot.lane.b32.xlu0 %v5298_v27, %s5171_s12 }
   0xe   :  { %4912 = vmatmul.mubr.msk.bf16.gmra.mrb[4].mxu0 %vm71_vm0, %v58_v14 }
   0xf   :  { %4915 = vmatprep.mubr.msk.bf16.mxu0 %vm71_vm0, %v59_v15 }
  0x16   :  { %4916 = vmatmul.mubr.msk.bf16.gmra.mrb[8].mxu0 %vm71_vm0, %v60_v20 }
  0x17   :  { %4919 = vmatprep.mubr.msk.bf16.mxu0 %vm71_vm0, %v61_v21 }
  0x1e   :  { %4920 = vmatmul.mubr.msk.bf16.gmra.mrb[12].mxu0 %vm71_vm0, %v62_v24 }
  0xd9   :  { %v5306_v29 = vpop.f32.mrb[0].mxu0 }
  0xda   :  { %v5308_v30 = vpop.f32.mrb[1].mxu0  ;;  %v233_v34 = vmul.f32 %v5306_v29, %v5306_v29  ;;  %v197_v39 = vsel %vm193_vm1, %v5306_v29, 0.0 }
  0xdb   :  { %v231_v31 = vmul.f32 %v5308_v30, %v5308_v30  ;;  %v5312_v32 = vpop.f32.mrb[2].mxu0  ;;  %v194_v35 = vsel %vm193_vm1, %v5308_v30, 0.0 }
  0xdc   :  { %v5314_v33 = vpop.f32.mrb[3].mxu0  ;;  %v234_v41 = vmul.f32 %v5312_v32, %v5312_v32  ;;  %v250_v45 = vsel %vm193_vm1, %v233_v34, 0.0  ;;  %v199_v46 = vsel %vm193_vm1, %v5312_v32, 0.0 }
  0xdd   :  { %v195_v36 = vsel %vm193_vm1, %v5314_v33, 0.0  ;;  %v232_v37 = vmul.f32 %v5314_v33, %v5314_v33  ;;  %v247_v40 = vsel %vm193_vm1, %v231_v31, 0.0 }
  0xde   :  { %v196_v38 = vadd.f32 %v195_v36, %v194_v35  ;;  %v252_v51 = vsel %vm193_vm1, %v234_v41, 0.0 }
  0xdf   :  { %v248_v42 = vsel %vm193_vm1, %v232_v37, 0.0 }
  0xe0   :  { %v198_v43 = vadd.f32 %v197_v39, %v196_v38  ;;  %v249_v44 = vadd.f32 %v248_v42, %v247_v40 }
  0xe1   :  { %v5333_v47 = vpop.f32.mrb[4].mxu0 }
  0xe2   :  { %v251_v48 = vadd.f32 %v250_v45, %v249_v44  ;;  %v5335_v49 = vpop.f32.mrb[5].mxu0  ;;  %v200_v50 = vadd.f32 %v199_v46, %v198_v43  ;;  %v237_v58 = vmul.f32 %v5333_v47, %v5333_v47  ;;  %v205_v0 = vsel %vm193_vm1, %v5333_v47, 0.0 }
  0xe3   :  { %v201_v52 = vsel %vm193_vm1, %v5335_v49, 0.0  ;;  %v235_v53 = vmul.f32 %v5335_v49, %v5335_v49  ;;  %v5342_v54 = vpop.f32.mrb[6].mxu0 }
  0xe4   :  { %v202_v55 = vadd.f32 %v201_v52, %v200_v50  ;;  %v253_v56 = vadd.f32 %v252_v51, %v251_v48  ;;  %v5344_v57 = vpop.f32.mrb[7].mxu0  ;;  %v238_v1 = vmul.f32 %v5342_v54, %v5342_v54  ;;  %v258_v5 = vsel %vm193_vm1, %v237_v58, 0.0 }
  0xe5   :  { %v254_v59 = vsel %vm193_vm1, %v235_v53, 0.0  ;;  %v203_v60 = vsel %vm193_vm1, %v5344_v57, 0.0  ;;  %v236_v61 = vmul.f32 %v5344_v57, %v5344_v57  ;;  %v207_v6 = vsel %vm193_vm1, %v5342_v54, 0.0 }
  0xe6   :  { %v255_v62 = vadd.f32 %v254_v59, %v253_v56  ;;  %v204_v63 = vadd.f32 %v203_v60, %v202_v55  ;;  %v260_v11 = vsel %vm193_vm1, %v238_v1, 0.0 }
  0xe7   :  { %v256_v2 = vsel %vm193_vm1, %v236_v61, 0.0 }
  0xe8   :  { %v206_v3 = vadd.f32 %v205_v0, %v204_v63  ;;  %v257_v4 = vadd.f32 %v256_v2, %v255_v62 }
  0xe9   :  { %v5361_v7 = vpop.f32.mrb[8].mxu0 }
  0xea   :  { %v259_v8 = vadd.f32 %v258_v5, %v257_v4  ;;  %v5363_v9 = vpop.f32.mrb[9].mxu0  ;;  %v208_v10 = vadd.f32 %v207_v6, %v206_v3  ;;  %v241_v18 = vmul.f32 %v5361_v7, %v5361_v7  ;;  %v213_v24 = vsel %vm193_vm1, %v5361_v7, 0.0 }
  0xeb   :  { %v209_v12 = vsel %vm193_vm1, %v5363_v9, 0.0  ;;  %v239_v13 = vmul.f32 %v5363_v9, %v5363_v9  ;;  %v5370_v14 = vpop.f32.mrb[10].mxu0 }
  0xec   :  { %v210_v15 = vadd.f32 %v209_v12, %v208_v10  ;;  %v261_v16 = vadd.f32 %v260_v11, %v259_v8  ;;  %v5372_v17 = vpop.f32.mrb[11].mxu0  ;;  %v242_v25 = vmul.f32 %v5370_v14, %v5370_v14  ;;  %v266_v36 = vsel %vm193_vm1, %v241_v18, 0.0 }
  0xed   :  { %v262_v19 = vsel %vm193_vm1, %v239_v13, 0.0  ;;  %v211_v20 = vsel %vm193_vm1, %v5372_v17, 0.0  ;;  %v240_v21 = vmul.f32 %v5372_v17, %v5372_v17  ;;  %v215_v37 = vsel %vm193_vm1, %v5370_v14, 0.0 }
  0xee   :  { %v263_v22 = vadd.f32 %v262_v19, %v261_v16  ;;  %v212_v23 = vadd.f32 %v211_v20, %v210_v15  ;;  %v268_v42 = vsel %vm193_vm1, %v242_v25, 0.0 }
  0xef   :  { %v264_v31 = vsel %vm193_vm1, %v240_v21, 0.0 }
  0xf0   :  { %v214_v34 = vadd.f32 %v213_v24, %v212_v23  ;;  %v265_v35 = vadd.f32 %v264_v31, %v263_v22 }
  0xf1   :  { %v5389_v38 = vpop.f32.mrb[12].mxu0 }
  0xf2   :  { %v267_v39 = vadd.f32 %v266_v36, %v265_v35  ;;  %v5391_v40 = vpop.f32.mrb[13].mxu0  ;;  %v216_v41 = vadd.f32 %v215_v37, %v214_v34  ;;  %v245_v51 = vmul.f32 %v5389_v38, %v5389_v38  ;;  %v221_v59 = vsel %vm193_vm1, %v5389_v38, 0.0 }
  0xf3   :  { %v217_v43 = vsel %vm193_vm1, %v5391_v40, 0.0  ;;  %v243_v44 = vmul.f32 %v5391_v40, %v5391_v40  ;;  %v5398_v45 = vpop.f32.mrb[14].mxu0 }
  0xf4   :  { %v218_v46 = vadd.f32 %v217_v43, %v216_v41  ;;  %v269_v48 = vadd.f32 %v268_v42, %v267_v39  ;;  %v181_v50 = vpop.f32.mrb[15].mxu0  ;;  %v246_v60 = vmul.f32 %v5398_v45, %v5398_v45  ;;  %v274_v0 = vsel %vm193_vm1, %v245_v51, 0.0 }
  0xf5   :  { %v270_v52 = vsel %vm193_vm1, %v243_v44, 0.0  ;;  %v219_v53 = vsel %vm193_vm1, %v181_v50, 0.0  ;;  %v244_v55 = vmul.f32 %v181_v50, %v181_v50  ;;  %v223_v1 = vsel %vm193_vm1, %v5398_v45, 0.0 }
  0xf6   :  { %v271_v56 = vadd.f32 %v270_v52, %v269_v48  ;;  %v220_v58 = vadd.f32 %v219_v53, %v218_v46  ;;  %v276_v4 = vsel %vm193_vm1, %v246_v60, 0.0  ;;  %v5453_v48 = vld [vmem:[%s7097_s5] ss:$0 sm:$0xff] }
  0xf7   :  { %v272_v61 = vsel %vm193_vm1, %v244_v55, 0.0  ;;  %v5462_v55 = vld [vmem:[%s7098_s6] ss:$0 sm:$0xff] }
  0xf8   :  { %v222_v62 = vadd.f32 %v221_v59, %v220_v58  ;;  %v273_v63 = vadd.f32 %v272_v61, %v271_v56 }
  0xfa   :  { %v224_v2 = vadd.f32 %v223_v1, %v222_v62  ;;  %v275_v3 = vadd.f32 %v274_v0, %v273_v63 }
  0xfc   :  { %v225_v5 = vrot.slane %v224_v2, 4  ;;  %v277_v6 = vadd.f32 %v276_v4, %v275_v3 }
  0xfe   :  { %v226_v8 = vadd.f32 %v225_v5, %v224_v2  ;;  %v278_v10 = vrot.slane %v277_v6, 4 }
 0x100   :  { %v227_v11 = vrot.slane %v226_v8, 2  ;;  %v279_v12 = vadd.f32 %v278_v10, %v277_v6 }
 0x102   :  { %v228_v13 = vadd.f32 %v227_v11, %v226_v8  ;;  %v280_v15 = vrot.slane %v279_v12, 2 }
 0x104   :  { %v229_v16 = vrot.slane %v228_v13, 1  ;;  %v281_v18 = vadd.f32 %v280_v15, %v279_v12 }
 0x106   :  { %v230_v19 = vadd.f32 %v229_v16, %v228_v13  ;;  %v282_v20 = vrot.slane %v281_v18, 1 }
 0x108   :  { %v283_v21 = vadd.f32 %v282_v20, %v281_v18  ;;  %v5413_v22 = vmul.f32 0.0078125, %v230_v19 }
 0x10a   :  { %v285_v23 = vmul.f32 0.0078125, %v283_v21  ;;  %v286_v24 = vmul.f32 %v5413_v22, %v5413_v22  ;;  %v301_v25 = vsub.f32 %v181_v50, %v5413_v22  ;;  %v290_v31 = vsub.f32 %v5306_v29, %v5413_v22 }
 0x10b   :  { %v288_v34 = vsub.f32 %v5308_v30, %v5413_v22  ;;  %v292_v35 = vsub.f32 %v5335_v49, %v5413_v22  ;;  %v294_v36 = vsub.f32 %v5333_v47, %v5413_v22  ;;  %v289_v37 = vsub.f32 %v5314_v33, %v5413_v22 }
 0x10c   :  { %v287_v39 = vsub.f32 %v285_v23, %v286_v24  ;;  %v291_v41 = vsub.f32 %v5312_v32, %v5413_v22  ;;  %v293_v42 = vsub.f32 %v5344_v57, %v5413_v22  ;;  %v295_v29 = vsub.f32 %v5342_v54, %v5413_v22 }
 0x10d   :  { %v296_v30 = vsub.f32 %v5363_v9, %v5413_v22  ;;  %v298_v49 = vsub.f32 %v5361_v7, %v5413_v22  ;;  %v300_v47 = vsub.f32 %v5391_v40, %v5413_v22  ;;  %v302_v33 = vsub.f32 %v5389_v38, %v5413_v22 }
 0x10e   :  { %v304_v43 = vadd.f32 1e-05, %v287_v39  ;;  %v297_v32 = vsub.f32 %v5372_v17, %v5413_v22  ;;  %v299_v57 = vsub.f32 %v5370_v14, %v5413_v22  ;;  %v303_v44 = vsub.f32 %v5398_v45, %v5413_v22 }
 0x110   :  { %5159 = vrsqrt.f32 %v304_v43 }
 0x11a   :  { %v5448_v46 = vpop.eup %5159 }
 0x11b   :  { %v319_v50 = vmul.f32 %v5448_v46, %v301_v25  ;;  %v308_v51 = vmul.f32 %v5448_v46, %v290_v31  ;;  %v306_v52 = vmul.f32 %v5448_v46, %v288_v34  ;;  %v310_v53 = vmul.f32 %v5448_v46, %v292_v35 }
 0x11c   :  { %v312_v56 = vmul.f32 %v5448_v46, %v294_v36  ;;  %v307_v58 = vmul.f32 %v5448_v46, %v289_v37  ;;  %v309_v59 = vmul.f32 %v5448_v46, %v291_v41  ;;  %v311_v60 = vmul.f32 %v5448_v46, %v293_v42 }
 0x11d   :  { %v342_v61 = vmul.f32 %v5453_v48, %v319_v50  ;;  %v331_v62 = vmul.f32 %v5453_v48, %v308_v51  ;;  %v329_v63 = vmul.f32 %v5453_v48, %v306_v52  ;;  %v333_v0 = vmul.f32 %v5453_v48, %v310_v53 }
 0x11e   :  { %v335_v1 = vmul.f32 %v5453_v48, %v312_v56  ;;  %v330_v2 = vmul.f32 %v5453_v48, %v307_v58  ;;  %v332_v3 = vmul.f32 %v5453_v48, %v309_v59  ;;  %v334_v12 = vmul.f32 %v5453_v48, %v311_v60 }
 0x11f   :  { %v5476_v4 = vadd.f32 %v5462_v55, %v342_v61  ;;  %v354_v5 = vadd.f32 %v5462_v55, %v331_v62  ;;  %v352_v6 = vadd.f32 %v5462_v55, %v329_v63  ;;  %v356_v8 = vadd.f32 %v5462_v55, %v333_v0 }
 0x120   :  { %v358_v10 = vadd.f32 %v5462_v55, %v335_v1  ;;  %v353_v11 = vadd.f32 %v5462_v55, %v330_v2  ;;  %v355_v15 = vadd.f32 %v5462_v55, %v332_v3  ;;  %v357_v31 = vadd.f32 %v5462_v55, %v334_v12 }
 0x121   :  { %vm370_vm3 = vcmp.ge.f32.partialorder %v354_v5, 0.0  ;;  %v386_v13 = vmul.f32 0.2, %v354_v5  ;;  %vm368_vm4 = vcmp.ge.f32.partialorder %v352_v6, 0.0  ;;  %v384_v16 = vmul.f32 0.2, %v352_v6 }
 0x122   :  { %vm372_vm5 = vcmp.ge.f32.partialorder %v356_v8, 0.0  ;;  %v388_v18 = vmul.f32 0.2, %v356_v8  ;;  %vm374_vm6 = vcmp.ge.f32.partialorder %v358_v10, 0.0  ;;  %v390_v20 = vmul.f32 0.2, %v358_v10 }
 0x123   :  { %v5485_v19 = vsel %vm370_vm3, %v354_v5, %v386_v13  ;;  %vm369_vm7 = vcmp.ge.f32.partialorder %v353_v11, 0.0  ;;  %v385_v21 = vmul.f32 0.2, %v353_v11  ;;  %v5488_v24 = vsel %vm368_vm4, %v352_v6, %v384_v16 }
 0x124   :  { %v434_v23 = vrot.slane %v5485_v19, 7  ;;  %v5490_v25 = vsel %vm372_vm5, %v356_v8, %v388_v18  ;;  %v432_v34 = vrot.slane %v5488_v24, 7  ;;  %v5495_v36 = vsel %vm374_vm6, %v358_v10, %v390_v20 }
 0x125   :  { %v436_v35 = vrot.slane %v5490_v25, 7  ;;  %v5497_v37 = vsel %vm369_vm7, %v353_v11, %v385_v21  ;;  %v438_v41 = vrot.slane %v5495_v36, 7  ;;  %vm371_vm8 = vcmp.ge.f32.partialorder %v355_v15, 0.0  ;;  %v4935_v25 = vld [vmem:[%s7099_s2 + $0x40] sm:$0xff]  }
 0x126   :  { %v5502_v39 = vsel %vm464_vm2, 0.0, %v434_v23  ;;  %v387_v42 = vmul.f32 0.2, %v355_v15  ;;  %v5509_v50 = vsel %vm464_vm2, 0.0, %v432_v34  ;;  %v433_v53 = vrot.slane %v5497_v37, 7  ;;  %v4937_v36 = vld [vmem:[%s7099_s2] sm:$0xff]   ;;  %4585 = vmatprep.subr.bf16.mxu1 %v4935_v25 }
 0x127   :  { %v597_v43 = vrot.slane %v5502_v39, 1  ;;  %v596_v51 = vrot.slane %v5509_v50, 1  ;;  %v5515_v52 = vsel %vm464_vm2, 0.0, %v436_v35  ;;  %vm373_vm9 = vcmp.ge.f32.partialorder %v357_v31, 0.0  ;;  %4586 = vmatpush3.bf16.msra.mxu1 %v4937_v36 }
 0x128   :  { %v5522_v56 = vsel %vm464_vm2, 0.0, %v438_v41  ;;  %v5524_v58 = vsel %vm371_vm8, %v355_v15, %v387_v42  ;;  %v389_v59 = vmul.f32 0.2, %v357_v31  ;;  %v598_v61 = vrot.slane %v5515_v52, 1 }
 0x129   :  { %606 = vrot.lane.b32.xlu1 %v597_v43, %s5170_s30  ;;  %604 = vrot.lane.b32.xlu0 %v596_v51, %s5170_s30  ;;  %v435_v60 = vrot.slane %v5524_v58, 7  ;;  %v313_v63 = vmul.f32 %v5448_v46, %v295_v29  ;;  %v599_v0 = vrot.slane %v5522_v56, 1  ;;  %v5539_v1 = vsel %vm464_vm2, 0.0, %v433_v53 }
 0x12a   :  { %v5529_v62 = vsel %vm373_vm9, %v357_v31, %v389_v59  ;;  %v505_v29 = vrot.slane %v5539_v1, 1  ;;  %v629_v12 = vrot.slane %v5502_v39, 2  ;;  %v314_v15 = vmul.f32 %v5448_v46, %v296_v30 }
 0x12b   :  { %v437_v2 = vrot.slane %v5529_v62, 7  ;;  %v5546_v3 = vsel %vm464_vm2, 0.0, %v435_v60  ;;  %v336_v54 = vmul.f32 %v5453_v48, %v313_v63  ;;  %v628_v16 = vrot.slane %v5509_v50, 2 }
 0x12c   :  { %v506_v6 = vrot.slane %v5546_v3, 1  ;;  %v631_v18 = vrot.slane %v5522_v56, 2  ;;  %v337_v21 = vmul.f32 %v5453_v48, %v314_v15  ;;  %v316_v31 = vmul.f32 %v5448_v46, %v298_v49 }
 0x12d   :  { %608 = vrot.lane.b32.xlu1 %v598_v61, %s5170_s30  ;;  %610 = vrot.lane.b32.xlu0 %v599_v0, %s5170_s30  ;;  %v359_v5 = vadd.f32 %v5462_v55, %v336_v54  ;;  %v5556_v8 = vsel %vm464_vm2, 0.0, %v437_v2  ;;  %v318_v9 = vmul.f32 %v5448_v46, %v300_v47  ;;  %v320_v30 = vmul.f32 %v5448_v46, %v302_v33 }
 0x12e   :  { %v507_v11 = vrot.slane %v5556_v8, 1  ;;  %v315_v42 = vmul.f32 %v5448_v46, %v297_v32  ;;  %v317_v7 = vmul.f32 %v5448_v46, %v299_v57  ;;  %v5597_v40 = vadd.f32 %v5462_v55, %v337_v21 }
 0x12f   :  { %v391_v10 = vmul.f32 0.2, %v359_v5  ;;  %vm375_vm10 = vcmp.ge.f32.partialorder %v359_v5, 0.0  ;;  %v339_v49 = vmul.f32 %v5453_v48, %v316_v31  ;;  %v341_v38 = vmul.f32 %v5453_v48, %v318_v9  ;;  %v4938_v31 = vld [vmem:[%s7099_s2 + $0x80] sm:$0xff]  }
 0x130   :  { %v630_v47 = vrot.slane %v5515_v52, 2  ;;  %v343_v17 = vmul.f32 %v5453_v48, %v320_v30  ;;  %v338_v33 = vmul.f32 %v5453_v48, %v315_v42  ;;  %v340_v32 = vmul.f32 %v5453_v48, %v317_v7  ;;  %v4939_v30 = vld [vmem:[%s7099_s2 + $0x48] sm:$0xff]  }
 0x131   :  { %513 = vrot.lane.b32.xlu1 %v505_v29, %s5170_s30  ;;  %515 = vrot.lane.b32.xlu0 %v506_v6, %s5170_s30  ;;  %v5563_v13 = vsel %vm375_vm10, %v359_v5, %v391_v10  ;;  %v533_v14 = vrot.slane %v5539_v1, 2  ;;  %v5612_v43 = vadd.f32 %v5462_v55, %v339_v49  ;;  %v5615_v51 = vadd.f32 %v5462_v55, %v341_v38  ;;  %v4940_v7 = vld [vmem:[%s7099_s2 + $0xc8] sm:$0xff]  }
 0x132   :  { %v439_v20 = vrot.slane %v5563_v13, 7  ;;  %v5619_v59 = vadd.f32 %v5462_v55, %v343_v17  ;;  %v5622_v61 = vadd.f32 %v5462_v55, %v338_v33  ;;  %v5625_v63 = vadd.f32 %v5462_v55, %v340_v32  ;;  %4587 = vmatprep.subr.bf16.mxu1 %v4939_v30  ;;  %v4941_v38 = vld [vmem:[%s7099_s2 + $0x8] sm:$0xff]   ;;  %v4943_v32 = vld [vmem:[%s7099_s2 + $0x50] sm:$0xff]   ;;  %v4952_v13 = vld [vmem:[%s7099_s2 + $0xe0] sm:$0xff]  }
 0x133   :  { %v535_v54 = vrot.slane %v5556_v8, 2  ;;  %v534_v29 = vrot.slane %v5546_v3, 2  ;;  %v660_v5 = vrot.slane %v5509_v50, 3  ;;  %v661_v6 = vrot.slane %v5502_v39, 3  ;;  %v4942_v17 = vld [vmem:[%s7099_s2 + $0x88] sm:$0xff]   ;;  %4588 = vmatpush3.bf16.msra.mxu1 %v4941_v38  ;;  %v4964_v30 = vld [vmem:[%s7099_s2 + $0xf8] sm:$0xff]  }
 0x134   :  { %v5609_v57 = vsel %vm464_vm2, 0.0, %v439_v20  ;;  %v321_v10 = vmul.f32 %v5448_v46, %v303_v44  ;;  %v663_v15 = vrot.slane %v5522_v56, 3  ;;  %v561_v45 = vrot.slane %v5539_v1, 3  ;;  %4589 = vmatprep.subr.bf16.mxu1 %v4943_v32 }
 0x135   :  { %517 = vrot.lane.b32.xlu1 %v507_v11, %s5170_s30  ;;  %638 = vrot.lane.b32.xlu0 %v629_v12, %s5171_s12  ;;  %v694_v0 = vrot.slane %v5609_v57, 1  ;;  %v662_v11 = vrot.slane %v5515_v52, 3  ;;  %v562_v22 = vrot.slane %v5546_v3, 3  ;;  %v563_v44 = vrot.slane %v5556_v8, 3 }
 0x136   :  { %v344_v12 = vmul.f32 %v5453_v48, %v321_v10  ;;  %v5659_v46 = vsel %vm464_vm2, %v432_v34, 0.0  ;;  %v5664_v48 = vsel %vm464_vm2, %v434_v23, 0.0  ;;  %v5674_v21 = vsel %vm464_vm2, %v438_v41, 0.0  ;;  %v4936_v34 = vld [vmem:[%s7099_s2 + $0xc0] sm:$0xff]  }
 0x137   :  { %v5678_v24 = vmul.f32 0.2, %v5597_v40  ;;  %v5681_v19 = vmul.f32 0.2, %v5612_v43  ;;  %v5684_v23 = vmul.f32 0.2, %v5615_v51  ;;  %4613 = vmatprep.subr.bf16.mxu0 %v4936_v34 }
 0x138   :  { %v833_v41 = vrot.slane %v5659_v46, 2  ;;  %v834_v9 = vrot.slane %v5664_v48, 2  ;;  %4614 = vmatpush3.bf16.msra.mxu0 %v4938_v31  ;;  %v836_v49 = vrot.slane %v5674_v21, 2  ;;  %v5727_v33 = vsel %vm464_vm2, %v435_v60, 0.0  ;;  %v4945_v60 = vld [vmem:[%s7099_s2 + $0x10] sm:$0xff]  }
 0x139   :  { %636 = vrot.lane.b32.xlu1 %v628_v16, %s5171_s12  ;;  %642 = vrot.lane.b32.xlu0 %v631_v18, %s5171_s12  ;;  %v5647_v16 = vadd.f32 %v5462_v55, %v344_v12  ;;  %v702_v18 = vrot.slane %v5609_v57, 2  ;;  %v5669_v55 = vsel %vm464_vm2, %v436_v35, 0.0  ;;  %v710_v35 = vrot.slane %v5609_v57, 3  ;;  %v4962_v31 = vld [vmem:[%s7099_s2 + $0xb0] sm:$0xff]  }
 0x13a   :  { %v835_v42 = vrot.slane %v5669_v55, 2  ;;  %4615 = vmatprep.subr.bf16.mxu0 %v4940_v7  ;;  %v5735_v37 = vsel %vm464_vm2, %v437_v2, 0.0  ;;  %v778_v62 = vrot.slane %v5727_v33, 2  ;;  %v4946_v2 = vld [vmem:[%s7099_s2 + $0x90] sm:$0xff]   ;;  %4590 = vmatpush3.bf16.msra.mxu1 %v4945_v60  ;;  %v5767_v10 = vsel %vm464_vm2, %v439_v20, 0.0 }
 0x13b   :  { %v867_v12 = vrot.slane %v5669_v55, 3  ;;  %v899_v20 = vrot.slane %v5767_v10, 2  ;;  %vm376_vm11 = vcmp.ge.f32.partialorder %v5597_v40, 0.0  ;;  %vm378_vm12 = vcmp.ge.f32.partialorder %v5612_v43, 0.0  ;;  %v4957_v55 = vld [vmem:[%s7099_s2 + $0x28] sm:$0xff]  }
 0x13c   :  { %4616 = vmatpush3.bf16.msra.mxu0 %v4942_v17  ;;  %vm380_vm13 = vcmp.ge.f32.partialorder %v5615_v51, 0.0  ;;  %v5812_v25 = vsel %vm376_vm11, %v5597_v40, %v5678_v24  ;;  %v5817_v34 = vsel %vm378_vm12, %v5612_v43, %v5681_v19  ;;  %v802_v36 = vrot.slane %v5727_v33, 3  ;;  %v4960_v40 = vld [vmem:[%s7099_s2 + $0xf0] sm:$0xff]  }
 0x13d   :  { %640 = vrot.lane.b32.xlu1 %v630_v47, %s5171_s12  ;;  %541 = vrot.lane.b32.xlu0 %v533_v14, %s5171_s12  ;;  %v5719_v47 = vsel %vm464_vm2, %v433_v53, 0.0  ;;  %v4944_v53 = vld [vmem:[%s7099_s2 + $0xd0] sm:$0xff]   ;;  %v779_v14 = vrot.slane %v5735_v37, 2  ;;  %vm382_vm14 = vcmp.ge.f32.partialorder %v5619_v59, 0.0  ;;  %v440_v43 = vrot.slane %v5812_v25, 7 }
 0x13e   :  { %v777_v58 = vrot.slane %v5719_v47, 2  ;;  %4617 = vmatprep.subr.bf16.mxu0 %v4944_v53  ;;  %v4961_v24 = vld [vmem:[%s7099_s2 + $0x30] sm:$0xff]   ;;  %v393_v19 = vmul.f32 0.2, %v5622_v61  ;;  %v5848_v7 = vsel %vm380_vm13, %v5615_v51, %v5684_v23  ;;  %vm377_vm15 = vcmp.ge.f32.partialorder %v5622_v61, 0.0  ;;  %v4965_v51 = vld [vmem:[%s7099_s2 + $0x38] sm:$0xff]  }
 0x13f   :  { %v395_v38 = vmul.f32 0.2, %v5625_v63  ;;  %vm379_vm0 = vcmp.ge.f32.partialorder %v5625_v63, 0.0  ;;  %v907_v23 = vrot.slane %v5767_v10, 3  ;;  %v5868_v17 = vsel %vm464_vm2, 0.0, %v440_v43 }
 0x140   :  { %4618 = vmatpush3.bf16.msra.mxu0 %v4946_v2  ;;  %v444_v33 = vrot.slane %v5848_v7, 7  ;;  %v397_v32 = vmul.f32 0.2, %v5476_v4  ;;  %vm381_vm3 = vcmp.ge.f32.partialorder %v5476_v4, 0.0  ;;  %vm383_vm4 = vcmp.ge.f32.partialorder %v5647_v16, 0.0 }
 0x141   :  { %696 = vrot.lane.b32.xlu1 %v694_v0, %s5170_s30  ;;  %545 = vrot.lane.b32.xlu0 %v535_v54, %s5171_s12  ;;  %v4947_v0 = vld [vmem:[%s7099_s2 + $0x58] sm:$0xff]   ;;  %v865_v54 = vrot.slane %v5659_v46, 3  ;;  %v4955_v46 = vld [vmem:[%s7099_s2 + $0x68] sm:$0xff]   ;;  %v5888_v60 = vsel %vm379_vm0, %v5625_v63, %v395_v38  ;;  %vm725_vm5 = vcmask 523264   ;;  %vm733_vm6 = vcmask 785408  }
 0x142   :  { %4591 = vmatprep.subr.bf16.mxu1 %v4947_v0  ;;  %v443_v0 = vrot.slane %v5888_v60, 7  ;;  %v493_v25 = vsel %vm464_vm2, %v444_v33, 0.0  ;;  %vm1099_vm7 = vcmask 1041408   ;;  %vm1117_vm8 = vcmask 1042432  }
 0x143   :  { %vm1666_vm12 = vcmask 1044480   ;;  %vm3165_vm13 = vcmask 1041409  }
 0x144   :  { %v492_v7 = vsel %vm464_vm2, %v443_v0, 0.0 }
 0x145   :  { %543 = vrot.lane.b32.xlu1 %v534_v29, %s5171_s12  ;;  %668 = vrot.lane.b32.xlu0 %v660_v5, %s5172_s13  ;;  %v4948_v29 = vld [vmem:[%s7099_s2 + $0xd8] sm:$0xff]   ;;  %v866_v5 = vrot.slane %v5664_v48, 3  ;;  %v4956_v48 = vld [vmem:[%s7099_s2 + $0xe8] sm:$0xff]  }
 0x146   :  { %4619 = vmatprep.subr.bf16.mxu0 %v4948_v29 }
 0x149   :  { %670 = vrot.lane.b32.xlu1 %v661_v6, %s5172_s13  ;;  %672 = vrot.lane.b32.xlu0 %v662_v11, %s5172_s13  ;;  %v4949_v6 = vld [vmem:[%s7099_s2 + $0x18] sm:$0xff]  }
 0x14a   :  { %v4950_v11 = vld [vmem:[%s7099_s2 + $0x98] sm:$0xff]   ;;  %4592 = vmatpush3.bf16.msra.mxu1 %v4949_v6 }
 0x14b   :  { %4620 = vmatpush3.bf16.msra.mxu0 %v4950_v11  ;;  %v399_v11 = vmul.f32 0.2, %v5647_v16 }
 0x14c   :  { %4621 = vmatprep.subr.bf16.mxu0 %v4952_v13 }
 0x14d   :  { %674 = vrot.lane.b32.xlu1 %v663_v15, %s5172_s13  ;;  %704 = vrot.lane.b32.xlu0 %v702_v18, %s5171_s12  ;;  %v4951_v15 = vld [vmem:[%s7099_s2 + $0x60] sm:$0xff]   ;;  %v868_v18 = vrot.slane %v5674_v21, 3  ;;  %v4958_v21 = vld [vmem:[%s7099_s2 + $0xa8] sm:$0xff]   ;;  %v5937_v13 = vsel %vm383_vm4, %v5647_v16, %v399_v11 }
 0x14e   :  { %4593 = vmatprep.subr.bf16.mxu1 %v4951_v15 }
 0x151   :  { %569 = vrot.lane.b32.xlu1 %v561_v45, %s5172_s13  ;;  %571 = vrot.lane.b32.xlu0 %v562_v22, %s5172_s13  ;;  %v4953_v45 = vld [vmem:[%s7099_s2 + $0x20] sm:$0xff]  }
 0x152   :  { %v4954_v22 = vld [vmem:[%s7099_s2 + $0xa0] sm:$0xff]   ;;  %4594 = vmatpush3.bf16.msra.mxu1 %v4953_v45  ;;  %v632_v45 = vrot.slane %v5868_v17, 2 }
 0x153   :  { %4622 = vmatpush3.bf16.msra.mxu0 %v4954_v22  ;;  %4595 = vmatprep.subr.bf16.mxu1 %v4955_v46  ;;  %v447_v22 = vrot.slane %v5937_v13, 7 }
 0x154   :  { %4623 = vmatprep.subr.bf16.mxu0 %v4956_v48 }
 0x155   :  { %573 = vrot.lane.b32.xlu1 %v563_v44, %s5172_s13  ;;  %712 = vrot.lane.b32.xlu0 %v710_v35, %s5172_s13  ;;  %v398_v44 = vmul.f32 0.2, %v5619_v59  ;;  %v801_v35 = vrot.slane %v5719_v47, 3  ;;  %v803_v47 = vrot.slane %v5735_v37, 3  ;;  %v5950_v16 = vsel %vm464_vm2, 0.0, %v447_v22 }
 0x156   :  { %4596 = vmatpush3.bf16.msra.mxu1 %v4957_v55  ;;  %v695_v55 = vrot.slane %v5950_v16, 1  ;;  %v711_v11 = vrot.slane %v5950_v16, 3 }
 0x157   :  { %4624 = vmatpush3.bf16.msra.mxu0 %v4958_v21 }
 0x158   :  { %4625 = vmatprep.subr.bf16.mxu0 %v4960_v40  ;;  %v664_v40 = vrot.slane %v5868_v17, 3 }
 0x159   :  { %841 = vrot.lane.b32.xlu1 %v833_v41, %s5171_s12  ;;  %843 = vrot.lane.b32.xlu0 %v834_v9, %s5171_s12  ;;  %v4959_v41 = vld [vmem:[%s7099_s2 + $0x70] sm:$0xff]   ;;  %v4963_v9 = vld [vmem:[%s7099_s2 + $0x78] sm:$0xff]  }
 0x15a   :  { %4597 = vmatprep.subr.bf16.mxu1 %v4959_v41 }
 0x15b   :  { %4598 = vmatpush3.bf16.msra.mxu1 %v4961_v24  ;;  %4626 = vmatpush3.bf16.msra.mxu0 %v4962_v31  ;;  %v5967_v24 = vpop.permute.xlu1 %567 }
 0x15c   :  { %4599 = vmatprep.subr.bf16.mxu1 %v4963_v9  ;;  %4627 = vmatprep.subr.bf16.mxu0 %v4964_v30 }
 0x15d   :  { %845 = vrot.lane.b32.xlu1 %v835_v42, %s5171_s12  ;;  %847 = vrot.lane.b32.xlu0 %v836_v49, %s5171_s12  ;;  %v442_v42 = vrot.slane %v5817_v34, 7  ;;  %v5852_v49 = vsel %vm382_vm14, %v5619_v59, %v398_v44  ;;  %v4966_v59 = vld [vmem:[%s7099_s2 + $0xb8] sm:$0xff]  }
 0x15e   :  { %v446_v53 = vrot.slane %v5852_v49, 7 }
 0x15f   :  { %v5876_v37 = vsel %vm464_vm2, 0.0, %v442_v42  ;;  %4600 = vmatpush3.bf16.msra.mxu1 %v4965_v51  ;;  %4628 = vmatpush3.bf16.msra.mxu0 %v4966_v59  ;;  %v703_v51 = vrot.slane %v5950_v16, 2 }
 0x160   :  { %v601_v2 = vrot.slane %v5876_v37, 1  ;;  %v5903_v63 = vsel %vm464_vm2, 0.0, %v446_v53  ;;  %v633_v44 = vrot.slane %v5876_v37, 2  ;;  %v495_v34 = vsel %vm464_vm2, %v446_v53, 0.0 }
 0x161   :  { %783 = vrot.lane.b32.xlu1 %v777_v58, %s5171_s12  ;;  %785 = vrot.lane.b32.xlu0 %v778_v62, %s5171_s12  ;;  %v5882_v58 = vsel %vm377_vm15, %v5622_v61, %v393_v19  ;;  %v600_v62 = vrot.slane %v5868_v17, 1  ;;  %v5896_v61 = vsel %vm464_vm2, 0.0, %v444_v33  ;;  %v635_v48 = vrot.slane %v5903_v63, 2 }
 0x162   :  { %v602_v29 = vrot.slane %v5896_v61, 1  ;;  %v634_v46 = vrot.slane %v5896_v61, 2  ;;  %v665_v19 = vrot.slane %v5876_v37, 3  ;;  %v666_v9 = vrot.slane %v5896_v61, 3 }
 0x163   :  { %v667_v38 = vrot.slane %v5903_v63, 3 }
 0x165   :  { %787 = vrot.lane.b32.xlu1 %v779_v14, %s5171_s12  ;;  %873 = vrot.lane.b32.xlu0 %v865_v54, %s5172_s13  ;;  %v441_v14 = vrot.slane %v5882_v58, 7  ;;  %v5907_v54 = vsel %vm381_vm3, %v5476_v4, %v397_v32  ;;  %v5922_v4 = vsel %vm464_vm2, 0.0, %v443_v0 }
 0x166   :  { %v445_v10 = vrot.slane %v5907_v54, 7  ;;  %v509_v15 = vrot.slane %v5922_v4, 1 }
 0x167   :  { %v5915_v6 = vsel %vm464_vm2, 0.0, %v441_v14 }
 0x168   :  { %v536_v21 = vrot.slane %v5915_v6, 2  ;;  %v494_v58 = vsel %vm464_vm2, %v445_v10, 0.0 }
 0x169   :  { %875 = vrot.lane.b32.xlu1 %v866_v5, %s5172_s13  ;;  %877 = vrot.lane.b32.xlu0 %v867_v12, %s5172_s13  ;;  %v603_v5 = vrot.slane %v5903_v63, 1  ;;  %v508_v12 = vrot.slane %v5915_v6, 1  ;;  %v782_v60 = vrot.slane %v494_v58, 2 }
 0x16d   :  { %879 = vrot.lane.b32.xlu1 %v868_v18, %s5172_s13  ;;  %901 = vrot.lane.b32.xlu0 %v899_v20, %s5171_s12  ;;  %v5932_v18 = vsel %vm464_vm2, 0.0, %v445_v10  ;;  %v496_v10 = vsel %vm464_vm2, %v447_v22, 0.0 }
 0x16e   :  { %v510_v20 = vrot.slane %v5932_v18, 1  ;;  %v538_v41 = vrot.slane %v5932_v18, 2 }
 0x171   :  { %807 = vrot.lane.b32.xlu1 %v801_v35, %s5172_s13  ;;  %809 = vrot.lane.b32.xlu0 %v802_v36, %s5172_s13  ;;  %v537_v35 = vrot.slane %v5922_v4, 2  ;;  %v5960_v36 = vpop.permute.xlu0 %511 }
 0x172   :  { %v718_v13 = vsel %vm193_vm1, 0.0, %v5960_v36 }
 0x175   :  { %811 = vrot.lane.b32.xlu1 %v803_v47, %s5172_s13  ;;  %909 = vrot.lane.b32.xlu0 %v907_v23, %s5172_s13  ;;  %v5970_v31 = vpop.permute.xlu0 %539  ;;  %v564_v23 = vrot.slane %v5915_v6, 3 }
 0x179   :  { %612 = vrot.lane.b32.xlu1 %v600_v62, %s5170_s30  ;;  %614 = vrot.lane.b32.xlu0 %v601_v2, %s5170_s30  ;;  %v565_v62 = vrot.slane %v5922_v4, 3 }
 0x17d   :  { %616 = vrot.lane.b32.xlu1 %v602_v29, %s5170_s30  ;;  %618 = vrot.lane.b32.xlu0 %v603_v5, %s5170_s30  ;;  %v566_v29 = vrot.slane %v5932_v18, 3 }
 0x181   :  { %519 = vrot.lane.b32.xlu1 %v508_v12, %s5170_s30  ;;  %521 = vrot.lane.b32.xlu0 %v509_v15, %s5170_s30  ;;  %v489_v12 = vsel %vm464_vm2, %v440_v43, 0.0  ;;  %v491_v15 = vsel %vm464_vm2, %v442_v42, 0.0  ;;  %v839_v42 = vrot.slane %v493_v25, 2 }
 0x185   :  { %523 = vrot.lane.b32.xlu1 %v510_v20, %s5170_s30  ;;  %644 = vrot.lane.b32.xlu0 %v632_v45, %s5171_s12  ;;  %v837_v45 = vrot.slane %v489_v12, 2 }
 0x189   :  { %646 = vrot.lane.b32.xlu1 %v633_v44, %s5171_s12  ;;  %648 = vrot.lane.b32.xlu0 %v634_v46, %s5171_s12  ;;  %v838_v46 = vrot.slane %v491_v15, 2 }
 0x18d   :  { %650 = vrot.lane.b32.xlu1 %v635_v48, %s5171_s12  ;;  %698 = vrot.lane.b32.xlu0 %v695_v55, %s5170_s30  ;;  %v840_v55 = vrot.slane %v495_v34, 2 }
 0x191   :  { %547 = vrot.lane.b32.xlu1 %v536_v21, %s5171_s12  ;;  %549 = vrot.lane.b32.xlu0 %v537_v35, %s5171_s12  ;;  %v490_v21 = vsel %vm464_vm2, %v441_v14, 0.0  ;;  %v781_v35 = vrot.slane %v492_v7, 2 }
 0x192   :  { %v780_v33 = vrot.slane %v490_v21, 2 }
 0x195   :  { %551 = vrot.lane.b32.xlu1 %v538_v41, %s5171_s12  ;;  %676 = vrot.lane.b32.xlu0 %v664_v40, %s5172_s13  ;;  %v869_v41 = vrot.slane %v489_v12, 3 }
 0x199   :  { %678 = vrot.lane.b32.xlu1 %v665_v19, %s5172_s13  ;;  %680 = vrot.lane.b32.xlu0 %v666_v9, %s5172_s13  ;;  %v870_v19 = vrot.slane %v491_v15, 3  ;;  %v871_v9 = vrot.slane %v493_v25, 3  ;;  %v805_v15 = vrot.slane %v492_v7, 3  ;;  %v908_v25 = vrot.slane %v496_v10, 3 }
 0x19b   :  { %v5975_v30 = vpop.permute.xlu1 %606  ;;  %v5978_v47 = vpop.permute.xlu0 %604 }
 0x19d   :  { %682 = vrot.lane.b32.xlu1 %v667_v38, %s5172_s13  ;;  %706 = vrot.lane.b32.xlu0 %v703_v51, %s5171_s12  ;;  %v872_v51 = vrot.slane %v495_v34, 3  ;;  %v726_v34 = vsel %vm725_vm5, %v718_v13, %v5970_v31 }
 0x19e   :  { %v734_v36 = vsel %vm733_vm6, %v726_v34, %v5967_v24  ;;  %v742_v24 = vsel %vm193_vm1, %v5502_v39, %v5975_v30 }
 0x19f   :  { %v5983_v59 = vpop.permute.xlu1 %608  ;;  %v5986_v32 = vpop.permute.xlu0 %610  ;;  %v964_v7 = vrot.slane %v734_v36, 1 }
 0x1a1   :  { %575 = vrot.lane.b32.xlu1 %v564_v23, %s5172_s13  ;;  %577 = vrot.lane.b32.xlu0 %v565_v62, %s5172_s13  ;;  %v900_v62 = vrot.slane %v496_v10, 2  ;;  %v1048_v10 = vrot.slane %v734_v36, 3 }
 0x1a3   :  { %v5991_v2 = vpop.permute.xlu1 %513  ;;  %v5994_v5 = vpop.permute.xlu0 %515 }
 0x1a4   :  { %v719_v13 = vsel %vm193_vm1, %v5539_v1, %v5991_v2 }
 0x1a5   :  { %579 = vrot.lane.b32.xlu1 %v566_v29, %s5172_s13  ;;  %714 = vrot.lane.b32.xlu0 %v711_v11, %s5172_s13  ;;  %v804_v11 = vrot.slane %v490_v21, 3 }
 0x1a7   :  { %v6005_v20 = vpop.permute.xlu1 %517  ;;  %v6007_v44 = vpop.permute.xlu0 %638 }
 0x1a9   :  { %849 = vrot.lane.b32.xlu1 %v837_v45, %s5171_s12  ;;  %851 = vrot.lane.b32.xlu0 %v838_v46, %s5171_s12  ;;  %v806_v45 = vrot.slane %v494_v58, 3  ;;  %v998_v58 = vrot.slane %v734_v36, 2 }
 0x1ab   :  { %v637_v43 = vpop.permute.xlu1 %636  ;;  %v6017_v48 = vpop.permute.xlu0 %642 }
 0x1ad   :  { %853 = vrot.lane.b32.xlu1 %v839_v42, %s5171_s12  ;;  %855 = vrot.lane.b32.xlu0 %v840_v55, %s5171_s12 }
 0x1af   :  { %v6027_v49 = vpop.permute.xlu1 %640  ;;  %v6029_v53 = vpop.permute.xlu0 %541 }
 0x1b0   :  { %v727_v1 = vsel %vm725_vm5, %v719_v13, %v6029_v53 }
 0x1b1   :  { %789 = vrot.lane.b32.xlu1 %v780_v33, %s5171_s12  ;;  %791 = vrot.lane.b32.xlu0 %v781_v35, %s5171_s12  ;;  %v741_v35 = vsel %vm193_vm1, %v5509_v50, %v5978_v47  ;;  %v743_v50 = vsel %vm193_vm1, %v5515_v52, %v5983_v59  ;;  %v750_v47 = vsel %vm725_vm5, %v742_v24, %v6007_v44 }
 0x1b2   :  { %v749_v31 = vsel %vm725_vm5, %v741_v35, %v637_v43 }
 0x1b3   :  { %v6036_v14 = vpop.permute.xlu1 %696  ;;  %v6038_v0 = vpop.permute.xlu0 %545 }
 0x1b5   :  { %793 = vrot.lane.b32.xlu1 %v782_v60, %s5171_s12  ;;  %881 = vrot.lane.b32.xlu0 %v869_v41, %s5172_s13  ;;  %v1082_v41 = vsel %vm464_vm2, %v734_v36, %v964_v7 }
 0x1b7   :  { %v6042_v40 = vpop.permute.xlu1 %543  ;;  %v669_v54 = vpop.permute.xlu0 %668 }
 0x1b9   :  { %883 = vrot.lane.b32.xlu1 %v870_v19, %s5172_s13  ;;  %885 = vrot.lane.b32.xlu0 %v871_v9, %s5172_s13  ;;  %v757_v19 = vsel %vm733_vm6, %v749_v31, %v669_v54  ;;  %v744_v54 = vsel %vm193_vm1, %v5522_v56, %v5986_v32 }
 0x1ba   :  { %v965_v43 = vrot.slane %v757_v19, 1  ;;  %v752_v52 = vsel %vm725_vm5, %v744_v54, %v6017_v48  ;;  %v999_v44 = vrot.slane %v757_v19, 2  ;;  %v720_v48 = vsel %vm193_vm1, %v5546_v3, %v5994_v5 }
 0x1bb   :  { %v671_v38 = vpop.permute.xlu1 %670  ;;  %v673_v23 = vpop.permute.xlu0 %672  ;;  %v728_v3 = vsel %vm725_vm5, %v720_v48, %v6042_v40 }
 0x1bc   :  { %v758_v39 = vsel %vm733_vm6, %v750_v47, %v671_v38  ;;  %v1083_v56 = vsel %vm464_vm2, %v757_v19, %v965_v43 }
 0x1bd   :  { %887 = vrot.lane.b32.xlu1 %v872_v51, %s5172_s13  ;;  %903 = vrot.lane.b32.xlu0 %v900_v62, %s5171_s12  ;;  %v1100_v51 = vsel %vm1099_vm7, %v1082_v41, %v998_v58  ;;  %v967_v32 = vrot.slane %v758_v39, 1  ;;  %v1101_v53 = vsel %vm1099_vm7, %v1083_v56, %v999_v44 }
 0x1be   :  { %v6103_v38 = vsel %vm1117_vm8, %v1100_v51, %v1048_v10 }
 0x1bf   :  { %v675_v29 = vpop.permute.xlu1 %674  ;;  %v6051_v12 = vpop.permute.xlu0 %704  ;;  %v1085_v36 = vsel %vm464_vm2, %v758_v39, %v967_v32 }
 0x1c1   :  { %813 = vrot.lane.b32.xlu1 %v804_v11, %s5172_s13  ;;  %815 = vrot.lane.b32.xlu0 %v805_v15, %s5172_s13  ;;  %v751_v11 = vsel %vm725_vm5, %v743_v50, %v6027_v49  ;;  %v760_v15 = vsel %vm733_vm6, %v752_v52, %v675_v29 }
 0x1c2   :  { %v759_v59 = vsel %vm733_vm6, %v751_v11, %v673_v23  ;;  %v6111_v23 = vsel %vm193_vm1, %v5556_v8, %v6005_v20  ;;  %v971_v5 = vrot.slane %v760_v15, 1  ;;  %v1001_v8 = vrot.slane %v758_v39, 2 }
 0x1c3   :  { %v570_v22 = vpop.permute.xlu1 %569  ;;  %v6057_v46 = vpop.permute.xlu0 %571  ;;  %v969_v2 = vrot.slane %v759_v59, 1  ;;  %v1003_v20 = vrot.slane %v759_v59, 2  ;;  %v1005_v31 = vrot.slane %v760_v15, 2 }
 0x1c4   :  { %v735_v7 = vsel %vm733_vm6, %v727_v1, %v570_v22 }
 0x1c5   :  { %817 = vrot.lane.b32.xlu1 %v806_v45, %s5172_s13  ;;  %911 = vrot.lane.b32.xlu0 %v908_v25, %s5172_s13  ;;  %v6118_v45 = vsel %vm193_vm1, %v5609_v57, %v6036_v14  ;;  %v729_v25 = vsel %vm725_vm5, %v6111_v23, %v6038_v0  ;;  %v1087_v0 = vsel %vm464_vm2, %v759_v59, %v969_v2  ;;  %v966_v10 = vrot.slane %v735_v7, 1 }
 0x1c6   :  { %v1105_v59 = vsel %vm1099_vm7, %v1087_v0, %v1003_v20 }
 0x1c7   :  { %v6063_v42 = vpop.permute.xlu1 %573  ;;  %v6065_v55 = vpop.permute.xlu0 %712 }
 0x1cb   :  { %v842_v21 = vpop.permute.xlu1 %841  ;;  %v844_v33 = vpop.permute.xlu0 %843 }
 0x1cc   :  { %v927_v34 = vsel %vm725_vm5, %v741_v35, %v842_v21  ;;  %v928_v57 = vsel %vm725_vm5, %v742_v24, %v844_v33  ;;  %v1089_v21 = vsel %vm464_vm2, %v760_v15, %v971_v5  ;;  %v767_v35 = vsel %vm725_vm5, %v6118_v45, %v6051_v12 }
 0x1cd   :  { %v736_v24 = vsel %vm733_vm6, %v728_v3, %v6057_v46  ;;  %v1103_v12 = vsel %vm1099_vm7, %v1085_v36, %v1001_v8  ;;  %v1107_v46 = vsel %vm1099_vm7, %v1089_v21, %v1005_v31  ;;  %v1000_v15 = vrot.slane %v735_v7, 2 }
 0x1ce   :  { %v968_v56 = vrot.slane %v736_v24, 1 }
 0x1cf   :  { %v846_v60 = vpop.permute.xlu1 %845  ;;  %v848_v9 = vpop.permute.xlu0 %847 }
 0x1d0   :  { %v929_v40 = vsel %vm725_vm5, %v743_v50, %v846_v60  ;;  %v737_v60 = vsel %vm733_vm6, %v729_v25, %v6063_v42  ;;  %v769_v50 = vsel %vm733_vm6, %v767_v35, %v6065_v55  ;;  %v930_v43 = vsel %vm725_vm5, %v744_v54, %v848_v9 }
 0x1d1   :  { %v1084_v55 = vsel %vm464_vm2, %v735_v7, %v966_v10  ;;  %v970_v9 = vrot.slane %v737_v60, 1  ;;  %v972_v54 = vrot.slane %v769_v50, 1 }
 0x1d2   :  { %v1102_v0 = vsel %vm1099_vm7, %v1084_v55, %v1000_v15 }
 0x1d3   :  { %v6084_v62 = vpop.permute.xlu1 %783  ;;  %v786_v30 = vpop.permute.xlu0 %785  ;;  %v1088_v31 = vsel %vm464_vm2, %v737_v60, %v970_v9  ;;  %v1090_v21 = vsel %vm464_vm2, %v769_v50, %v972_v54 }
 0x1d4   :  { %v915_v2 = vsel %vm725_vm5, %v719_v13, %v6084_v62  ;;  %v1004_v62 = vrot.slane %v737_v60, 2 }
 0x1d7   :  { %v6100_v49 = vpop.permute.xlu1 %787  ;;  %v874_v29 = vpop.permute.xlu0 %873 }
 0x1d8   :  { %v935_v14 = vsel %vm733_vm6, %v927_v34, %v874_v29  ;;  %v916_v29 = vsel %vm725_vm5, %v720_v48, %v786_v30 }
 0x1d9   :  { %v1049_v51 = vrot.slane %v935_v14, 3  ;;  %v1086_v14 = vsel %vm464_vm2, %v736_v24, %v968_v56 }
 0x1db   :  { %v876_v58 = vpop.permute.xlu1 %875  ;;  %v878_v19 = vpop.permute.xlu0 %877  ;;  %v1119_v1 = vsel %vm1117_vm8, %v1101_v53, %v1049_v51 }
 0x1dc   :  { %v936_v41 = vsel %vm733_vm6, %v928_v57, %v876_v58  ;;  %v937_v33 = vsel %vm733_vm6, %v929_v40, %v878_v19  ;;  %v1002_v57 = vrot.slane %v736_v24, 2  ;;  %v1006_v40 = vrot.slane %v769_v50, 2 }
 0x1dd   :  { %v1051_v22 = vrot.slane %v936_v41, 3  ;;  %v1053_v47 = vrot.slane %v937_v33, 3  ;;  %v917_v41 = vsel %vm725_vm5, %v6111_v23, %v6100_v49  ;;  %v1106_v49 = vsel %vm1099_vm7, %v1088_v31, %v1004_v62 }
 0x1de   :  { %v1104_v10 = vsel %vm1099_vm7, %v1086_v14, %v1002_v57  ;;  %v1108_v50 = vsel %vm1099_vm7, %v1090_v21, %v1006_v40 }
 0x1df   :  { %v880_v11 = vpop.permute.xlu1 %879  ;;  %v902_v52 = vpop.permute.xlu0 %901  ;;  %v1121_v44 = vsel %vm1117_vm8, %v1103_v12, %v1051_v22  ;;  %v1123_v32 = vsel %vm1117_vm8, %v1105_v59, %v1053_v47 }
 0x1e0   :  { %v938_v39 = vsel %vm733_vm6, %v930_v43, %v880_v11  ;;  %v4325_v5 = vcombine.low %v1119_v1, %v1121_v44  ;;  %v4327_v34 = vcombine.low %v1121_v44, %v1123_v32  ;;  %v943_v35 = vsel %vm725_vm5, %v6118_v45, %v902_v52 }
 0x1e1   :  { %v1055_v42 = vrot.slane %v938_v39, 3 }
 0x1e3   :  { %v808_v25 = vpop.permute.xlu1 %807  ;;  %v1125_v3 = vsel %vm1117_vm8, %v1107_v46, %v1055_v42  ;;  %v810_v20 = vpop.permute.xlu0 %809 }
 0x1e4   :  { %v921_v8 = vsel %vm733_vm6, %v915_v2, %v808_v25  ;;  %v4329_v36 = vcombine.low %v1123_v32, %v1125_v3  ;;  %v4331_v7 = vcombine.low %v1125_v3, %v6103_v38  ;;  %v922_v58 = vsel %vm733_vm6, %v916_v29, %v810_v20 }
 0x1e5   :  { %v1050_v53 = vrot.slane %v921_v8, 3  ;;  %v1052_v13 = vrot.slane %v922_v58, 3 }
 0x1e6   :  { %v1195_v30 = vpack.c.bf16 %v4329_v36, %v4325_v5  ;;  %v1197_v48 = vpack.c.bf16 %v4331_v7, %v4327_v34 }
 0x1e7   :  { %v812_v19 = vpop.permute.xlu1 %811  ;;  %v910_v33 = vpop.permute.xlu0 %909  ;;  %v1120_v24 = vsel %vm1117_vm8, %v1102_v0, %v1050_v53  ;;  %v1122_v23 = vsel %vm1117_vm8, %v1104_v10, %v1052_v13 }
 0x1e8   :  { %v923_v22 = vsel %vm733_vm6, %v917_v41, %v812_v19  ;;  %1490 = vmatprep.mubr.bf16.mxu1 %v1195_v30  ;;  %1539 = vmatprep.mubr.bf16.mxu0 %v1197_v48  ;;  %v945_v47 = vsel %vm733_vm6, %v943_v35, %v910_v33  ;;  %v4324_v39 = vcombine.low %v6103_v38, %v1120_v24 }
 0x1e9   :  { %v1054_v51 = vrot.slane %v923_v22, 3  ;;  %v1056_v60 = vrot.slane %v945_v47, 3  ;;  %v4326_v59 = vcombine.low %v1120_v24, %v1122_v23 }
 0x1eb   :  { %v1124_v45 = vsel %vm1117_vm8, %v1106_v49, %v1054_v51  ;;  %v613_v43 = vpop.permute.xlu1 %612  ;;  %v1126_v11 = vsel %vm1117_vm8, %v1108_v50, %v1056_v60  ;;  %v615_v12 = vpop.permute.xlu0 %614 }
 0x1ec   :  { %v4328_v52 = vcombine.low %v1122_v23, %v1124_v45  ;;  %v4330_v46 = vcombine.low %v1124_v45, %v1126_v11  ;;  %v745_v48 = vsel %vm193_vm1, %v5868_v17, %v613_v43  ;;  %v746_v19 = vsel %vm193_vm1, %v5876_v37, %v615_v12 }
 0x1ee   :  { %v1194_v44 = vpack.c.bf16 %v4328_v52, %v4324_v39  ;;  %v1196_v15 = vpack.c.bf16 %v4330_v46, %v4326_v59 }
 0x1ef   :  { %v617_v56 = vpop.permute.xlu1 %616  ;;  %v619_v42 = vpop.permute.xlu0 %618 }
 0x1f0   :  { %1491 = vmatmul.mubr.bf16.vlgmr.msra.gmra.mrb[0].mxu1 %v1194_v44  ;;  %1540 = vmatmul.mubr.bf16.vlgmr.msra.gmra.mrb[16].mxu0 %v1196_v15  ;;  %v747_v21 = vsel %vm193_vm1, %v5896_v61, %v617_v56  ;;  %v748_v17 = vsel %vm193_vm1, %v5903_v63, %v619_v42 }
 0x1f3   :  { %v520_v32 = vpop.permute.xlu1 %519  ;;  %v522_v55 = vpop.permute.xlu0 %521 }
 0x1f4   :  { %v722_v23 = vsel %vm193_vm1, %v5915_v6, %v520_v32  ;;  %v723_v63 = vsel %vm193_vm1, %v5922_v4, %v522_v55 }
 0x1f7   :  { %v524_v9 = vpop.permute.xlu1 %523  ;;  %v645_v54 = vpop.permute.xlu0 %644 }
 0x1f8   :  { %v753_v0 = vsel %vm725_vm5, %v745_v48, %v645_v54  ;;  %v6207_v43 = vsel %vm193_vm1, %v5932_v18, %v524_v9 }
 0x1fb   :  { %v647_v1 = vpop.permute.xlu1 %646  ;;  %v649_v2 = vpop.permute.xlu0 %648 }
 0x1fc   :  { %v754_v35 = vsel %vm725_vm5, %v746_v19, %v647_v1  ;;  %v755_v10 = vsel %vm725_vm5, %v747_v21, %v649_v2 }
 0x1ff   :  { %v651_v29 = vpop.permute.xlu1 %650  ;;  %v699_v25 = vpop.permute.xlu0 %698 }
 0x200   :  { %v756_v47 = vsel %vm725_vm5, %v748_v17, %v651_v29  ;;  %v6211_v11 = vsel %vm193_vm1, %v5950_v16, %v699_v25 }
 0x203   :  { %v548_v3 = vpop.permute.xlu1 %547  ;;  %v550_v5 = vpop.permute.xlu0 %549 }
 0x204   :  { %v730_v6 = vsel %vm725_vm5, %v722_v23, %v548_v3  ;;  %v731_v52 = vsel %vm725_vm5, %v723_v63, %v550_v5 }
 0x207   :  { %v552_v8 = vpop.permute.xlu1 %551  ;;  %v677_v20 = vpop.permute.xlu0 %676 }
 0x208   :  { %v761_v40 = vsel %vm733_vm6, %v753_v0, %v677_v20  ;;  %v732_v59 = vsel %vm725_vm5, %v6207_v43, %v552_v8 }
 0x209   :  { %v973_v22 = vrot.slane %v761_v40, 1  ;;  %v1007_v49 = vrot.slane %v761_v40, 2 }
 0x20b   :  { %v679_v34 = vpop.permute.xlu1 %678  ;;  %v681_v36 = vpop.permute.xlu0 %680  ;;  %v1091_v60 = vsel %vm464_vm2, %v761_v40, %v973_v22 }
 0x20c   :  { %v762_v24 = vsel %vm733_vm6, %v754_v35, %v679_v34  ;;  %v763_v37 = vsel %vm733_vm6, %v755_v10, %v681_v36  ;;  %v1109_v4 = vsel %vm1099_vm7, %v1091_v60, %v1007_v49 }
 0x20d   :  { %v975_v50 = vrot.slane %v762_v24, 1  ;;  %v977_v12 = vrot.slane %v763_v37, 1  ;;  %v1009_v44 = vrot.slane %v762_v24, 2  ;;  %v1011_v15 = vrot.slane %v763_v37, 2 }
 0x20f   :  { %v683_v7 = vpop.permute.xlu1 %682  ;;  %v707_v57 = vpop.permute.xlu0 %706  ;;  %v1093_v56 = vsel %vm464_vm2, %v762_v24, %v975_v50  ;;  %v1095_v9 = vsel %vm464_vm2, %v763_v37, %v977_v12 }
 0x210   :  { %v764_v61 = vsel %vm733_vm6, %v756_v47, %v683_v7  ;;  %v768_v3 = vsel %vm725_vm5, %v6211_v11, %v707_v57 }
 0x211   :  { %v979_v46 = vrot.slane %v764_v61, 1  ;;  %v1013_v54 = vrot.slane %v764_v61, 2 }
 0x213   :  { %v576_v14 = vpop.permute.xlu1 %575  ;;  %v578_v53 = vpop.permute.xlu0 %577  ;;  %v1097_v25 = vsel %vm464_vm2, %v764_v61, %v979_v46 }
 0x214   :  { %v738_v16 = vsel %vm733_vm6, %v730_v6, %v576_v14  ;;  %v739_v34 = vsel %vm733_vm6, %v731_v52, %v578_v53  ;;  %v1111_v14 = vsel %vm1099_vm7, %v1093_v56, %v1009_v44  ;;  %v1115_v57 = vsel %vm1099_vm7, %v1097_v25, %v1013_v54 }
 0x215   :  { %v974_v20 = vrot.slane %v738_v16, 1  ;;  %v976_v35 = vrot.slane %v739_v34, 1  ;;  %v1010_v52 = vrot.slane %v739_v34, 2 }
 0x217   :  { %v580_v58 = vpop.permute.xlu1 %579  ;;  %v715_v62 = vpop.permute.xlu0 %714 }
 0x21b   :  { %v850_v13 = vpop.permute.xlu1 %849  ;;  %v852_v30 = vpop.permute.xlu0 %851 }
 0x21c   :  { %v931_v18 = vsel %vm725_vm5, %v745_v48, %v850_v13  ;;  %v932_v42 = vsel %vm725_vm5, %v746_v19, %v852_v30  ;;  %v740_v13 = vsel %vm733_vm6, %v732_v59, %v580_v58  ;;  %v770_v30 = vsel %vm733_vm6, %v768_v3, %v715_v62 }
 0x21d   :  { %v1092_v58 = vsel %vm464_vm2, %v738_v16, %v974_v20  ;;  %v978_v62 = vrot.slane %v740_v13, 1  ;;  %v980_v24 = vrot.slane %v770_v30, 1  ;;  %v1094_v59 = vsel %vm464_vm2, %v739_v34, %v976_v35 }
 0x21e   :  { %v1112_v54 = vsel %vm1099_vm7, %v1094_v59, %v1010_v52 }
 0x21f   :  { %v854_v31 = vpop.permute.xlu1 %853  ;;  %v856_v41 = vpop.permute.xlu0 %855 }
 0x220   :  { %v933_v1 = vsel %vm725_vm5, %v747_v21, %v854_v31  ;;  %v934_v48 = vsel %vm725_vm5, %v748_v17, %v856_v41  ;;  %v1113_v31 = vsel %vm1099_vm7, %v1095_v9, %v1011_v15  ;;  %v1008_v21 = vrot.slane %v738_v16, 2 }
 0x221   :  { %v1096_v15 = vsel %vm464_vm2, %v740_v13, %v978_v62 }
 0x222   :  { %v1110_v44 = vsel %vm1099_vm7, %v1092_v58, %v1008_v21 }
 0x223   :  { %v6189_v33 = vpop.permute.xlu1 %789  ;;  %v792_v51 = vpop.permute.xlu0 %791 }
 0x224   :  { %v918_v17 = vsel %vm725_vm5, %v722_v23, %v6189_v33  ;;  %v919_v47 = vsel %vm725_vm5, %v723_v63, %v792_v51  ;;  %v1012_v33 = vrot.slane %v740_v13, 2  ;;  %v4929_v13 = vpack.i.bf16 %v5300_v28, %v5294_v26 }
 0x226   :  { %4930 = vrot.lane.b32.xlu1 %v4929_v13, %s5171_s12 }
 0x227   :  { %v6201_v45 = vpop.permute.xlu1 %793  ;;  %v882_v39 = vpop.permute.xlu0 %881 }
 0x228   :  { %v939_v32 = vsel %vm733_vm6, %v931_v18, %v882_v39  ;;  %v1014_v18 = vrot.slane %v770_v30, 2  ;;  %v920_v56 = vsel %vm725_vm5, %v6207_v43, %v6201_v45  ;;  %v1114_v45 = vsel %vm1099_vm7, %v1096_v15, %v1012_v33 }
 0x229   :  { %v1057_v36 = vrot.slane %v939_v32, 3 }
 0x22b   :  { %v884_v55 = vpop.permute.xlu1 %883  ;;  %v886_v29 = vpop.permute.xlu0 %885  ;;  %v1127_v41 = vsel %vm1117_vm8, %v1109_v4, %v1057_v36 }
 0x22c   :  { %v940_v2 = vsel %vm733_vm6, %v932_v42, %v884_v55  ;;  %v941_v8 = vsel %vm733_vm6, %v933_v1, %v886_v29  ;;  %v1098_v42 = vsel %vm464_vm2, %v770_v30, %v980_v24 }
 0x22d   :  { %v1059_v5 = vrot.slane %v940_v2, 3  ;;  %v1061_v7 = vrot.slane %v941_v8, 3  ;;  %v1116_v3 = vsel %vm1099_vm7, %v1098_v42, %v1014_v18 }
 0x22f   :  { %v888_v0 = vpop.permute.xlu1 %887  ;;  %v1129_v40 = vsel %vm1117_vm8, %v1111_v14, %v1059_v5  ;;  %v904_v53 = vpop.permute.xlu0 %903  ;;  %v1131_v22 = vsel %vm1117_vm8, %v1113_v31, %v1061_v7 }
 0x230   :  { %v942_v19 = vsel %vm733_vm6, %v934_v48, %v888_v0  ;;  %v4333_v61 = vcombine.low %v1127_v41, %v1129_v40  ;;  %v4335_v39 = vcombine.low %v1129_v40, %v1131_v22  ;;  %v944_v32 = vsel %vm725_vm5, %v6211_v11, %v904_v53 }
 0x231   :  { %v1063_v10 = vrot.slane %v942_v19, 3 }
 0x233   :  { %v1133_v37 = vsel %vm1117_vm8, %v1115_v57, %v1063_v10  ;;  %v814_v49 = vpop.permute.xlu1 %813  ;;  %v816_v50 = vpop.permute.xlu0 %815 }
 0x234   :  { %v924_v60 = vsel %vm733_vm6, %v918_v17, %v814_v49  ;;  %v4337_v12 = vcombine.low %v1131_v22, %v1133_v37  ;;  %v4339_v6 = vcombine.low %v1133_v37, %v6103_v38  ;;  %v925_v4 = vsel %vm733_vm6, %v919_v47, %v816_v50 }
 0x235   :  { %v1058_v46 = vrot.slane %v924_v60, 3  ;;  %v1060_v23 = vrot.slane %v925_v4, 3 }
 0x236   :  { %v1199_v51 = vpack.c.bf16 %v4337_v12, %v4333_v61  ;;  %v1201_v63 = vpack.c.bf16 %v4339_v6, %v4335_v39 }
 0x237   :  { %v818_v16 = vpop.permute.xlu1 %817  ;;  %v912_v9 = vpop.permute.xlu0 %911  ;;  %v1128_v1 = vsel %vm1117_vm8, %v1110_v44, %v1058_v46  ;;  %v1130_v43 = vsel %vm1117_vm8, %v1112_v54, %v1060_v23 }
 0x238   :  { %v926_v55 = vsel %vm733_vm6, %v920_v56, %v818_v16  ;;  %1498 = vmatprep.mubr.bf16.mxu1 %v1199_v51  ;;  %1547 = vmatprep.mubr.bf16.mxu0 %v1201_v63  ;;  %v946_v29 = vsel %vm733_vm6, %v944_v32, %v912_v9  ;;  %v4332_v8 = vcombine.low %v6103_v38, %v1128_v1 }
 0x239   :  { %v1062_v2 = vrot.slane %v926_v55, 3  ;;  %v1064_v25 = vrot.slane %v946_v29, 3  ;;  %v4334_v34 = vcombine.low %v1128_v1, %v1130_v43 }
 0x23b   :  { %v1132_v11 = vsel %vm1117_vm8, %v1114_v45, %v1062_v2  ;;  %v1134_v5 = vsel %vm1117_vm8, %v1116_v3, %v1064_v25 }
 0x23c   :  { %v4336_v20 = vcombine.low %v1130_v43, %v1132_v11  ;;  %v4338_v36 = vcombine.low %v1132_v11, %v1134_v5 }
 0x23e   :  { %v1198_v7 = vpack.c.bf16 %v4336_v20, %v4332_v8  ;;  %v1200_v14 = vpack.c.bf16 %v4338_v36, %v4334_v34 }
 0x240   :  { %1499 = vmatmul.mubr.bf16.gmra.mrb[4].mxu1 %v1198_v7  ;;  %1548 = vmatmul.mubr.bf16.gmra.mrb[20].mxu0 %v1200_v14 }
 0x2c3   :  { %v4601_v30 = vpop.f32.mrb[0].mxu1  ;;  %v4629_v48 = vpop.f32.mrb[16].mxu0 }
 0x2c4   :  { %v4602_v0 = vpop.f32.mrb[1].mxu1  ;;  %v4630_v57 = vpop.f32.mrb[17].mxu0 }
 0x2c5   :  { %v4603_v31 = vadd.f32 %v4602_v0, %v4601_v30  ;;  %v4604_v40 = vpop.f32.mrb[2].mxu1  ;;  %v4631_v19 = vadd.f32 %v4630_v57, %v4629_v48  ;;  %v4632_v38 = vpop.f32.mrb[18].mxu0 }
 0x2c6   :  { %v4605_v53 = vpop.f32.mrb[3].mxu1  ;;  %v4633_v35 = vpop.f32.mrb[19].mxu0 }
 0x2c7   :  { %v4606_v21 = vadd.f32 %v4605_v53, %v4604_v40  ;;  %v6271_v22 = vadd.f32 %v4631_v19, %v4603_v31  ;;  %v4634_v10 = vadd.f32 %v4633_v35, %v4632_v38  ;;  %v4372_v38 = vld [vmem:[%s7100_s7] ss:$0 sm:$0xff] }
 0x2c9   :  { %v1569_v58 = vmul.f32 %v6271_v22, %v6271_v22  ;;  %v1545_v62 = vadd.f32 %v4634_v10, %v4606_v21  ;;  %v1556_v24 = vsel %vm725_vm5, %v6271_v22, 0.0 }
 0x2cb   :  { %v1557_v41 = vsel %vm725_vm5, %v1545_v62, 0.0  ;;  %v1570_v17 = vmul.f32 %v1545_v62, %v1545_v62  ;;  %v1573_v37 = vsel %vm725_vm5, %v1569_v58, 0.0  ;;  %v4373_v58 = vld [vmem:[%s7101_s8] ss:$0 sm:$0xff] }
 0x2cc   :  { %v1558_v47 = vadd.f32 %v1557_v41, %v1556_v24 }
 0x2cd   :  { %v1574_v49 = vsel %vm725_vm5, %v1570_v17, 0.0 }
 0x2ce   :  { %v1575_v61 = vadd.f32 %v1574_v49, %v1573_v37 }
 0x313   :  { %v4607_v60 = vpop.f32.mrb[4].mxu1  ;;  %v4635_v50 = vpop.f32.mrb[20].mxu0 }
 0x314   :  { %v4608_v12 = vpop.f32.mrb[5].mxu1  ;;  %v4636_v6 = vpop.f32.mrb[21].mxu0 }
 0x315   :  { %v4609_v39 = vadd.f32 %v4608_v12, %v4607_v60  ;;  %v4610_v52 = vpop.f32.mrb[6].mxu1  ;;  %v4637_v59 = vadd.f32 %v4636_v6, %v4635_v50  ;;  %v4638_v46 = vpop.f32.mrb[22].mxu0 }
 0x316   :  { %v4611_v4 = vpop.f32.mrb[7].mxu1  ;;  %v4639_v23 = vpop.f32.mrb[23].mxu0 }
 0x317   :  { %v4612_v33 = vadd.f32 %v4611_v4, %v4610_v52  ;;  %v1550_v51 = vadd.f32 %v4637_v59, %v4609_v39  ;;  %v4640_v63 = vadd.f32 %v4639_v23, %v4638_v46  ;;  %v4967_v52 = vld [vmem:[%s7102_s3 + $0x40] sm:$0xff]  }
 0x318   :  { %4641 = vmatprep.subr.bf16.mxu1 %v4967_v52  ;;  %v4986_v52 = vld [vmem:[%s7102_s3 + $0xe0] sm:$0xff]  }
 0x319   :  { %v1559_v44 = vsel %vm725_vm5, %v1550_v51, 0.0  ;;  %v1571_v15 = vmul.f32 %v1550_v51, %v1550_v51  ;;  %v1553_v18 = vadd.f32 %v4640_v63, %v4612_v33  ;;  %v4968_v63 = vld [vmem:[%s7102_s3] sm:$0xff]  }
 0x31a   :  { %v1560_v56 = vadd.f32 %v1559_v44, %v1558_v47  ;;  %v4969_v44 = vld [vmem:[%s7102_s3 + $0x48] sm:$0xff]   ;;  %4642 = vmatpush3.bf16.msra.mxu1 %v4968_v63 }
 0x31b   :  { %v1576_v16 = vsel %vm725_vm5, %v1571_v15, 0.0  ;;  %v1561_v42 = vsel %vm725_vm5, %v1553_v18, 0.0  ;;  %v1572_v32 = vmul.f32 %v1553_v18, %v1553_v18  ;;  %4643 = vmatprep.subr.bf16.mxu1 %v4969_v44  ;;  %v4991_v44 = vld [vmem:[%s7102_s3 + $0x30] sm:$0xff]  }
 0x31c   :  { %v1577_v55 = vadd.f32 %v1576_v16, %v1575_v61  ;;  %v1562_v9 = vadd.f32 %v1561_v42, %v1560_v56 }
 0x31d   :  { %v1578_v54 = vsel %vm725_vm5, %v1572_v32, 0.0 }
 0x31e   :  { %v1563_v1 = vrot.slane %v1562_v9, 4  ;;  %v1579_v2 = vadd.f32 %v1578_v54, %v1577_v55 }
 0x320   :  { %v1564_v29 = vadd.f32 %v1563_v1, %v1562_v9  ;;  %v1580_v45 = vrot.slane %v1579_v2, 4 }
 0x322   :  { %v1565_v43 = vrot.slane %v1564_v29, 2  ;;  %v1581_v25 = vadd.f32 %v1580_v45, %v1579_v2  ;;  %v4970_v2 = vld [vmem:[%s7102_s3 + $0xc0] sm:$0xff]  }
 0x323   :  { %4663 = vmatprep.subr.bf16.mxu0 %v4970_v2  ;;  %v4999_v2 = vld [vmem:[%s7102_s3 + $0xb8] sm:$0xff]  }
 0x324   :  { %v1566_v3 = vadd.f32 %v1565_v43, %v1564_v29  ;;  %v1582_v11 = vrot.slane %v1581_v25, 2  ;;  %v4971_v29 = vld [vmem:[%s7102_s3 + $0x8] sm:$0xff]  }
 0x325   :  { %4644 = vmatpush3.bf16.msra.mxu1 %v4971_v29  ;;  %v5002_v29 = vld [vmem:[%s7102_s3 + $0x1c0] sm:$0xff]  }
 0x326   :  { %v1567_v5 = vrot.slane %v1566_v3, 1  ;;  %v1583_v8 = vadd.f32 %v1582_v11, %v1581_v25 }
 0x328   :  { %v1568_v20 = vadd.f32 %v1567_v5, %v1566_v3  ;;  %v1584_v34 = vrot.slane %v1583_v8, 1 }
 0x32a   :  { %v1585_v36 = vadd.f32 %v1584_v34, %v1583_v8  ;;  %v1586_v7 = vmul.f32 0.03125, %v1568_v20  ;;  %v4972_v8 = vld [vmem:[%s7102_s3 + $0x80] sm:$0xff]   ;;  %v4973_v20 = vld [vmem:[%s7102_s3 + $0x50] sm:$0xff]  }
 0x32b   :  { %4664 = vmatpush3.bf16.msra.mxu0 %v4972_v8  ;;  %4645 = vmatprep.subr.bf16.mxu1 %v4973_v20 }
 0x32c   :  { %v1587_v14 = vmul.f32 0.03125, %v1585_v36  ;;  %v1588_v13 = vmul.f32 %v1586_v7, %v1586_v7  ;;  %v1593_v30 = vsub.f32 %v1553_v18, %v1586_v7  ;;  %v1591_v48 = vsub.f32 %v1545_v62, %v1586_v7 }
 0x32d   :  { %v1590_v0 = vsub.f32 %v6271_v22, %v1586_v7  ;;  %v1592_v31 = vsub.f32 %v1550_v51, %v1586_v7 }
 0x32e   :  { %v1589_v57 = vsub.f32 %v1587_v14, %v1588_v13 }
 0x330   :  { %v1594_v40 = vadd.f32 1e-05, %v1589_v57 }
 0x332   :  { %5161 = vrsqrt.f32 %v1594_v40  ;;  %v4976_v40 = vld [vmem:[%s7102_s3 + $0x88] sm:$0xff]  }
 0x33c   :  { %v5162_v19 = vpop.eup %5161 }
 0x33d   :  { %v1599_v53 = vmul.f32 %v5162_v19, %v1593_v30  ;;  %v1597_v21 = vmul.f32 %v5162_v19, %v1591_v48  ;;  %v1596_v35 = vmul.f32 %v5162_v19, %v1590_v0  ;;  %v1598_v10 = vmul.f32 %v5162_v19, %v1592_v31  ;;  %v4974_v48 = vld [vmem:[%s7102_s3 + $0xc8] sm:$0xff]   ;;  %v4975_v0 = vld [vmem:[%s7102_s3 + $0x10] sm:$0xff]  }
 0x33e   :  { %4665 = vmatprep.subr.bf16.mxu0 %v4974_v48  ;;  %4646 = vmatpush3.bf16.msra.mxu1 %v4975_v0 }
 0x33f   :  { %v1610_v62 = vmul.f32 %v4372_v38, %v1599_v53  ;;  %v1608_v24 = vmul.f32 %v4372_v38, %v1597_v21  ;;  %v1607_v22 = vmul.f32 %v4372_v38, %v1596_v35  ;;  %v1609_v41 = vmul.f32 %v4372_v38, %v1598_v10  ;;  %v4977_v38 = vld [vmem:[%s7102_s3 + $0x58] sm:$0xff]   ;;  %4666 = vmatpush3.bf16.msra.mxu0 %v4976_v40  ;;  %v4978_v21 = vld [vmem:[%s7102_s3 + $0xd0] sm:$0xff]  }
 0x340   :  { %4647 = vmatprep.subr.bf16.mxu1 %v4977_v38  ;;  %v4979_v10 = vld [vmem:[%s7102_s3 + $0x18] sm:$0xff]   ;;  %4667 = vmatprep.subr.bf16.mxu0 %v4978_v21 }
 0x341   :  { %v1621_v17 = vadd.f32 %v4373_v58, %v1610_v62  ;;  %v1619_v47 = vadd.f32 %v4373_v58, %v1608_v24  ;;  %v1618_v37 = vadd.f32 %v4373_v58, %v1607_v22  ;;  %v1620_v49 = vadd.f32 %v4373_v58, %v1609_v41  ;;  %v4980_v24 = vld [vmem:[%s7102_s3 + $0x90] sm:$0xff]   ;;  %v4981_v41 = vld [vmem:[%s7102_s3 + $0x60] sm:$0xff]  }
 0x342   :  { %4648 = vmatpush3.bf16.msra.mxu1 %v4979_v10 }
 0x343   :  { %vm1623_vm1 = vcmp.ge.f32.partialorder %v1619_v47, 0.0  ;;  %v1627_v61 = vmul.f32 0.2, %v1619_v47  ;;  %vm1622_vm9 = vcmp.ge.f32.partialorder %v1618_v37, 0.0  ;;  %v1626_v60 = vmul.f32 0.2, %v1618_v37  ;;  %4668 = vmatpush3.bf16.msra.mxu0 %v4980_v24  ;;  %4649 = vmatprep.subr.bf16.mxu1 %v4981_v41 }
 0x344   :  { %vm1625_vm10 = vcmp.ge.f32.partialorder %v1621_v17, 0.0  ;;  %v1629_v50 = vmul.f32 0.2, %v1621_v17  ;;  %vm1624_vm11 = vcmp.ge.f32.partialorder %v1620_v49, 0.0  ;;  %v1628_v12 = vmul.f32 0.2, %v1620_v49 }
 0x345   :  { %v6291_v39 = vsel %vm1623_vm1, %v1619_v47, %v1627_v61  ;;  %v1630_v6 = vsel %vm1622_vm9, %v1618_v37, %v1626_v60  ;;  %v4982_v47 = vld [vmem:[%s7102_s3 + $0xd8] sm:$0xff]   ;;  %v4983_v61 = vld [vmem:[%s7102_s3 + $0x20] sm:$0xff]  }
 0x346   :  { %v1644_v59 = vrot.slane %v6291_v39, 7  ;;  %v1642_v46 = vrot.slane %v1630_v6, 7  ;;  %v1633_v4 = vsel %vm1625_vm10, %v1621_v17, %v1629_v50  ;;  %v1632_v33 = vsel %vm1624_vm11, %v1620_v49, %v1628_v12  ;;  %4669 = vmatprep.subr.bf16.mxu0 %v4982_v47  ;;  %v4984_v50 = vld [vmem:[%s7102_s3 + $0x98] sm:$0xff]   ;;  %4650 = vmatpush3.bf16.msra.mxu1 %v4983_v61 }
 0x347   :  { %v1648_v23 = vrot.slane %v1633_v4, 7  ;;  %v1646_v51 = vrot.slane %v1632_v33, 7  ;;  %v1640_v56 = vcombine.high %v1632_v33, %v1632_v33  ;;  %v1638_v16 = vcombine.high %v1630_v6, %v1630_v6  ;;  %4670 = vmatpush3.bf16.msra.mxu0 %v4984_v50 }
 0x348   :  { %v1660_v15 = vsel %vm464_vm2, 0.0, %v1644_v59  ;;  %v1658_v18 = vsel %vm464_vm2, 0.0, %v1642_v46  ;;  %v1641_v31 = vcombine.high %v1633_v4, %v1633_v4  ;;  %v1639_v57 = vcombine.high %v6291_v39, %v6291_v39  ;;  %v4985_v39 = vld [vmem:[%s7102_s3 + $0x68] sm:$0xff]   ;;  %4671 = vmatprep.subr.bf16.mxu0 %v4986_v52  ;;  %v4988_v4 = vld [vmem:[%s7102_s3 + $0xa0] sm:$0xff]  }
 0x349   :  { %v6306_v42 = vsel %vm1666_vm12, %v1660_v15, 0.0  ;;  %v6309_v32 = vsel %vm1666_vm12, %v1658_v18, 0.0  ;;  %v1664_v55 = vsel %vm464_vm2, 0.0, %v1648_v23  ;;  %v1662_v9 = vsel %vm464_vm2, 0.0, %v1646_v51  ;;  %v4987_v59 = vld [vmem:[%s7102_s3 + $0x28] sm:$0xff]   ;;  %4651 = vmatprep.subr.bf16.mxu1 %v4985_v39  ;;  %v4989_v23 = vld [vmem:[%s7102_s3 + $0x70] sm:$0xff]  }
 0x34a   :  { %v1709_v54 = vrot.slane %v6306_v42, 1  ;;  %v1708_v1 = vrot.slane %v6309_v32, 1  ;;  %v6322_v45 = vsel %vm1666_vm12, %v1664_v55, 0.0  ;;  %v6325_v43 = vsel %vm1666_vm12, %v1662_v9, 0.0  ;;  %4652 = vmatpush3.bf16.msra.mxu1 %v4987_v59  ;;  %v4990_v51 = vld [vmem:[%s7102_s3 + $0xe8] sm:$0xff]   ;;  %v4995_v55 = vld [vmem:[%s7102_s3 + $0x38] sm:$0xff]  }
 0x34b   :  { %v1647_v25 = vrot.slane %v1640_v56, 7  ;;  %v1643_v3 = vrot.slane %v1638_v16, 7  ;;  %v1711_v11 = vrot.slane %v6322_v45, 1  ;;  %v1710_v5 = vrot.slane %v6325_v43, 1  ;;  %4672 = vmatpush3.bf16.msra.mxu0 %v4988_v4  ;;  %4653 = vmatprep.subr.bf16.mxu1 %v4989_v23  ;;  %v4992_v18 = vld [vmem:[%s7102_s3 + $0xa8] sm:$0xff]   ;;  %v4993_v56 = vld [vmem:[%s7102_s3 + $0x78] sm:$0xff]  }
 0x34c   :  { %1714 = vrot.lane.b32.xlu1 %v1709_v54, %s5171_s12  ;;  %1712 = vrot.lane.b32.xlu0 %v1708_v1, %s5171_s12  ;;  %v1733_v7 = vrot.slane %v6306_v42, 3  ;;  %v1732_v14 = vrot.slane %v6309_v32, 3  ;;  %v1649_v35 = vrot.slane %v1641_v31, 7  ;;  %v1645_v58 = vrot.slane %v1639_v57, 7  ;;  %v4994_v16 = vld [vmem:[%s7102_s3 + $0xf0] sm:$0xff]   ;;  %v4997_v54 = vld [vmem:[%s7102_s3 + $0xf8] sm:$0xff]  }
 0x34d   :  { %v1663_v34 = vsel %vm464_vm2, 0.0, %v1647_v25  ;;  %v1659_v36 = vsel %vm464_vm2, 0.0, %v1643_v3  ;;  %v1735_v37 = vrot.slane %v6322_v45, 3  ;;  %v1734_v60 = vrot.slane %v6325_v43, 3  ;;  %4673 = vmatprep.subr.bf16.mxu0 %v4990_v51  ;;  %v4996_v9 = vld [vmem:[%s7102_s3 + $0xb0] sm:$0xff]   ;;  %v4998_v1 = vld [vmem:[%s7102_s3 + $0x140] sm:$0xff]   ;;  %v4931_v25 = vpop.permute.xlu1 %4930 }
 0x34e   :  { %v6344_v13 = vsel %vm1666_vm12, %v1663_v34, 0.0  ;;  %v6347_v30 = vsel %vm1666_vm12, %v1659_v36, 0.0  ;;  %v1665_v17 = vsel %vm464_vm2, 0.0, %v1649_v35  ;;  %v1661_v49 = vsel %vm464_vm2, 0.0, %v1645_v58  ;;  %4654 = vmatpush3.bf16.msra.mxu1 %v4991_v44 }
 0x34f   :  { %v1678_v19 = vrot.slane %v6344_v13, 1  ;;  %v1677_v53 = vrot.slane %v6347_v30, 1  ;;  %v1694_v62 = vrot.slane %v6344_v13, 3  ;;  %v1693_v22 = vrot.slane %v6347_v30, 3  ;;  %4674 = vmatpush3.bf16.msra.mxu0 %v4992_v18  ;;  %4655 = vmatprep.subr.bf16.mxu1 %v4993_v56 }
 0x350   :  { %1718 = vrot.lane.b32.xlu1 %v1711_v11, %s5171_s12  ;;  %1716 = vrot.lane.b32.xlu0 %v1710_v5, %s5171_s12  ;;  %v6399_v12 = vsel %vm1666_vm12, %v1665_v17, 0.0  ;;  %v6405_v6 = vsel %vm1666_vm12, %v1661_v49, 0.0  ;;  %v4933_v5 = vunpack.i.h.bf16 %v4931_v25  ;;  %v4932_v8 = vunpack.i.l.bf16 %v4931_v25 }
 0x351   :  { %v1751_v46 = vrot.slane %v6399_v12, 1  ;;  %v1750_v33 = vrot.slane %v6405_v6, 1  ;;  %v1763_v63 = vrot.slane %v6399_v12, 3  ;;  %v1762_v15 = vrot.slane %v6405_v6, 3  ;;  %4675 = vmatprep.subr.bf16.mxu0 %v4994_v16 }
 0x352   :  { %4656 = vmatpush3.bf16.msra.mxu1 %v4995_v55  ;;  %v1773_v36 = vsel %vm725_vm5, %v5298_v27, %v4933_v5  ;;  %v1725_v0 = vrot.slane %v6306_v42, 2  ;;  %v1724_v31 = vrot.slane %v6309_v32, 2  ;;  %v5173_v57 = vmov 1983009808  }
 0x353   :  { %4676 = vmatpush3.bf16.msra.mxu0 %v4996_v9  ;;  %4685 = vmatprep.subr.bf16.mxu1 %v4998_v1  ;;  %v1881_v40 = vunpack.c.l.s4 %v5173_v57  ;;  %v1807_v21 = vrot.slane %v1773_v36, 1  ;;  %v1688_v23 = vrot.slane %v6347_v30, 2 }
 0x354   :  { %1738 = vrot.lane.b32.xlu1 %v1733_v7, %s5171_s12  ;;  %1736 = vrot.lane.b32.xlu0 %v1732_v14, %s5171_s12  ;;  %v1770_v7 = vsel %vm725_vm5, 0.0, %v4932_v8 }
 0x355   :  { %4677 = vmatprep.subr.bf16.mxu0 %v4997_v54  ;;  %v1806_v35 = vrot.slane %v1770_v7, 1  ;;  %v1843_v50 = vsel %vm464_vm2, %v1773_v36, %v1807_v21 }
 0x357   :  { %4678 = vmatpush3.bf16.msra.mxu0 %v4999_v2  ;;  %v1842_v39 = vsel %vm464_vm2, %v1770_v7, %v1806_v35  ;;  %v1726_v2 = vrot.slane %v6325_v43, 2 }
 0x358   :  { %1683 = vrot.lane.b32.xlu1 %v1678_v19, %s5171_s12  ;;  %1681 = vrot.lane.b32.xlu0 %v1677_v53, %s5171_s12  ;;  %v1883_v19 = vlaneseq  ;;  %v1878_v55 = vcombine.low %v1842_v39, %v1843_v50 }
 0x359   :  { %4707 = vmatprep.subr.bf16.mxu0 %v5002_v29 }
 0x35a   :  { %v1884_v49 = vshrl.u32 %v1883_v19, 7 }
 0x35c   :  { %1699 = vrot.lane.b32.xlu1 %v1694_v62, %s5171_s12  ;;  %1697 = vrot.lane.b32.xlu0 %v1693_v22, %s5171_s12 }
 0x360   :  { %1742 = vrot.lane.b32.xlu1 %v1735_v37, %s5171_s12  ;;  %1740 = vrot.lane.b32.xlu0 %v1734_v60, %s5171_s12  ;;  %v1882_v37 = vunpack.c.0.s8 %v1881_v40 }
 0x362   :  { %v6489_v16 = vsub.s32 %v1882_v37, %v1884_v49 }
 0x364   :  { %1754 = vrot.lane.b32.xlu1 %v1751_v46, %s5171_s12  ;;  %1752 = vrot.lane.b32.xlu0 %v1750_v33, %s5171_s12  ;;  %v1689_v33 = vrot.slane %v6344_v13, 2 }
 0x368   :  { %1766 = vrot.lane.b32.xlu1 %v1763_v63, %s5171_s12  ;;  %1764 = vrot.lane.b32.xlu0 %v1762_v15, %s5171_s12 }
 0x3be   :  { %v1715_v3 = vpop.permute.xlu1 %1714  ;;  %v1713_v11 = vpop.permute.xlu0 %1712 }
 0x3bf   :  { %v1777_v14 = vsel %vm725_vm5, %v6306_v42, %v1715_v3  ;;  %v1776_v48 = vsel %vm725_vm5, %v6309_v32, %v1713_v11 }
 0x3c0   :  { %v1812_v62 = vrot.slane %v1777_v14, 1  ;;  %v1808_v24 = vrot.slane %v1776_v48, 1 }
 0x3c2   :  { %v1719_v20 = vpop.permute.xlu1 %1718  ;;  %v1717_v34 = vpop.permute.xlu0 %1716  ;;  %v1848_v52 = vsel %vm464_vm2, %v1777_v14, %v1812_v62  ;;  %v1844_v59 = vsel %vm464_vm2, %v1776_v48, %v1808_v24 }
 0x3c3   :  { %v1779_v51 = vsel %vm725_vm5, %v6322_v45, %v1719_v20  ;;  %v1778_v63 = vsel %vm725_vm5, %v6325_v43, %v1717_v34 }
 0x3c4   :  { %v1820_v29 = vrot.slane %v1779_v51, 1  ;;  %v1816_v25 = vrot.slane %v1778_v63, 1 }
 0x3c6   :  { %v1739_v38 = vpop.permute.xlu1 %1738  ;;  %v1737_v53 = vpop.permute.xlu0 %1736  ;;  %v1856_v40 = vsel %vm464_vm2, %v1779_v51, %v1820_v29  ;;  %v1852_v19 = vsel %vm464_vm2, %v1778_v63, %v1816_v25  ;;  %v5000_v25 = vld [vmem:[%s7102_s3 + $0x100] sm:$0xff]  }
 0x3c7   :  { %v1781_v10 = vsel %vm725_vm5, %v1725_v0, %v1739_v38  ;;  %v1780_v58 = vsel %vm725_vm5, %v1724_v31, %v1737_v53  ;;  %v1886_v0 = vrot.slane %v1878_v55, %v6489_v16 }
 0x3c8   :  { %v1813_v22 = vrot.slane %v1781_v10, 1  ;;  %v1809_v41 = vrot.slane %v1780_v58, 1 }
 0x3ca   :  { %v1849_v17 = vsel %vm464_vm2, %v1781_v10, %v1813_v22  ;;  %v1845_v42 = vsel %vm464_vm2, %v1780_v58, %v1809_v41  ;;  %v1684_v32 = vpop.permute.xlu1 %1683  ;;  %v1682_v47 = vpop.permute.xlu0 %1681 }
 0x3cb   :  { %v1772_v61 = vsel %vm725_vm5, %v6344_v13, %v1684_v32  ;;  %v1771_v60 = vsel %vm725_vm5, %v6347_v30, %v1682_v47  ;;  %v1896_v46 = vcombine.low %v1848_v52, %v1849_v17  ;;  %v1879_v4 = vcombine.low %v1844_v59, %v1845_v42 }
 0x3cc   :  { %v1818_v44 = vrot.slane %v1772_v61, 1  ;;  %v1810_v15 = vrot.slane %v1771_v60, 1  ;;  %v1727_v30 = vrot.slane %v6322_v45, 2  ;;  %v1759_v32 = vrot.slane %v6399_v12, 2 }
 0x3cd   :  { %v1910_v3 = vrot.slane %v1896_v46, %v6489_v16  ;;  %v1893_v11 = vrot.slane %v1879_v4, %v6489_v16  ;;  %v1758_v47 = vrot.slane %v6405_v6, 2 }
 0x3ce   :  { %v1700_v18 = vpop.permute.xlu1 %1699  ;;  %v1698_v56 = vpop.permute.xlu0 %1697  ;;  %v1854_v5 = vsel %vm464_vm2, %v1772_v61, %v1818_v44  ;;  %v1846_v8 = vsel %vm464_vm2, %v1771_v60, %v1810_v15 }
 0x3cf   :  { %v1775_v9 = vsel %vm725_vm5, %v1689_v33, %v1700_v18  ;;  %v1774_v54 = vsel %vm725_vm5, %v1688_v23, %v1698_v56  ;;  %v4375_v62 = vcombine.low %v1893_v11, %v1910_v3  ;;  %v4379_v24 = vcombine.low %v1910_v3, %v1886_v0 }
 0x3d0   :  { %v1819_v13 = vrot.slane %v1775_v9, 1  ;;  %v1811_v1 = vrot.slane %v1774_v54, 1 }
 0x3d2   :  { %v1855_v20 = vsel %vm464_vm2, %v1775_v9, %v1819_v13  ;;  %v1847_v34 = vsel %vm464_vm2, %v1774_v54, %v1811_v1  ;;  %v1743_v36 = vpop.permute.xlu1 %1742  ;;  %v1741_v7 = vpop.permute.xlu0 %1740 }
 0x3d3   :  { %v1930_v14 = vcombine.low %v1854_v5, %v1855_v20  ;;  %v1895_v45 = vcombine.low %v1846_v8, %v1847_v34  ;;  %v1783_v43 = vsel %vm725_vm5, %v1727_v30, %v1743_v36  ;;  %v1782_v48 = vsel %vm725_vm5, %v1726_v2, %v1741_v7  ;;  %v5001_v20 = vld [vmem:[%s7102_s3 + $0x148] sm:$0xff]  }
 0x3d4   :  { %v1821_v31 = vrot.slane %v1783_v43, 1  ;;  %v1817_v57 = vrot.slane %v1782_v48, 1 }
 0x3d5   :  { %v6507_v38 = vrot.slane %v1930_v14, %v6489_v16  ;;  %v6510_v53 = vrot.slane %v1895_v45, %v6489_v16 }
 0x3d6   :  { %v1857_v21 = vsel %vm464_vm2, %v1783_v43, %v1821_v31  ;;  %v1853_v35 = vsel %vm464_vm2, %v1782_v48, %v1817_v57  ;;  %v1755_v10 = vpop.permute.xlu1 %1754  ;;  %v1753_v58 = vpop.permute.xlu0 %1752  ;;  %v5004_v43 = vld [vmem:[%s7102_s3 + $0x180] sm:$0xff]   ;;  %v5003_v48 = vld [vmem:[%s7102_s3 + $0x108] sm:$0xff]   ;;  %v5005_v57 = vld [vmem:[%s7102_s3 + $0x150] sm:$0xff]  }
 0x3d7   :  { %v1931_v22 = vcombine.low %v1856_v40, %v1857_v21  ;;  %v1921_v41 = vcombine.low %v1852_v19, %v1853_v35  ;;  %v1785_v17 = vsel %vm725_vm5, %v6399_v12, %v1755_v10  ;;  %v1784_v42 = vsel %vm725_vm5, %v6405_v6, %v1753_v58  ;;  %v5008_v21 = vld [vmem:[%s7102_s3 + $0x188] sm:$0xff]   ;;  %v5007_v58 = vld [vmem:[%s7102_s3 + $0x110] sm:$0xff]  }
 0x3d8   :  { %v4374_v37 = vcombine.low %v1886_v0, %v6510_v53  ;;  %v4376_v49 = vcombine.low %v1886_v0, %v6507_v38  ;;  %v1822_v50 = vrot.slane %v1785_v17, 1  ;;  %v1814_v39 = vrot.slane %v1784_v42, 1 }
 0x3d9   :  { %v1945_v61 = vrot.slane %v1931_v22, %v6489_v16  ;;  %v1928_v60 = vrot.slane %v1921_v41, %v6489_v16  ;;  %v1973_v12 = vrot.slane %v4375_v62, %v6489_v16  ;;  %v6528_v6 = vrot.slane %v4379_v24, %v6489_v16  ;;  %v5012_v22 = vld [vmem:[%s7102_s3 + $0x190] sm:$0xff]   ;;  %v5011_v41 = vld [vmem:[%s7102_s3 + $0x118] sm:$0xff]  }
 0x3da   :  { %v1767_v52 = vpop.permute.xlu1 %1766  ;;  %v1765_v59 = vpop.permute.xlu0 %1764  ;;  %v1966_v46 = vrot.slane %v4374_v37, %v6489_v16  ;;  %v1980_v4 = vrot.slane %v4376_v49, %v6489_v16  ;;  %v1858_v55 = vsel %vm464_vm2, %v1785_v17, %v1822_v50  ;;  %v1850_v9 = vsel %vm464_vm2, %v1784_v42, %v1814_v39  ;;  %v5014_v17 = vld [vmem:[%s7102_s3 + $0x1d8] sm:$0xff]   ;;  %v5013_v42 = vld [vmem:[%s7102_s3 + $0x160] sm:$0xff]   ;;  %v5017_v49 = vld [vmem:[%s7102_s3 + $0x168] sm:$0xff]  }
 0x3db   :  { %v1787_v33 = vsel %vm725_vm5, %v1759_v32, %v1767_v52  ;;  %v1786_v23 = vsel %vm725_vm5, %v1758_v47, %v1765_v59  ;;  %v4377_v51 = vcombine.low %v1928_v60, %v1945_v61  ;;  %v4381_v63 = vcombine.low %v1945_v61, %v1886_v0  ;;  %v5006_v0 = vld [vmem:[%s7102_s3 + $0x1c8] sm:$0xff]   ;;  %v5016_v32 = vld [vmem:[%s7102_s3 + $0x198] sm:$0xff]   ;;  %v5015_v47 = vld [vmem:[%s7102_s3 + $0x120] sm:$0xff]  }
 0x3dc   :  { %v1823_v44 = vrot.slane %v1787_v33, 1  ;;  %v1815_v15 = vrot.slane %v1786_v23, 1  ;;  %v1988_v18 = vcombine.low %v1966_v46, %v1980_v4  ;;  %v1989_v56 = vcombine.high %v1966_v46, %v1980_v4  ;;  %v5018_v37 = vld [vmem:[%s7102_s3 + $0x1e0] sm:$0xff]   ;;  %v5019_v60 = vld [vmem:[%s7102_s3 + $0x128] sm:$0xff]   ;;  %v5021_v39 = vld [vmem:[%s7102_s3 + $0x170] sm:$0xff]  }
 0x3dd   :  { %v1987_v54 = vrot.slane %v4377_v51, %v6489_v16  ;;  %v6536_v13 = vrot.slane %v4381_v63, %v6489_v16  ;;  %v5020_v61 = vld [vmem:[%s7102_s3 + $0x1a0] sm:$0xff]   ;;  %v5022_v50 = vld [vmem:[%s7102_s3 + $0x1e8] sm:$0xff]   ;;  %v5023_v59 = vld [vmem:[%s7102_s3 + $0x130] sm:$0xff]  }
 0x3de   :  { %v1859_v1 = vsel %vm464_vm2, %v1787_v33, %v1823_v44  ;;  %v1851_v30 = vsel %vm464_vm2, %v1786_v23, %v1815_v15  ;;  %v2036_v2 = vpack.c.bf16 %v1988_v18, %v1988_v18  ;;  %v2037_v29 = vpack.c.bf16 %v1989_v56, %v1989_v56  ;;  %v5024_v52 = vld [vmem:[%s7102_s3 + $0x1a8] sm:$0xff]   ;;  %v5026_v46 = vld [vmem:[%s7102_s3 + $0x1f0] sm:$0xff]   ;;  %v5025_v4 = vld [vmem:[%s7102_s3 + $0x178] sm:$0xff]  }
 0x3df   :  { %v1947_v3 = vcombine.low %v1858_v55, %v1859_v1  ;;  %v1912_v11 = vcombine.low %v1850_v9, %v1851_v30  ;;  %v1990_v5 = vcombine.low %v1973_v12, %v1987_v54  ;;  %v1991_v8 = vcombine.high %v1973_v12, %v1987_v54  ;;  %v5028_v12 = vld [vmem:[%s7102_s3 + $0x1b0] sm:$0xff]   ;;  %v5027_v33 = vld [vmem:[%s7102_s3 + $0x138] sm:$0xff]   ;;  %v5031_v9 = vld [vmem:[%s7103_s4 + $0x40] sm:$0xff]  }
 0x3e0   :  { %2588 = vmatprep.mubr.bf16.mxu1 %v2037_v29  ;;  %v2027_v34 = vcombine.high %v6528_v6, %v6536_v13  ;;  %v5029_v23 = vld [vmem:[%s7102_s3 + $0x1f8] sm:$0xff]   ;;  %v2026_v44 = vcombine.low %v6528_v6, %v6536_v13  ;;  %v2849_v56 = vpack.c.bf16 %v5294_v26, %v5294_v26  ;;  %v2851_v55 = vpack.c.bf16 %v5300_v28, %v5300_v28  ;;  %v5032_v54 = vld [vmem:[%s7103_s4] sm:$0xff]   ;;  %v5035_v30 = vld [vmem:[%s7103_s4 + $0x48] sm:$0xff]  }
 0x3e1   :  { %v1954_v36 = vrot.slane %v1947_v3, %v6489_v16  ;;  %v1919_v7 = vrot.slane %v1912_v11, %v6489_v16  ;;  %2589 = vmatmul.mubr.bf16.vlgmr.msra.gmra.mrb[8].mxu1 %v2036_v2  ;;  %v2038_v14 = vpack.c.bf16 %v1990_v5, %v1990_v5  ;;  %v2039_v45 = vpack.c.bf16 %v1991_v8, %v1991_v8  ;;  %v5030_v63 = vld [vmem:[%s7102_s3 + $0x1b8] sm:$0xff]   ;;  %v5033_v1 = vld [vmem:[%s7103_s4 + $0xc0] sm:$0xff]   ;;  %v5036_v29 = vld [vmem:[%s7103_s4 + $0x8] sm:$0xff]  }
 0x3e2   :  { %4686 = vmatpush3.bf16.msra.mxu1 %v5000_v25  ;;  %v2043_v31 = vpack.c.bf16 %v2027_v34, %v2027_v34  ;;  %v2042_v18 = vpack.c.bf16 %v2026_v44, %v2026_v44  ;;  %v3145_v6 = vunpack.c.l.b16 %v2849_v56  ;;  %v3147_v13 = vunpack.c.l.b16 %v2851_v55  ;;  %v5034_v26 = vld [vmem:[%s7103_s4 + $0x80] sm:$0xff]   ;;  %v5037_v3 = vld [vmem:[%s7103_s4 + $0xc8] sm:$0xff]   ;;  %v5039_v34 = vld [vmem:[%s7103_s4 + $0x50] sm:$0xff]  }
 0x3e3   :  { %2628 = vmatprep.mubr.bf16.mxu0 %v2039_v45  ;;  %4687 = vmatprep.subr.bf16.mxu1 %v5001_v20  ;;  %v4378_v40 = vcombine.low %v6510_v53, %v1919_v7  ;;  %v4380_v19 = vcombine.low %v6507_v38, %v1954_v36  ;;  %v5010_v38 = vld [vmem:[%s7102_s3 + $0x1d0] sm:$0xff]   ;;  %v5009_v53 = vld [vmem:[%s7102_s3 + $0x158] sm:$0xff]   ;;  %v5038_v8 = vld [vmem:[%s7103_s4 + $0x88] sm:$0xff]  }
 0x3e4   :  { %2629 = vmatmul.mubr.bf16.vlgmr.msra.gmra.mrb[24].mxu0 %v2038_v14  ;;  %v3167_v28 = vrot.slane %v3145_v6, 7  ;;  %v3171_v2 = vrot.slane %v3147_v13, 7  ;;  %v5040_v36 = vld [vmem:[%s7103_s4 + $0x10] sm:$0xff]   ;;  %v5043_v45 = vld [vmem:[%s7103_s4 + $0x58] sm:$0xff]  }
 0x3e5   :  { %4708 = vmatpush3.bf16.msra.mxu0 %v5004_v43  ;;  %2708 = vmatprep.mubr.bf16.mxu0 %v2043_v31  ;;  %v2002_v35 = vrot.slane %v4378_v40, %v6489_v16  ;;  %v2016_v10 = vrot.slane %v4380_v19, %v6489_v16  ;;  %v5041_v7 = vld [vmem:[%s7103_s4 + $0xd0] sm:$0xff]   ;;  %v5044_v43 = vld [vmem:[%s7103_s4 + $0x18] sm:$0xff]   ;;  %v5047_v31 = vld [vmem:[%s7103_s4 + $0x60] sm:$0xff]  }
 0x3e6   :  { %4688 = vmatpush3.bf16.msra.mxu1 %v5003_v48  ;;  %4709 = vmatprep.subr.bf16.mxu0 %v5006_v0  ;;  %v3168_v25 = vsel %vm3165_vm13, %v3167_v28, %v3145_v6  ;;  %v3172_v5 = vsel %vm3165_vm13, %v3171_v2, %v3147_v13  ;;  %v5042_v14 = vld [vmem:[%s7103_s4 + $0x90] sm:$0xff]   ;;  %v5045_v48 = vld [vmem:[%s7103_s4 + $0xd8] sm:$0xff]   ;;  %v5048_v40 = vld [vmem:[%s7103_s4 + $0x20] sm:$0xff]  }
 0x3e7   :  { %4689 = vmatprep.subr.bf16.mxu1 %v5005_v57  ;;  %v2025_v62 = vcombine.high %v2002_v35, %v2016_v10  ;;  %v2024_v51 = vcombine.low %v2002_v35, %v2016_v10  ;;  %v6666_v11 = vpack.c.b16 %v3168_v25, %v3168_v25  ;;  %v6672_v20 = vpack.c.b16 %v3172_v5, %v3172_v5  ;;  %v5046_v0 = vld [vmem:[%s7103_s4 + $0x98] sm:$0xff]   ;;  %v5049_v19 = vld [vmem:[%s7103_s4 + $0xe0] sm:$0xff]   ;;  %v5071_v44 = vld [vmem:[%s7103_s4 + $0x150] sm:$0xff]  }
 0x3e8   :  { %v2850_v57 = vpack.c.bf16 %v5298_v27, %v5298_v27  ;;  %v5174_v35 = vmov 0.0|0.0   ;;  %v5051_v27 = vld [vmem:[%s7103_s4 + $0x68] sm:$0xff]   ;;  %v5074_v56 = vld [vmem:[%s7103_s4 + $0x190] sm:$0xff]   ;;  %v5075_v55 = vld [vmem:[%s7103_s4 + $0x158] sm:$0xff]  }
 0x3e9   :  { %4710 = vmatpush3.bf16.msra.mxu0 %v5008_v21  ;;  %v2041_v24 = vpack.c.bf16 %v2025_v62, %v2025_v62  ;;  %v2040_v15 = vpack.c.bf16 %v2024_v51, %v2024_v51  ;;  %v5050_v21 = vld [vmem:[%s7103_s4 + $0xa0] sm:$0xff]   ;;  %v3144_v10 = vunpack.c.l.b16 %v5174_v35  ;;  %v5054_v62 = vld [vmem:[%s7103_s4 + $0xa8] sm:$0xff]   ;;  %v5078_v6 = vld [vmem:[%s7103_s4 + $0x198] sm:$0xff]  }
 0x3ea   :  { %4690 = vmatpush3.bf16.msra.mxu1 %v5007_v58  ;;  %4711 = vmatprep.subr.bf16.mxu0 %v5010_v38  ;;  %v3146_v58 = vunpack.c.l.b16 %v2850_v57  ;;  %v5052_v38 = vld [vmem:[%s7103_s4 + $0x28] sm:$0xff]   ;;  %v5079_v13 = vld [vmem:[%s7103_s4 + $0x160] sm:$0xff]   ;;  %v5088_v57 = vld [vmem:[%s7103_s4 + $0x1f0] sm:$0xff]  }
 0x3eb   :  { %4691 = vmatprep.subr.bf16.mxu1 %v5009_v53  ;;  %2668 = vmatprep.mubr.bf16.mxu1 %v2041_v24  ;;  %v5053_v53 = vld [vmem:[%s7103_s4 + $0xe8] sm:$0xff]   ;;  %v3164_v24 = vrot.slane %v3144_v10, 7  ;;  %v5092_v35 = vld [vmem:[%s7103_s4 + $0x1f8] sm:$0xff]  }
 0x3ec   :  { %v5069_v51 = vld [vmem:[%s7103_s4 + $0x108] sm:$0xff]  }
 0x3ed   :  { %4712 = vmatpush3.bf16.msra.mxu0 %v5012_v22  ;;  %v5055_v22 = vld [vmem:[%s7103_s4 + $0x70] sm:$0xff]   ;;  %v5084_v5 = vld [vmem:[%s7103_s4 + $0x1e8] sm:$0xff]  }
 0x3ee   :  { %4692 = vmatpush3.bf16.msra.mxu1 %v5011_v41  ;;  %4713 = vmatprep.subr.bf16.mxu0 %v5014_v17  ;;  %v3169_v41 = vrot.slane %v3146_v58, 7  ;;  %v5056_v17 = vld [vmem:[%s7103_s4 + $0x30] sm:$0xff]  }
 0x3ef   :  { %4693 = vmatprep.subr.bf16.mxu1 %v5013_v42  ;;  %v5057_v42 = vld [vmem:[%s7103_s4 + $0xf0] sm:$0xff]  }
 0x3f1   :  { %4714 = vmatpush3.bf16.msra.mxu0 %v5016_v32  ;;  %v5058_v32 = vld [vmem:[%s7103_s4 + $0xb0] sm:$0xff]  }
 0x3f2   :  { %4694 = vmatpush3.bf16.msra.mxu1 %v5015_v47  ;;  %4715 = vmatprep.subr.bf16.mxu0 %v5018_v37  ;;  %v3166_v47 = vsel %vm3165_vm13, %v3164_v24, %v3144_v10  ;;  %v5059_v37 = vld [vmem:[%s7103_s4 + $0x78] sm:$0xff]  }
 0x3f3   :  { %4695 = vmatprep.subr.bf16.mxu1 %v5017_v49  ;;  %v5060_v49 = vld [vmem:[%s7103_s4 + $0x38] sm:$0xff]  }
 0x3f4   :  { %v5093_v10 = vld [vmem:[%s7103_s4 + $0x138] sm:$0xff]  }
 0x3f5   :  { %4716 = vmatpush3.bf16.msra.mxu0 %v5020_v61  ;;  %v3170_v61 = vsel %vm3165_vm13, %v3169_v41, %v3146_v58  ;;  %v5095_v58 = vld [vmem:[%s7103_s4 + $0x240] sm:$0xff]  }
 0x3f6   :  { %4696 = vmatpush3.bf16.msra.mxu1 %v5019_v60  ;;  %4717 = vmatprep.subr.bf16.mxu0 %v5022_v50  ;;  %v5061_v60 = vld [vmem:[%s7103_s4 + $0xf8] sm:$0xff]   ;;  %v6749_v50 = vpack.c.b16 %v3166_v47, %v3166_v47 }
 0x3f7   :  { %4697 = vmatprep.subr.bf16.mxu1 %v5021_v39  ;;  %v5062_v39 = vld [vmem:[%s7103_s4 + $0xb8] sm:$0xff]  }
 0x3f9   :  { %4718 = vmatpush3.bf16.msra.mxu0 %v5024_v52  ;;  %v6754_v52 = vpack.c.b16 %v3170_v61, %v3170_v61 }
 0x3fa   :  { %4698 = vmatpush3.bf16.msra.mxu1 %v5023_v59  ;;  %4719 = vmatprep.subr.bf16.mxu0 %v5026_v46  ;;  %v5063_v59 = vld [vmem:[%s7103_s4 + $0x140] sm:$0xff]  }
 0x3fb   :  { %4699 = vmatprep.subr.bf16.mxu1 %v5025_v4  ;;  %v5064_v46 = vld [vmem:[%s7103_s4 + $0x1c0] sm:$0xff]  }
 0x3fc   :  { %v5065_v4 = vld [vmem:[%s7103_s4 + $0x100] sm:$0xff]  }
 0x3fd   :  { %4720 = vmatpush3.bf16.msra.mxu0 %v5028_v12  ;;  %v5066_v12 = vld [vmem:[%s7103_s4 + $0x180] sm:$0xff]  }
 0x3fe   :  { %4700 = vmatpush3.bf16.msra.mxu1 %v5027_v33  ;;  %4721 = vmatprep.subr.bf16.mxu0 %v5029_v23  ;;  %v5067_v33 = vld [vmem:[%s7103_s4 + $0x148] sm:$0xff]  }
 0x3ff   :  { %4729 = vmatprep.subr.bf16.mxu1 %v5031_v9  ;;  %v5068_v23 = vld [vmem:[%s7103_s4 + $0x1c8] sm:$0xff]   ;;  %v5076_v9 = vld [vmem:[%s7103_s4 + $0x1d8] sm:$0xff]  }
 0x401   :  { %2669 = vmatmul.mubr.bf16.vlgmr.msra.gmra.mrb[12].mxu1 %v2040_v15  ;;  %4722 = vmatpush3.bf16.msra.mxu0 %v5030_v63  ;;  %v5070_v63 = vld [vmem:[%s7103_s4 + $0x188] sm:$0xff]   ;;  %v5072_v15 = vld [vmem:[%s7103_s4 + $0x1d0] sm:$0xff]  }
 0x402   :  { %4730 = vmatpush3.bf16.msra.mxu1 %v5032_v54  ;;  %4751 = vmatprep.subr.bf16.mxu0 %v5033_v1  ;;  %v5077_v54 = vld [vmem:[%s7103_s4 + $0x118] sm:$0xff]   ;;  %v5080_v1 = vld [vmem:[%s7103_s4 + $0x1e0] sm:$0xff]  }
 0x403   :  { %4731 = vmatprep.subr.bf16.mxu1 %v5035_v30  ;;  %4013 = vmatprep.mubr.bf16.mxu1 %v6666_v11  ;;  %v5082_v30 = vld [vmem:[%s7103_s4 + $0x1a0] sm:$0xff]  }
 0x404   :  { %2709 = vmatmul.mubr.bf16.vlgmr.msra.gmra.mrb[28].mxu0 %v2042_v18  ;;  %v5073_v18 = vld [vmem:[%s7103_s4 + $0x110] sm:$0xff]  }
 0x405   :  { %4752 = vmatpush3.bf16.msra.mxu0 %v5034_v26  ;;  %4053 = vmatprep.mubr.bf16.mxu0 %v6672_v20  ;;  %v5081_v26 = vld [vmem:[%s7103_s4 + $0x120] sm:$0xff]  }
 0x406   :  { %4732 = vmatpush3.bf16.msra.mxu1 %v5036_v29  ;;  %4753 = vmatprep.subr.bf16.mxu0 %v5037_v3  ;;  %v5083_v29 = vld [vmem:[%s7103_s4 + $0x168] sm:$0xff]  }
 0x407   :  { %4733 = vmatprep.subr.bf16.mxu1 %v5039_v34 }
 0x409   :  { %4754 = vmatpush3.bf16.msra.mxu0 %v5038_v8 }
 0x40a   :  { %4734 = vmatpush3.bf16.msra.mxu1 %v5040_v36  ;;  %4755 = vmatprep.subr.bf16.mxu0 %v5041_v7  ;;  %v5085_v7 = vld [vmem:[%s7103_s4 + $0x128] sm:$0xff]  }
 0x40b   :  { %4735 = vmatprep.subr.bf16.mxu1 %v5043_v45 }
 0x40d   :  { %4756 = vmatpush3.bf16.msra.mxu0 %v5042_v14 }
 0x40e   :  { %4736 = vmatpush3.bf16.msra.mxu1 %v5044_v43  ;;  %4757 = vmatprep.subr.bf16.mxu0 %v5045_v48  ;;  %v5086_v43 = vld [vmem:[%s7103_s4 + $0x1a8] sm:$0xff]  }
 0x40f   :  { %4737 = vmatprep.subr.bf16.mxu1 %v5047_v31 }
 0x411   :  { %4758 = vmatpush3.bf16.msra.mxu0 %v5046_v0  ;;  %v5087_v0 = vld [vmem:[%s7103_s4 + $0x170] sm:$0xff]  }
 0x412   :  { %4738 = vmatpush3.bf16.msra.mxu1 %v5048_v40  ;;  %4759 = vmatprep.subr.bf16.mxu0 %v5049_v19  ;;  %v5089_v40 = vld [vmem:[%s7103_s4 + $0x130] sm:$0xff]  }
 0x413   :  { %4739 = vmatprep.subr.bf16.mxu1 %v5051_v27  ;;  %v5090_v19 = vld [vmem:[%s7103_s4 + $0x1b0] sm:$0xff]   ;;  %v5094_v27 = vld [vmem:[%s7103_s4 + $0x1b8] sm:$0xff]  }
 0x415   :  { %4760 = vmatpush3.bf16.msra.mxu0 %v5050_v21  ;;  %v5091_v21 = vld [vmem:[%s7103_s4 + $0x178] sm:$0xff]  }
 0x416   :  { %4740 = vmatpush3.bf16.msra.mxu1 %v5052_v38  ;;  %4761 = vmatprep.subr.bf16.mxu0 %v5053_v53  ;;  %v5096_v38 = vld [vmem:[%s7103_s4 + $0x2c0] sm:$0xff]  }
 0x417   :  { %4741 = vmatprep.subr.bf16.mxu1 %v5055_v22 }
 0x419   :  { %4762 = vmatpush3.bf16.msra.mxu0 %v5054_v62 }
 0x41a   :  { %4742 = vmatpush3.bf16.msra.mxu1 %v5056_v17  ;;  %4763 = vmatprep.subr.bf16.mxu0 %v5057_v42 }
 0x41b   :  { %4743 = vmatprep.subr.bf16.mxu1 %v5059_v37 }
 0x41d   :  { %4764 = vmatpush3.bf16.msra.mxu0 %v5058_v32 }
 0x41e   :  { %4744 = vmatpush3.bf16.msra.mxu1 %v5060_v49  ;;  %4765 = vmatprep.subr.bf16.mxu0 %v5061_v60 }
 0x41f   :  { %4773 = vmatprep.subr.bf16.mxu1 %v5063_v59 }
 0x421   :  { %4766 = vmatpush3.bf16.msra.mxu0 %v5062_v39  ;;  %4014 = vmatmul.mubr.bf16.vlgmr.msra.gmra.mrb[16].mxu1 %v6749_v50 }
 0x422   :  { %4795 = vmatprep.subr.bf16.mxu0 %v5064_v46  ;;  %4774 = vmatpush3.bf16.msra.mxu1 %v5065_v4 }
 0x423   :  { %4775 = vmatprep.subr.bf16.mxu1 %v5067_v33 }
 0x424   :  { %4054 = vmatmul.mubr.bf16.vlgmr.msra.gmra.mrb[32].mxu0 %v6754_v52 }
 0x425   :  { %4796 = vmatpush3.bf16.msra.mxu0 %v5066_v12 }
 0x426   :  { %4797 = vmatprep.subr.bf16.mxu0 %v5068_v23  ;;  %4776 = vmatpush3.bf16.msra.mxu1 %v5069_v51 }
 0x427   :  { %4777 = vmatprep.subr.bf16.mxu1 %v5071_v44 }
 0x429   :  { %4798 = vmatpush3.bf16.msra.mxu0 %v5070_v63 }
 0x42a   :  { %4799 = vmatprep.subr.bf16.mxu0 %v5072_v15  ;;  %4778 = vmatpush3.bf16.msra.mxu1 %v5073_v18 }
 0x42b   :  { %4779 = vmatprep.subr.bf16.mxu1 %v5075_v55 }
 0x42d   :  { %4800 = vmatpush3.bf16.msra.mxu0 %v5074_v56 }
 0x42e   :  { %4801 = vmatprep.subr.bf16.mxu0 %v5076_v9  ;;  %4780 = vmatpush3.bf16.msra.mxu1 %v5077_v54 }
 0x42f   :  { %4781 = vmatprep.subr.bf16.mxu1 %v5079_v13 }
 0x431   :  { %4802 = vmatpush3.bf16.msra.mxu0 %v5078_v6 }
 0x432   :  { %4803 = vmatprep.subr.bf16.mxu0 %v5080_v1  ;;  %4782 = vmatpush3.bf16.msra.mxu1 %v5081_v26  ;;  %v4446_v26 = vld [vmem:[%s7104_s9] ss:$0 sm:$0xff] }
 0x433   :  { %4783 = vmatprep.subr.bf16.mxu1 %v5083_v29 }
 0x435   :  { %4804 = vmatpush3.bf16.msra.mxu0 %v5082_v30  ;;  %v4447_v30 = vld [vmem:[%s7105_s10] ss:$0 sm:$0xff] }
 0x436   :  { %4805 = vmatprep.subr.bf16.mxu0 %v5084_v5  ;;  %4784 = vmatpush3.bf16.msra.mxu1 %v5085_v7 }
 0x437   :  { %4785 = vmatprep.subr.bf16.mxu1 %v5087_v0 }
 0x439   :  { %4806 = vmatpush3.bf16.msra.mxu0 %v5086_v43 }
 0x43a   :  { %4807 = vmatprep.subr.bf16.mxu0 %v5088_v57  ;;  %4786 = vmatpush3.bf16.msra.mxu1 %v5089_v40 }
 0x43b   :  { %4787 = vmatprep.subr.bf16.mxu1 %v5091_v21 }
 0x43d   :  { %4808 = vmatpush3.bf16.msra.mxu0 %v5090_v19 }
 0x43e   :  { %4809 = vmatprep.subr.bf16.mxu0 %v5092_v35  ;;  %4788 = vmatpush3.bf16.msra.mxu1 %v5093_v10 }
 0x43f   :  { %4817 = vmatprep.subr.bf16.mxu1 %v5095_v58 }
 0x441   :  { %4810 = vmatpush3.bf16.msra.mxu0 %v5094_v27 }
 0x442   :  { %4839 = vmatprep.subr.bf16.mxu0 %v5096_v38 }
 0x4b4   :  { %v4657_v28 = vpop.f32.mrb[8].mxu1 }
 0x4b5   :  { %v4658_v2 = vpop.f32.mrb[9].mxu1 }
 0x4b6   :  { %v4659_v25 = vadd.f32 %v4658_v2, %v4657_v28  ;;  %v4660_v3 = vpop.f32.mrb[10].mxu1 }
 0x4b7   :  { %v4661_v8 = vpop.f32.mrb[11].mxu1  ;;  %v4679_v34 = vpop.f32.mrb[24].mxu0 }
 0x4b8   :  { %v4680_v36 = vpop.f32.mrb[25].mxu0 }
 0x4b9   :  { %v4681_v14 = vadd.f32 %v4680_v36, %v4679_v34  ;;  %v4682_v45 = vpop.f32.mrb[26].mxu0 }
 0x4ba   :  { %v4683_v48 = vpop.f32.mrb[27].mxu0 }
 0x4bb   :  { %v2631_v31 = vadd.f32 %v4681_v14, %v4659_v25 }
 0x4d4   :  { %v4701_v53 = vpop.f32.mrb[12].mxu1 }
 0x4d5   :  { %v4702_v62 = vpop.f32.mrb[13].mxu1 }
 0x4d6   :  { %v4703_v24 = vadd.f32 %v4702_v62, %v4701_v53  ;;  %v4704_v22 = vpop.f32.mrb[14].mxu1 }
 0x4d7   :  { %v4705_v41 = vpop.f32.mrb[15].mxu1  ;;  %v4723_v17 = vpop.f32.mrb[28].mxu0 }
 0x4d8   :  { %v2671_v42 = vadd.f32 %v4703_v24, %v2631_v31  ;;  %v4724_v32 = vpop.f32.mrb[29].mxu0 }
 0x4d9   :  { %v4725_v47 = vadd.f32 %v4724_v32, %v4723_v17  ;;  %v4726_v37 = vpop.f32.mrb[30].mxu0 }
 0x4da   :  { %v4727_v49 = vpop.f32.mrb[31].mxu0 }
 0x4db   :  { %v2711_v61 = vadd.f32 %v4725_v47, %v2671_v42 }
 0x4dd   :  { %v2716_v60 = vrot.slane %v2711_v61, 4  ;;  %v2722_v39 = vmul.f32 %v2711_v61, %v2711_v61 }
 0x4df   :  { %v2717_v59 = vadd.f32 %v2716_v60, %v2711_v61  ;;  %v2723_v46 = vrot.slane %v2722_v39, 4 }
 0x4e1   :  { %v2718_v4 = vrot.slane %v2717_v59, 2  ;;  %v2724_v12 = vadd.f32 %v2723_v46, %v2722_v39 }
 0x4e3   :  { %v2719_v33 = vadd.f32 %v2718_v4, %v2717_v59  ;;  %v2725_v23 = vrot.slane %v2724_v12, 2 }
 0x4e5   :  { %v2720_v51 = vrot.slane %v2719_v33, 1  ;;  %v2726_v63 = vadd.f32 %v2725_v23, %v2724_v12 }
 0x4e7   :  { %v2721_v44 = vadd.f32 %v2720_v51, %v2719_v33  ;;  %v2727_v15 = vrot.slane %v2726_v63, 1 }
 0x4e9   :  { %v2728_v18 = vadd.f32 %v2727_v15, %v2726_v63  ;;  %v2729_v56 = vmul.f32 0.125, %v2721_v44 }
 0x4eb   :  { %v2730_v55 = vmul.f32 0.125, %v2728_v18  ;;  %v2731_v9 = vmul.f32 %v2729_v56, %v2729_v56  ;;  %v2733_v13 = vsub.f32 %v2711_v61, %v2729_v56 }
 0x4ed   :  { %v2732_v54 = vsub.f32 %v2730_v55, %v2731_v9 }
 0x4ef   :  { %v2734_v6 = vadd.f32 1e-05, %v2732_v54 }
 0x4f1   :  { %5163 = vrsqrt.f32 %v2734_v6 }
 0x4fb   :  { %v5164_v1 = vpop.eup %5163 }
 0x4fc   :  { %v2736_v28 = vmul.f32 %v5164_v1, %v2733_v13 }
 0x4fe   :  { %v2744_v2 = vmul.f32 %v4446_v26, %v2736_v28 }
 0x500   :  { %v2752_v29 = vadd.f32 %v4447_v30, %v2744_v2 }
 0x502   :  { %vm2753_vm14 = vcmp.ge.f32.partialorder %v2752_v29, 0.0  ;;  %v2754_v25 = vmul.f32 0.2, %v2752_v29 }
 0x504   :  { %v2755_v3 = vsel %vm2753_vm14, %v2752_v29, %v2754_v25 }
 0x505   :  { %v2757_v5 = vcombine.high %v2755_v3, %v2755_v3  ;;  %v2764_v8 = vrot.slane %v2755_v3, %v6489_v16 }
 0x507   :  { %v2771_v34 = vrot.slane %v2757_v5, %v6489_v16  ;;  %v2780_v36 = vrot.slane %v2764_v8, %v6489_v16  ;;  %v2772_v7 = vcombine.high %v2764_v8, %v2764_v8  ;;  %v5097_v5 = vld [vmem:[%s7103_s4 + $0x200] sm:$0xff]  }
 0x508   :  { %v5098_v8 = vld [vmem:[%s7103_s4 + $0x280] sm:$0xff]  }
 0x509   :  { %v2794_v14 = vrot.slane %v2771_v34, %v6489_v16  ;;  %v2802_v45 = vrot.slane %v2780_v36, 7  ;;  %v2773_v43 = vcombine.high %v2771_v34, %v2771_v34  ;;  %v2787_v48 = vrot.slane %v2772_v7, %v6489_v16 }
 0x50b   :  { %v2804_v0 = vrot.slane %v2794_v14, 7  ;;  %v2810_v31 = vsel %vm464_vm2, 0.0, %v2802_v45  ;;  %v2801_v57 = vrot.slane %v2773_v43, %v6489_v16  ;;  %v2803_v19 = vrot.slane %v2787_v48, 7  ;;  %v5099_v45 = vld [vmem:[%s7103_s4 + $0x248] sm:$0xff]  }
 0x50c   :  { %v2814_v40 = vsel %vm1117_vm8, %v2810_v31, 0.0  ;;  %v5100_v43 = vld [vmem:[%s7103_s4 + $0x2c8] sm:$0xff]  }
 0x50d   :  { %v2812_v21 = vsel %vm464_vm2, 0.0, %v2804_v0  ;;  %v2822_v35 = vrot.slane %v2814_v40, 1  ;;  %v2830_v10 = vrot.slane %v2814_v40, 3  ;;  %v2852_v27 = vpack.c.bf16 %v2814_v40, %v2814_v40 }
 0x50e   :  { %v2816_v58 = vsel %vm1117_vm8, %v2812_v21, 0.0  ;;  %v2826_v38 = vrot.slane %v2814_v40, 2  ;;  %v2805_v53 = vrot.slane %v2801_v57, 7  ;;  %v2811_v16 = vsel %vm464_vm2, 0.0, %v2803_v19  ;;  %v5101_v57 = vld [vmem:[%s7103_s4 + $0x208] sm:$0xff]  }
 0x50f   :  { %v2823_v62 = vrot.slane %v2816_v58, 1  ;;  %v2853_v24 = vpack.c.bf16 %v2822_v35, %v2822_v35  ;;  %v2831_v22 = vrot.slane %v2816_v58, 3  ;;  %v2855_v41 = vpack.c.bf16 %v2830_v10, %v2830_v10  ;;  %v5102_v35 = vld [vmem:[%s7103_s4 + $0x288] sm:$0xff]   ;;  %v5103_v10 = vld [vmem:[%s7103_s4 + $0x250] sm:$0xff]  }
 0x510   :  { %v2860_v17 = vpack.c.bf16 %v2816_v58, %v2816_v58  ;;  %v3148_v42 = vunpack.c.l.b16 %v2852_v27  ;;  %v2827_v32 = vrot.slane %v2816_v58, 2  ;;  %v2854_v61 = vpack.c.bf16 %v2826_v38, %v2826_v38  ;;  %v5104_v58 = vld [vmem:[%s7103_s4 + $0x2d0] sm:$0xff]  }
 0x511   :  { %v2861_v47 = vpack.c.bf16 %v2823_v62, %v2823_v62  ;;  %v3149_v37 = vunpack.c.l.b16 %v2853_v24  ;;  %v2863_v49 = vpack.c.bf16 %v2831_v22, %v2831_v22  ;;  %v3151_v60 = vunpack.c.l.b16 %v2855_v41  ;;  %v5105_v62 = vld [vmem:[%s7103_s4 + $0x210] sm:$0xff]   ;;  %v5107_v22 = vld [vmem:[%s7103_s4 + $0x258] sm:$0xff]  }
 0x512   :  { %v3156_v39 = vunpack.c.l.b16 %v2860_v17  ;;  %v2862_v59 = vpack.c.bf16 %v2827_v32, %v2827_v32  ;;  %v2813_v46 = vsel %vm464_vm2, 0.0, %v2805_v53  ;;  %v6879_v33 = vsel %vm1117_vm8, %v2811_v16, 0.0  ;;  %v5106_v24 = vld [vmem:[%s7103_s4 + $0x290] sm:$0xff]   ;;  %v5108_v41 = vld [vmem:[%s7103_s4 + $0x2d8] sm:$0xff]   ;;  %v5111_v32 = vld [vmem:[%s7103_s4 + $0x260] sm:$0xff]  }
 0x513   :  { %v3157_v4 = vunpack.c.l.b16 %v2861_v47  ;;  %v3159_v12 = vunpack.c.l.b16 %v2863_v49  ;;  %v6882_v23 = vsel %vm1117_vm8, %v2813_v46, 0.0  ;;  %v2836_v44 = vrot.slane %v6879_v33, 1  ;;  %v5109_v17 = vld [vmem:[%s7103_s4 + $0x218] sm:$0xff]   ;;  %v5112_v16 = vld [vmem:[%s7103_s4 + $0x2e0] sm:$0xff]   ;;  %v5117_v46 = vld [vmem:[%s7103_s4 + $0x228] sm:$0xff]  }
 0x514   :  { %v3173_v51 = vrot.slane %v3156_v39, 7  ;;  %v3158_v63 = vunpack.c.l.b16 %v2862_v59  ;;  %v2837_v15 = vrot.slane %v6882_v23, 1  ;;  %v2844_v55 = vrot.slane %v6879_v33, 3  ;;  %v5114_v49 = vld [vmem:[%s7103_s4 + $0x2a0] sm:$0xff]  }
 0x515   :  { %v3175_v18 = vrot.slane %v3157_v4, 7  ;;  %v3179_v56 = vrot.slane %v3159_v12, 7  ;;  %v2845_v9 = vrot.slane %v6882_v23, 3  ;;  %v3150_v6 = vunpack.c.l.b16 %v2854_v61  ;;  %v5115_v61 = vld [vmem:[%s7103_s4 + $0x268] sm:$0xff]   ;;  %v5119_v12 = vld [vmem:[%s7103_s4 + $0x270] sm:$0xff]  }
 0x516   :  { %v3174_v54 = vsel %vm3165_vm13, %v3173_v51, %v3148_v42  ;;  %v3177_v13 = vrot.slane %v3158_v63, 7  ;;  %v2865_v1 = vpack.c.bf16 %v2837_v15, %v2837_v15  ;;  %v2857_v30 = vpack.c.bf16 %v2836_v44, %v2836_v44  ;;  %v5110_v42 = vld [vmem:[%s7103_s4 + $0x298] sm:$0xff]   ;;  %v5118_v4 = vld [vmem:[%s7103_s4 + $0x2a8] sm:$0xff]   ;;  %v5121_v15 = vld [vmem:[%s7103_s4 + $0x230] sm:$0xff]  }
 0x517   :  { %v3176_v26 = vsel %vm3165_vm13, %v3175_v18, %v3149_v37  ;;  %v3180_v28 = vsel %vm3165_vm13, %v3179_v56, %v3151_v60  ;;  %v3193_v25 = vpack.c.b16 %v3174_v54, %v3174_v54  ;;  %v2859_v7 = vpack.c.bf16 %v2844_v55, %v2844_v55  ;;  %v5113_v37 = vld [vmem:[%s7103_s4 + $0x220] sm:$0xff]   ;;  %v5116_v60 = vld [vmem:[%s7103_s4 + $0x2e8] sm:$0xff]   ;;  %v5122_v56 = vld [vmem:[%s7103_s4 + $0x2b0] sm:$0xff]  }
 0x518   :  { %v3194_v2 = vpack.c.b16 %v3176_v26, %v3176_v26  ;;  %v3196_v29 = vpack.c.b16 %v3180_v28, %v3180_v28  ;;  %v3178_v3 = vsel %vm3165_vm13, %v3177_v13, %v3150_v6  ;;  %v3161_v36 = vunpack.c.l.b16 %v2865_v1  ;;  %v5123_v55 = vld [vmem:[%s7103_s4 + $0x278] sm:$0xff]  }
 0x519   :  { %v3195_v34 = vpack.c.b16 %v3178_v3, %v3178_v3  ;;  %v2867_v14 = vpack.c.bf16 %v2845_v9, %v2845_v9  ;;  %v3153_v48 = vunpack.c.l.b16 %v2857_v30  ;;  %v3155_v19 = vunpack.c.l.b16 %v2859_v7  ;;  %v5124_v54 = vld [vmem:[%s7103_s4 + $0x2f8] sm:$0xff]   ;;  %v5127_v30 = vld [vmem:[%s7103_s4 + $0x340] sm:$0xff]   ;;  %v5132_v7 = vld [vmem:[%s7103_s4 + $0x3c8] sm:$0xff]  }
 0x51a   :  { %4093 = vmatprep.mubr.bf16.mxu1 %v3194_v2  ;;  %4133 = vmatprep.mubr.bf16.mxu0 %v3196_v29  ;;  %v3183_v0 = vrot.slane %v3161_v36, 7  ;;  %v2841_v47 = vrot.slane %v6882_v23, 2  ;;  %v2864_v39 = vpack.c.bf16 %v6882_v23, %v6882_v23  ;;  %v2840_v51 = vrot.slane %v6879_v33, 2  ;;  %v5120_v23 = vld [vmem:[%s7103_s4 + $0x2f0] sm:$0xff]   ;;  %v5126_v26 = vld [vmem:[%s7103_s4 + $0x2b8] sm:$0xff]   ;;  %v5128_v29 = vld [vmem:[%s7103_s4 + $0x3c0] sm:$0xff]  }
 0x51b   :  { %4094 = vmatmul.mubr.bf16.vlgmr.msra.gmra.mrb[20].mxu1 %v3193_v25  ;;  %4134 = vmatmul.mubr.bf16.vlgmr.msra.gmra.mrb[36].mxu0 %v3195_v34  ;;  %v3163_v31 = vunpack.c.l.b16 %v2867_v14  ;;  %v2856_v18 = vpack.c.bf16 %v6879_v33, %v6879_v33  ;;  %v5125_v33 = vld [vmem:[%s7103_s4 + $0x238] sm:$0xff]   ;;  %v5129_v3 = vld [vmem:[%s7103_s4 + $0x300] sm:$0xff]   ;;  %v5131_v34 = vld [vmem:[%s7103_s4 + $0x348] sm:$0xff]   ;;  %vm4307_vm2 = vcmask 58368  }
 0x51c   :  { %4818 = vmatpush3.bf16.msra.mxu1 %v5097_v5  ;;  %4840 = vmatpush3.bf16.msra.mxu0 %v5098_v8  ;;  %v3184_v40 = vsel %vm3165_vm13, %v3183_v0, %v3153_v48  ;;  %v2866_v59 = vpack.c.bf16 %v2841_v47, %v2841_v47  ;;  %v3160_v63 = vunpack.c.l.b16 %v2864_v39  ;;  %v2858_v9 = vpack.c.bf16 %v2840_v51, %v2840_v51  ;;  %v5130_v8 = vld [vmem:[%s7103_s4 + $0x380] sm:$0xff]   ;;  %v5133_v14 = vld [vmem:[%s7103_s4 + $0x308] sm:$0xff]   ;;  %v5136_v48 = vld [vmem:[%s7103_s4 + $0x3d0] sm:$0xff]   ;;  %v4745_v47 = vpop.f32.mrb[16].mxu1 }
 0x51d   :  { %v3187_v21 = vrot.slane %v3163_v31, 7  ;;  %4819 = vmatprep.subr.bf16.mxu1 %v5099_v45  ;;  %4841 = vmatprep.subr.bf16.mxu0 %v5100_v43  ;;  %v3198_v27 = vpack.c.b16 %v3184_v40, %v3184_v40  ;;  %v3152_v1 = vunpack.c.l.b16 %v2856_v18  ;;  %v5134_v45 = vld [vmem:[%s7103_s4 + $0x388] sm:$0xff]   ;;  %v5135_v43 = vld [vmem:[%s7103_s4 + $0x350] sm:$0xff]   ;;  %v5142_v40 = vld [vmem:[%s7103_s4 + $0x398] sm:$0xff]  }
 0x51e   :  { %v3162_v44 = vunpack.c.l.b16 %v2866_v59  ;;  %v3181_v6 = vrot.slane %v3160_v63, 7  ;;  %v3154_v28 = vunpack.c.l.b16 %v2858_v9  ;;  %v5137_v0 = vld [vmem:[%s7103_s4 + $0x310] sm:$0xff]  }
 0x51f   :  { %v3188_v38 = vsel %vm3165_vm13, %v3187_v21, %v3155_v19  ;;  %4173 = vmatprep.mubr.bf16.mxu1 %v3198_v27  ;;  %v5138_v31 = vld [vmem:[%s7103_s4 + $0x390] sm:$0xff]   ;;  %v5143_v19 = vld [vmem:[%s7103_s4 + $0x360] sm:$0xff]   ;;  %v5147_v27 = vld [vmem:[%s7103_s4 + $0x368] sm:$0xff]  }
 0x520   :  { %v3200_v53 = vpack.c.b16 %v3188_v38, %v3188_v38  ;;  %4820 = vmatpush3.bf16.msra.mxu1 %v5101_v57  ;;  %4842 = vmatpush3.bf16.msra.mxu0 %v5102_v35  ;;  %v3185_v13 = vrot.slane %v3162_v44, 7  ;;  %v3182_v2 = vsel %vm3165_vm13, %v3181_v6, %v3152_v1  ;;  %v5139_v57 = vld [vmem:[%s7103_s4 + $0x358] sm:$0xff]   ;;  %v5144_v21 = vld [vmem:[%s7103_s4 + $0x3e0] sm:$0xff]   ;;  %v5149_v38 = vld [vmem:[%s7103_s4 + $0x328] sm:$0xff]  }
 0x521   :  { %4821 = vmatprep.subr.bf16.mxu1 %v5103_v10  ;;  %4843 = vmatprep.subr.bf16.mxu0 %v5104_v58  ;;  %v3197_v5 = vpack.c.b16 %v3182_v2, %v3182_v2  ;;  %v5145_v35 = vld [vmem:[%s7103_s4 + $0x320] sm:$0xff]   ;;  %v5148_v58 = vld [vmem:[%s7103_s4 + $0x3e8] sm:$0xff]  }
 0x522   :  { %4213 = vmatprep.mubr.bf16.mxu0 %v3200_v53  ;;  %v3186_v25 = vsel %vm3165_vm13, %v3185_v13, %v3154_v28  ;;  %v5146_v10 = vld [vmem:[%s7103_s4 + $0x3a0] sm:$0xff]   ;;  %v5150_v53 = vld [vmem:[%s7103_s4 + $0x3a8] sm:$0xff]  }
 0x523   :  { %v3199_v36 = vpack.c.b16 %v3186_v25, %v3186_v25 }
 0x524   :  { %4822 = vmatpush3.bf16.msra.mxu1 %v5105_v62  ;;  %4844 = vmatpush3.bf16.msra.mxu0 %v5106_v24  ;;  %v5151_v62 = vld [vmem:[%s7103_s4 + $0x370] sm:$0xff]  }
 0x525   :  { %4823 = vmatprep.subr.bf16.mxu1 %v5107_v22  ;;  %4845 = vmatprep.subr.bf16.mxu0 %v5108_v41  ;;  %v5152_v24 = vld [vmem:[%s7103_s4 + $0x3f0] sm:$0xff]  }
 0x526   :  { %v5153_v22 = vld [vmem:[%s7103_s4 + $0x330] sm:$0xff]  }
 0x527   :  { %v5154_v41 = vld [vmem:[%s7103_s4 + $0x3b0] sm:$0xff]  }
 0x528   :  { %4824 = vmatpush3.bf16.msra.mxu1 %v5109_v17  ;;  %4846 = vmatpush3.bf16.msra.mxu0 %v5110_v42  ;;  %v5155_v17 = vld [vmem:[%s7103_s4 + $0x378] sm:$0xff]  }
 0x529   :  { %4825 = vmatprep.subr.bf16.mxu1 %v5111_v32  ;;  %4847 = vmatprep.subr.bf16.mxu0 %v5112_v16  ;;  %v5156_v42 = vld [vmem:[%s7103_s4 + $0x3f8] sm:$0xff]  }
 0x52a   :  { %v5157_v32 = vld [vmem:[%s7103_s4 + $0x338] sm:$0xff]  }
 0x52b   :  { %v5158_v16 = vld [vmem:[%s7103_s4 + $0x3b8] sm:$0xff]  }
 0x52c   :  { %4826 = vmatpush3.bf16.msra.mxu1 %v5113_v37  ;;  %4848 = vmatpush3.bf16.msra.mxu0 %v5114_v49  ;;  %v4746_v37 = vpop.f32.mrb[17].mxu1 }
 0x52d   :  { %4827 = vmatprep.subr.bf16.mxu1 %v5115_v61  ;;  %4849 = vmatprep.subr.bf16.mxu0 %v5116_v60  ;;  %v4747_v49 = vadd.f32 %v4746_v37, %v4745_v47  ;;  %v4748_v61 = vpop.f32.mrb[18].mxu1  ;;  %v4767_v60 = vpop.f32.mrb[32].mxu0 }
 0x52e   :  { %v4749_v39 = vpop.f32.mrb[19].mxu1  ;;  %v4768_v59 = vpop.f32.mrb[33].mxu0 }
 0x530   :  { %4828 = vmatpush3.bf16.msra.mxu1 %v5117_v46  ;;  %4850 = vmatpush3.bf16.msra.mxu0 %v5118_v4  ;;  %v4769_v46 = vadd.f32 %v4768_v59, %v4767_v60  ;;  %v4770_v4 = vpop.f32.mrb[34].mxu0 }
 0x531   :  { %4829 = vmatprep.subr.bf16.mxu1 %v5119_v12  ;;  %4851 = vmatprep.subr.bf16.mxu0 %v5120_v23  ;;  %v4771_v12 = vpop.f32.mrb[35].mxu0 }
 0x532   :  { %v4056_v51 = vadd.f32 %v4769_v46, %v4747_v49 }
 0x534   :  { %4830 = vmatpush3.bf16.msra.mxu1 %v5121_v15  ;;  %4852 = vmatpush3.bf16.msra.mxu0 %v5122_v56 }
 0x535   :  { %4831 = vmatprep.subr.bf16.mxu1 %v5123_v55  ;;  %4853 = vmatprep.subr.bf16.mxu0 %v5124_v54 }
 0x538   :  { %4832 = vmatpush3.bf16.msra.mxu1 %v5125_v33  ;;  %4854 = vmatpush3.bf16.msra.mxu0 %v5126_v26 }
 0x539   :  { %4861 = vmatprep.subr.bf16.mxu1 %v5127_v30  ;;  %4883 = vmatprep.subr.bf16.mxu0 %v5128_v29 }
 0x53b   :  { %4174 = vmatmul.mubr.bf16.vlgmr.msra.gmra.mrb[24].mxu1 %v3197_v5  ;;  %4214 = vmatmul.mubr.bf16.vlgmr.msra.gmra.mrb[40].mxu0 %v3199_v36 }
 0x53c   :  { %4862 = vmatpush3.bf16.msra.mxu1 %v5129_v3  ;;  %4884 = vmatpush3.bf16.msra.mxu0 %v5130_v8 }
 0x53d   :  { %4863 = vmatprep.subr.bf16.mxu1 %v5131_v34  ;;  %4885 = vmatprep.subr.bf16.mxu0 %v5132_v7 }
 0x53e   :  { %4253 = vmatprep.mubr.bf16.mxu1 %v6666_v11  ;;  %4293 = vmatprep.mubr.bf16.mxu0 %v6672_v20  ;;  %v5140_v11 = vld [vmem:[%s7103_s4 + $0x3d8] sm:$0xff]  }
 0x53f   :  { %v5141_v20 = vld [vmem:[%s7103_s4 + $0x318] sm:$0xff]  }
 0x540   :  { %4864 = vmatpush3.bf16.msra.mxu1 %v5133_v14  ;;  %4886 = vmatpush3.bf16.msra.mxu0 %v5134_v45 }
 0x541   :  { %4865 = vmatprep.subr.bf16.mxu1 %v5135_v43  ;;  %4887 = vmatprep.subr.bf16.mxu0 %v5136_v48 }
 0x544   :  { %4866 = vmatpush3.bf16.msra.mxu1 %v5137_v0  ;;  %4888 = vmatpush3.bf16.msra.mxu0 %v5138_v31 }
 0x545   :  { %4867 = vmatprep.subr.bf16.mxu1 %v5139_v57  ;;  %4889 = vmatprep.subr.bf16.mxu0 %v5140_v11 }
 0x548   :  { %4868 = vmatpush3.bf16.msra.mxu1 %v5141_v20  ;;  %4890 = vmatpush3.bf16.msra.mxu0 %v5142_v40 }
 0x549   :  { %4869 = vmatprep.subr.bf16.mxu1 %v5143_v19  ;;  %4891 = vmatprep.subr.bf16.mxu0 %v5144_v21 }
 0x54c   :  { %4870 = vmatpush3.bf16.msra.mxu1 %v5145_v35  ;;  %4892 = vmatpush3.bf16.msra.mxu0 %v5146_v10 }
 0x54d   :  { %4871 = vmatprep.subr.bf16.mxu1 %v5147_v27  ;;  %4893 = vmatprep.subr.bf16.mxu0 %v5148_v58 }
 0x550   :  { %4872 = vmatpush3.bf16.msra.mxu1 %v5149_v38  ;;  %4894 = vmatpush3.bf16.msra.mxu0 %v5150_v53 }
 0x551   :  { %4873 = vmatprep.subr.bf16.mxu1 %v5151_v62  ;;  %4895 = vmatprep.subr.bf16.mxu0 %v5152_v24 }
 0x554   :  { %4874 = vmatpush3.bf16.msra.mxu1 %v5153_v22  ;;  %4896 = vmatpush3.bf16.msra.mxu0 %v5154_v41 }
 0x555   :  { %4875 = vmatprep.subr.bf16.mxu1 %v5155_v17  ;;  %4897 = vmatprep.subr.bf16.mxu0 %v5156_v42 }
 0x558   :  { %4876 = vmatpush3.bf16.msra.mxu1 %v5157_v32  ;;  %4898 = vmatpush3.bf16.msra.mxu0 %v5158_v16 }
 0x55b   :  { %4254 = vmatmul.mubr.bf16.vlgmr.msra.gmra.mrb[28].mxu1 %v6749_v50  ;;  %4294 = vmatmul.mubr.bf16.vlgmr.msra.gmra.mrb[44].mxu0 %v6754_v52 }
 0x5ee   :  { %v4789_v23 = vpop.f32.mrb[20].mxu1  ;;  %v4811_v63 = vpop.f32.mrb[36].mxu0 }
 0x5ef   :  { %v4790_v44 = vpop.f32.mrb[21].mxu1  ;;  %v4812_v15 = vpop.f32.mrb[37].mxu0 }
 0x5f0   :  { %v4791_v18 = vadd.f32 %v4790_v44, %v4789_v23  ;;  %v4813_v56 = vadd.f32 %v4812_v15, %v4811_v63  ;;  %v4792_v50 = vpop.f32.mrb[22].mxu1  ;;  %v4814_v55 = vpop.f32.mrb[38].mxu0 }
 0x5f1   :  { %v4793_v52 = vpop.f32.mrb[23].mxu1  ;;  %v4815_v9 = vpop.f32.mrb[39].mxu0 }
 0x5f2   :  { %v4096_v54 = vadd.f32 %v4791_v18, %v4056_v51 }
 0x5f4   :  { %v4136_v6 = vadd.f32 %v4813_v56, %v4096_v54 }
 0x60e   :  { %v4833_v13 = vpop.f32.mrb[24].mxu1  ;;  %v4855_v33 = vpop.f32.mrb[40].mxu0 }
 0x60f   :  { %v4834_v1 = vpop.f32.mrb[25].mxu1  ;;  %v4856_v28 = vpop.f32.mrb[41].mxu0 }
 0x610   :  { %v4835_v26 = vadd.f32 %v4834_v1, %v4833_v13  ;;  %v4836_v30 = vpop.f32.mrb[26].mxu1  ;;  %v4857_v2 = vadd.f32 %v4856_v28, %v4855_v33  ;;  %v4858_v29 = vpop.f32.mrb[42].mxu0 }
 0x611   :  { %v4837_v25 = vpop.f32.mrb[27].mxu1  ;;  %v4859_v5 = vpop.f32.mrb[43].mxu0 }
 0x612   :  { %v4176_v3 = vadd.f32 %v4835_v26, %v4136_v6 }
 0x614   :  { %v4216_v8 = vadd.f32 %v4857_v2, %v4176_v3 }
 0x62e   :  { %v4877_v34 = vpop.f32.mrb[28].mxu1  ;;  %v4899_v36 = vpop.f32.mrb[44].mxu0 }
 0x62f   :  { %v4878_v7 = vpop.f32.mrb[29].mxu1  ;;  %v4900_v45 = vpop.f32.mrb[45].mxu0 }
 0x630   :  { %v4879_v14 = vadd.f32 %v4878_v7, %v4877_v34  ;;  %v4880_v43 = vpop.f32.mrb[30].mxu1  ;;  %v4901_v48 = vadd.f32 %v4900_v45, %v4899_v36  ;;  %v4902_v0 = vpop.f32.mrb[46].mxu0 }
 0x631   :  { %v4881_v31 = vpop.f32.mrb[31].mxu1  ;;  %v4903_v11 = vpop.f32.mrb[47].mxu0 }
 0x632   :  { %v4256_v57 = vadd.f32 %v4879_v14, %v4216_v8 }
 0x634   :  { %v4296_v20 = vadd.f32 %v4901_v48, %v4256_v57 }
 0x636   :  { %v4301_v40 = vsub.f32 0.0, %v4296_v20 }
 0x638   :  { %v4302_v19 = vmul.f32 1.442695, %v4301_v40 }
 0x63a   :  { %5165 = vpow2.f32 %v4302_v19 }
 0x644   :  { %v5166_v21 = vpop.eup %5165 }
 0x645   :  { %v4304_v35 = vadd.f32 1.0, %v5166_v21 }
 0x647   :  { %5167 = vrcp.f32 %v4304_v35 }
 0x651   :  { %v5168_v10 = vpop.eup %5167 }
 0x652   :  { %4308 = vst.msk [vmem:[%s7106_s11] sm:$0x3] %vm4307_vm2, %v5168_v10 }

</bundles_post_ra>
